<compile_context>
chip_gen: v7x
topology: tpu7x:2x2x1
jax: 0.10.0
libtpu: 0.0.40
codegen_flags: <defaults>
</compile_context>

<pallas_src>
import functools

import jax
import jax.numpy as jnp
from jax import lax
from jax.experimental import pallas as pl
from jax.experimental.pallas import tpu as pltpu

EPS = 1e-5


def _round_up(x, m):
    return ((x + m - 1) // m) * m


def _pick_row_chunk(H, W):
    """Largest divisor of H giving ~<=128 (row, W) pixels per MXU matmul."""
    target = max(1, 128 // max(W, 1))
    for th in range(min(H, target), 0, -1):
        if H % th == 0:
            return th
    return 1


def basic_block_kernel(xp_ref, w1_ref, b1_ref, w2_ref, b2_ref, o_ref, h_scr, *, TH):
    """One batch element per grid step.

    xp_ref : (1, H+2, Wp, Cp) bf16  spatially pre-padded input (NHWC, lane-dense C)
    w1_ref : (9, Cp, Cp)      bf16  conv1 taps (kh*3+kw, Cin, Cout), BN1 scale folded
    b1_ref : (1, 1, Cp)       f32   folded BN1 bias
    w2_ref : (9, Cp, Cp)      bf16  conv2 taps, BN2 scale folded
    b2_ref : (1, 1, Cp)       f32   folded BN2 bias
    o_ref  : (1, H, W, Cp)    f32   output (NHWC)
    h_scr  : (H+2, Wp, Cp)    bf16  zero-padded conv1 output (conv2 input)
    """
    _, Hp, Wp, Cp = xp_ref.shape
    H = Hp - 2
    W = o_ref.shape[2]
    n_chunks = H // TH

    # Zero only the 1-pixel border of the scratch (interior is fully rewritten
    # below; columns >= W+2 are never read by conv2).  Done per step so it stays
    # correct if the "parallel" batch axis is split across TensorCores.
    h_scr[0:1, :, :] = jnp.zeros((1, Wp, Cp), h_scr.dtype)
    h_scr[H + 1:H + 2, :, :] = jnp.zeros((1, Wp, Cp), h_scr.dtype)
    h_scr[:, 0:1, :] = jnp.zeros((Hp, 1, Cp), h_scr.dtype)
    h_scr[:, W + 1:W + 2, :] = jnp.zeros((Hp, 1, Cp), h_scr.dtype)

    def conv_chunk(load, w_ref):
        """3x3 conv for TH output rows: 9 shifted (TH*W, Cp)x(Cp, Cp) MXU matmuls."""
        acc = jnp.zeros((TH * W, Cp), jnp.float32)
        for kh in range(3):              # statically unrolled 9-tap loop
            for kw in range(3):
                patch = load(kh, kw).reshape(TH * W, Cp)     # bf16, lane-dense
                acc = acc + jnp.dot(patch, w_ref[kh * 3 + kw],
                                    preferred_element_type=jnp.float32)
        return acc

    # ---- phase 1: conv1 (BN1 scale folded) + bias + ReLU -> h_scr interior ----
    def phase1(c, carry):
        r0 = pl.multiple_of(c * TH, TH)
        acc = conv_chunk(
            lambda kh, kw: xp_ref[0, pl.ds(r0 + kh, TH), pl.ds(kw, W), :], w1_ref)
        h = jnp.maximum(acc + b1_ref[0], 0.0)
        h_scr[pl.ds(r0 + 1, TH), pl.ds(1, W), :] = (
            h.reshape(TH, W, Cp).astype(h_scr.dtype))
        return carry

    lax.fori_loop(0, n_chunks, phase1, 0)

    # ---- phase 2: conv2 (BN2 scale folded) + bias + residual + ReLU -> out ----
    def phase2(c, carry):
        r0 = pl.multiple_of(c * TH, TH)
        acc = conv_chunk(
            lambda kh, kw: h_scr[pl.ds(r0 + kh, TH), pl.ds(kw, W), :], w2_ref)
        res = xp_ref[0, pl.ds(r0 + 1, TH), pl.ds(1, W), :].reshape(TH * W, Cp)
        out = acc + b2_ref[0] + res.astype(jnp.float32)
        o_ref[0, pl.ds(r0, TH), :, :] = (
            jnp.maximum(out, 0.0).reshape(TH, W, Cp).astype(o_ref.dtype))
        return carry

    lax.fori_loop(0, n_chunks, phase2, 0)


def basic_block_pallas(x_nchw, w1, bn1, w2, bn2):
    """x_nchw: (B, C, H, W) f32; w*: (Cout, Cin, 3, 3); bn* = (gamma, beta, mean, var)."""
    B, C, H, W = x_nchw.shape
    Cp = _round_up(C, 128)       # lane-dense channels
    Wp = _round_up(W + 2, 8)     # sublane-aligned padded width (>= W+2)
    Hp = H + 2
    TH = _pick_row_chunk(H, W)

    # NCHW -> NHWC; pad H by 1, W to Wp (1 left, >=1 right), C to Cp; cast bf16.
    x_nhwc = jnp.transpose(x_nchw, (0, 2, 3, 1)).astype(jnp.float32)
    xp = jnp.pad(x_nhwc, ((0, 0), (1, 1), (1, Wp - (W + 1)), (0, Cp - C)))
    xp = xp.astype(jnp.bfloat16)

    # Fold BatchNorm (inference mode) into scale/bias; fold scale into weights.
    def fold_bn(bn):
        gamma, beta, mean, var = bn
        scale = gamma / jnp.sqrt(var + EPS)
        bias = beta - mean * scale
        return scale, bias

    def prep_w(w, scale):
        # (Cout, Cin, 3, 3) -> (kh*3+kw, Cin, Cout) with BN scale folded over Cout.
        wt = jnp.transpose(w, (2, 3, 1, 0)).reshape(9, C, C).astype(jnp.float32)
        wt = wt * scale.reshape(1, 1, C)
        wt = jnp.pad(wt, ((0, 0), (0, Cp - C), (0, Cp - C)))
        return wt.astype(jnp.bfloat16)

    def prep_b(bias):
        return jnp.pad(bias, (0, Cp - C)).reshape(1, 1, Cp).astype(jnp.float32)

    s1, b1 = fold_bn(bn1)
    s2, b2 = fold_bn(bn2)
    w1t, w2t = prep_w(w1, s1), prep_w(w2, s2)
    b1p, b2p = prep_b(b1), prep_b(b2)

    out_nhwc = pl.pallas_call(
        functools.partial(basic_block_kernel, TH=TH),
        out_shape=jax.ShapeDtypeStruct((B, H, W, Cp), jnp.float32),
        grid_spec=pltpu.PrefetchScalarGridSpec(
            num_scalar_prefetch=0,
            grid=(B,),
            in_specs=[
                pl.BlockSpec((1, Hp, Wp, Cp), lambda b: (b, 0, 0, 0)),   # padded x
                # weights/biases: constant block index -> not re-DMA'd per step
                pl.BlockSpec((9, Cp, Cp), lambda b: (0, 0, 0)),          # w1 (scaled)
                pl.BlockSpec((1, 1, Cp), lambda b: (0, 0, 0)),           # b1
                pl.BlockSpec((9, Cp, Cp), lambda b: (0, 0, 0)),          # w2 (scaled)
                pl.BlockSpec((1, 1, Cp), lambda b: (0, 0, 0)),           # b2
            ],
            out_specs=pl.BlockSpec((1, H, W, Cp), lambda b: (b, 0, 0, 0)),
            scratch_shapes=[pltpu.VMEM((Hp, Wp, Cp), jnp.bfloat16)],
        ),
        compiler_params=pltpu.CompilerParams(
            dimension_semantics=("parallel",),
            vmem_limit_bytes=32 * 1024 * 1024,
        ),
    )(xp, w1t, b1p, w2t, b2p)

    # Drop channel padding, NHWC -> NCHW to match PyTorch output convention.
    return jnp.transpose(out_nhwc[..., :C], (0, 3, 1, 2))


def basic_block_reference(x_nchw, w1, bn1, w2, bn2):
    """Pure-JAX f32 reference (lax.conv) for correctness checking."""
    def conv(x, w):  # NCHW, OIHW
        return lax.conv_general_dilated(
            x, w, window_strides=(1, 1), padding=((1, 1), (1, 1)),
            dimension_numbers=("NCHW", "OIHW", "NCHW"))

    def bn(x, p):
        gamma, beta, mean, var = (a.reshape(1, -1, 1, 1) for a in p)
        return (x - mean) / jnp.sqrt(var + EPS) * gamma + beta

    out = jax.nn.relu(bn(conv(x_nchw, w1), bn1))
    out = bn(conv(out, w2), bn2)
    return jax.nn.relu(out + x_nchw)


if __name__ == "__main__":
    B, C, H, W = 2, 8, 16, 16  # inplanes == planes, stride=1, downsample=None

    key = jax.random.PRNGKey(0)
    k = jax.random.split(key, 10)
    x = jax.random.normal(k[0], (B, C, H, W), jnp.float32)

    w1 = jax.random.normal(k[1], (C, C, 3, 3), jnp.float32) * 0.1
    w2 = jax.random.normal(k[2], (C, C, 3, 3), jnp.float32) * 0.1
    bn1 = (jax.random.uniform(k[3], (C,), jnp.float32, 0.5, 1.5),   # gamma
           jax.random.normal(k[4], (C,), jnp.float32) * 0.1,        # beta
           jax.random.normal(k[5], (C,), jnp.float32) * 0.1,        # running mean
           jax.random.uniform(k[6], (C,), jnp.float32, 0.5, 1.5))   # running var
    bn2 = (jax.random.uniform(k[7], (C,), jnp.float32, 0.5, 1.5),
           jax.random.normal(k[8], (C,), jnp.float32) * 0.1,
           jax.random.normal(k[9], (C,), jnp.float32) * 0.1,
           jax.random.uniform(k[6], (C,), jnp.float32, 0.5, 1.5))

    out = jax.block_until_ready(basic_block_pallas(x, w1, bn1, w2, bn2))
    ref = jax.block_until_ready(basic_block_reference(x, w1, bn1, w2, bn2))

    assert out.shape == (B, C, H, W), out.shape
    max_err = float(jnp.max(jnp.abs(out - ref)))
    # bf16 MXU operands + bf16 intermediate => compare with a loosened tolerance.
    assert jnp.allclose(out, ref, rtol=5e-2, atol=8e-2), max_err
    print("KERNEL_OK")
</pallas_src>

<mosaic_0001>
module attributes {stable_mosaic.version = 11 : i64} {
  func.func @basic_block_kernel(%arg0: i32, %arg1: memref<1x18x24x128xbf16, #tpu.memory_space<vmem>>, %arg2: memref<9x128x128xbf16, #tpu.memory_space<vmem>>, %arg3: memref<1x1x128xf32, #tpu.memory_space<vmem>>, %arg4: memref<9x128x128xbf16, #tpu.memory_space<vmem>>, %arg5: memref<1x1x128xf32, #tpu.memory_space<vmem>>, %arg6: memref<1x16x16x128xf32, #tpu.memory_space<vmem>>, %arg7: memref<18x24x128xbf16, #tpu.memory_space<vmem>>) attributes {dimension_semantics = [#tpu.dimension_semantics<parallel>], iteration_bounds = array<i64: 2>, scalar_prefetch = 0 : i64, scratch_operands = 1 : i64, tpu.core_type = #tpu.core_type<tc>, window_params = [{transform_indices = @transform_0, window_bounds = array<i64: 1, 18, 24, 128>}, {pipeline_mode = #tpu.pipeline_mode<synchronous>, transform_indices = @transform_1, window_bounds = array<i64: 9, 128, 128>}, {pipeline_mode = #tpu.pipeline_mode<synchronous>, transform_indices = @transform_2, window_bounds = array<i64: 1, 1, 128>}, {pipeline_mode = #tpu.pipeline_mode<synchronous>, transform_indices = @transform_3, window_bounds = array<i64: 9, 128, 128>}, {pipeline_mode = #tpu.pipeline_mode<synchronous>, transform_indices = @transform_4, window_bounds = array<i64: 1, 1, 128>}, {transform_indices = @transform_5, window_bounds = array<i64: 1, 16, 16, 128>}]} {
    %cst = arith.constant 0.000000e+00 : bf16
    %0 = vector.broadcast %cst : bf16 to vector<1x24x128xbf16>
    %c0 = arith.constant 0 : index
    %c0_0 = arith.constant 0 : index
    %c0_1 = arith.constant 0 : index
    %1 = vector.load %arg7[%c0, %c0_0, %c0_1] : memref<18x24x128xbf16, #tpu.memory_space<vmem>>, vector<1x24x128xbf16>
    tpu.vector_store %arg7[%c0, %c0_0, %c0_1], %0 {strides = array<i32>} : memref<18x24x128xbf16, #tpu.memory_space<vmem>>, vector<1x24x128xbf16>,
    %cst_2 = arith.constant 0.000000e+00 : bf16
    %2 = vector.broadcast %cst_2 : bf16 to vector<1x24x128xbf16>
    %c17 = arith.constant 17 : index
    %c0_3 = arith.constant 0 : index
    %c0_4 = arith.constant 0 : index
    %3 = vector.load %arg7[%c17, %c0_3, %c0_4] : memref<18x24x128xbf16, #tpu.memory_space<vmem>>, vector<1x24x128xbf16>
    tpu.vector_store %arg7[%c17, %c0_3, %c0_4], %2 {strides = array<i32>} : memref<18x24x128xbf16, #tpu.memory_space<vmem>>, vector<1x24x128xbf16>,
    %cst_5 = arith.constant 0.000000e+00 : bf16
    %4 = vector.broadcast %cst_5 : bf16 to vector<18x1x128xbf16>
    %c0_6 = arith.constant 0 : index
    %c0_7 = arith.constant 0 : index
    %c0_8 = arith.constant 0 : index
    %5 = vector.load %arg7[%c0_6, %c0_7, %c0_8] : memref<18x24x128xbf16, #tpu.memory_space<vmem>>, vector<18x1x128xbf16>
    tpu.vector_store %arg7[%c0_6, %c0_7, %c0_8], %4 {strides = array<i32>} : memref<18x24x128xbf16, #tpu.memory_space<vmem>>, vector<18x1x128xbf16>,
    %cst_9 = arith.constant 0.000000e+00 : bf16
    %6 = vector.broadcast %cst_9 : bf16 to vector<18x1x128xbf16>
    %c0_10 = arith.constant 0 : index
    %c17_11 = arith.constant 17 : index
    %c0_12 = arith.constant 0 : index
    %7 = vector.load %arg7[%c0_10, %c17_11, %c0_12] : memref<18x24x128xbf16, #tpu.memory_space<vmem>>, vector<18x1x128xbf16>
    tpu.vector_store %arg7[%c0_10, %c17_11, %c0_12], %6 {strides = array<i32>} : memref<18x24x128xbf16, #tpu.memory_space<vmem>>, vector<18x1x128xbf16>,
    %c0_i32 = arith.constant 0 : i32
    %c2_i32 = arith.constant 2 : i32
    %8 = arith.addi %c0_i32, %c2_i32 : i32
    %c1_i32 = arith.constant 1 : i32
    scf.for %arg8 = %c0_i32 to %8 step %c1_i32  : i32 {
      %c8_i32 = arith.constant 8 : i32
      %10 = arith.muli %arg8, %c8_i32 : i32
      %11 = tpu.assume_multiple %10, 8 : i32
      %cst_18 = arith.constant 0.000000e+00 : f32
      %12 = vector.broadcast %cst_18 : f32 to vector<128x128xf32>
      %c0_i32_19 = arith.constant 0 : i32
      %13 = arith.addi %11, %c0_i32_19 : i32
      %c0_20 = arith.constant 0 : index
      %14 = arith.index_cast %13 : i32 to index
      %c0_21 = arith.constant 0 : index
      %c0_22 = arith.constant 0 : index
      %15 = vector.load %arg1[%c0_20, %14, %c0_21, %c0_22] : memref<1x18x24x128xbf16, #tpu.memory_space<vmem>>, vector<1x8x16x128xbf16>
      %16 = vector.shape_cast %15 : vector<1x8x16x128xbf16> to vector<8x16x128xbf16>
      %17 = vector.shape_cast %16 : vector<8x16x128xbf16> to vector<128x128xbf16>
      %c0_23 = arith.constant 0 : index
      %c0_24 = arith.constant 0 : index
      %c0_25 = arith.constant 0 : index
      %18 = vector.load %arg2[%c0_23, %c0_24, %c0_25] : memref<9x128x128xbf16, #tpu.memory_space<vmem>>, vector<1x128x128xbf16>
      %19 = vector.shape_cast %18 : vector<1x128x128xbf16> to vector<128x128xbf16>
      %cst_26 = arith.constant dense<0.000000e+00> : vector<128x128xf32>
      %20 = tpu.matmul %17, %19, %cst_26 {dimension_numbers = #tpu.dot_dimension_numbers<[1], [0], [0], [1], [0, 0, 1, 1], [], []>} : vector<128x128xbf16>, vector<128x128xbf16>, vector<128x128xf32> -> vector<128x128xf32>
      %21 = arith.addf %12, %20 : vector<128x128xf32>
      %c0_i32_27 = arith.constant 0 : i32
      %22 = arith.addi %11, %c0_i32_27 : i32
      %c0_28 = arith.constant 0 : index
      %23 = arith.index_cast %22 : i32 to index
      %c1 = arith.constant 1 : index
      %c0_29 = arith.constant 0 : index
      %24 = vector.load %arg1[%c0_28, %23, %c1, %c0_29] : memref<1x18x24x128xbf16, #tpu.memory_space<vmem>>, vector<1x8x16x128xbf16>
      %25 = vector.shape_cast %24 : vector<1x8x16x128xbf16> to vector<8x16x128xbf16>
      %26 = vector.shape_cast %25 : vector<8x16x128xbf16> to vector<128x128xbf16>
      %c1_30 = arith.constant 1 : index
      %c0_31 = arith.constant 0 : index
      %c0_32 = arith.constant 0 : index
      %27 = vector.load %arg2[%c1_30, %c0_31, %c0_32] : memref<9x128x128xbf16, #tpu.memory_space<vmem>>, vector<1x128x128xbf16>
      %28 = vector.shape_cast %27 : vector<1x128x128xbf16> to vector<128x128xbf16>
      %cst_33 = arith.constant dense<0.000000e+00> : vector<128x128xf32>
      %29 = tpu.matmul %26, %28, %cst_33 {dimension_numbers = #tpu.dot_dimension_numbers<[1], [0], [0], [1], [0, 0, 1, 1], [], []>} : vector<128x128xbf16>, vector<128x128xbf16>, vector<128x128xf32> -> vector<128x128xf32>
      %30 = arith.addf %21, %29 : vector<128x128xf32>
      %c0_i32_34 = arith.constant 0 : i32
      %31 = arith.addi %11, %c0_i32_34 : i32
      %c0_35 = arith.constant 0 : index
      %32 = arith.index_cast %31 : i32 to index
      %c2 = arith.constant 2 : index
      %c0_36 = arith.constant 0 : index
      %33 = vector.load %arg1[%c0_35, %32, %c2, %c0_36] : memref<1x18x24x128xbf16, #tpu.memory_space<vmem>>, vector<1x8x16x128xbf16>
      %34 = vector.shape_cast %33 : vector<1x8x16x128xbf16> to vector<8x16x128xbf16>
      %35 = vector.shape_cast %34 : vector<8x16x128xbf16> to vector<128x128xbf16>
      %c2_37 = arith.constant 2 : index
      %c0_38 = arith.constant 0 : index
      %c0_39 = arith.constant 0 : index
      %36 = vector.load %arg2[%c2_37, %c0_38, %c0_39] : memref<9x128x128xbf16, #tpu.memory_space<vmem>>, vector<1x128x128xbf16>
      %37 = vector.shape_cast %36 : vector<1x128x128xbf16> to vector<128x128xbf16>
      %cst_40 = arith.constant dense<0.000000e+00> : vector<128x128xf32>
      %38 = tpu.matmul %35, %37, %cst_40 {dimension_numbers = #tpu.dot_dimension_numbers<[1], [0], [0], [1], [0, 0, 1, 1], [], []>} : vector<128x128xbf16>, vector<128x128xbf16>, vector<128x128xf32> -> vector<128x128xf32>
      %39 = arith.addf %30, %38 : vector<128x128xf32>
      %c1_i32_41 = arith.constant 1 : i32
      %40 = arith.addi %11, %c1_i32_41 : i32
      %c0_42 = arith.constant 0 : index
      %41 = arith.index_cast %40 : i32 to index
      %c0_43 = arith.constant 0 : index
      %c0_44 = arith.constant 0 : index
      %42 = vector.load %arg1[%c0_42, %41, %c0_43, %c0_44] : memref<1x18x24x128xbf16, #tpu.memory_space<vmem>>, vector<1x8x16x128xbf16>
      %43 = vector.shape_cast %42 : vector<1x8x16x128xbf16> to vector<8x16x128xbf16>
      %44 = vector.shape_cast %43 : vector<8x16x128xbf16> to vector<128x128xbf16>
      %c3 = arith.constant 3 : index
      %c0_45 = arith.constant 0 : index
      %c0_46 = arith.constant 0 : index
      %45 = vector.load %arg2[%c3, %c0_45, %c0_46] : memref<9x128x128xbf16, #tpu.memory_space<vmem>>, vector<1x128x128xbf16>
      %46 = vector.shape_cast %45 : vector<1x128x128xbf16> to vector<128x128xbf16>
      %cst_47 = arith.constant dense<0.000000e+00> : vector<128x128xf32>
      %47 = tpu.matmul %44, %46, %cst_47 {dimension_numbers = #tpu.dot_dimension_numbers<[1], [0], [0], [1], [0, 0, 1, 1], [], []>} : vector<128x128xbf16>, vector<128x128xbf16>, vector<128x128xf32> -> vector<128x128xf32>
      %48 = arith.addf %39, %47 : vector<128x128xf32>
      %c1_i32_48 = arith.constant 1 : i32
      %49 = arith.addi %11, %c1_i32_48 : i32
      %c0_49 = arith.constant 0 : index
      %50 = arith.index_cast %49 : i32 to index
      %c1_50 = arith.constant 1 : index
      %c0_51 = arith.constant 0 : index
      %51 = vector.load %arg1[%c0_49, %50, %c1_50, %c0_51] : memref<1x18x24x128xbf16, #tpu.memory_space<vmem>>, vector<1x8x16x128xbf16>
      %52 = vector.shape_cast %51 : vector<1x8x16x128xbf16> to vector<8x16x128xbf16>
      %53 = vector.shape_cast %52 : vector<8x16x128xbf16> to vector<128x128xbf16>
      %c4 = arith.constant 4 : index
      %c0_52 = arith.constant 0 : index
      %c0_53 = arith.constant 0 : index
      %54 = vector.load %arg2[%c4, %c0_52, %c0_53] : memref<9x128x128xbf16, #tpu.memory_space<vmem>>, vector<1x128x128xbf16>
      %55 = vector.shape_cast %54 : vector<1x128x128xbf16> to vector<128x128xbf16>
      %cst_54 = arith.constant dense<0.000000e+00> : vector<128x128xf32>
      %56 = tpu.matmul %53, %55, %cst_54 {dimension_numbers = #tpu.dot_dimension_numbers<[1], [0], [0], [1], [0, 0, 1, 1], [], []>} : vector<128x128xbf16>, vector<128x128xbf16>, vector<128x128xf32> -> vector<128x128xf32>
      %57 = arith.addf %48, %56 : vector<128x128xf32>
      %c1_i32_55 = arith.constant 1 : i32
      %58 = arith.addi %11, %c1_i32_55 : i32
      %c0_56 = arith.constant 0 : index
      %59 = arith.index_cast %58 : i32 to index
      %c2_57 = arith.constant 2 : index
      %c0_58 = arith.constant 0 : index
      %60 = vector.load %arg1[%c0_56, %59, %c2_57, %c0_58] : memref<1x18x24x128xbf16, #tpu.memory_space<vmem>>, vector<1x8x16x128xbf16>
      %61 = vector.shape_cast %60 : vector<1x8x16x128xbf16> to vector<8x16x128xbf16>
      %62 = vector.shape_cast %61 : vector<8x16x128xbf16> to vector<128x128xbf16>
      %c5 = arith.constant 5 : index
      %c0_59 = arith.constant 0 : index
      %c0_60 = arith.constant 0 : index
      %63 = vector.load %arg2[%c5, %c0_59, %c0_60] : memref<9x128x128xbf16, #tpu.memory_space<vmem>>, vector<1x128x128xbf16>
      %64 = vector.shape_cast %63 : vector<1x128x128xbf16> to vector<128x128xbf16>
      %cst_61 = arith.constant dense<0.000000e+00> : vector<128x128xf32>
      %65 = tpu.matmul %62, %64, %cst_61 {dimension_numbers = #tpu.dot_dimension_numbers<[1], [0], [0], [1], [0, 0, 1, 1], [], []>} : vector<128x128xbf16>, vector<128x128xbf16>, vector<128x128xf32> -> vector<128x128xf32>
      %66 = arith.addf %57, %65 : vector<128x128xf32>
      %c2_i32_62 = arith.constant 2 : i32
      %67 = arith.addi %11, %c2_i32_62 : i32
      %c0_63 = arith.constant 0 : index
      %68 = arith.index_cast %67 : i32 to index
      %c0_64 = arith.constant 0 : index
      %c0_65 = arith.constant 0 : index
      %69 = vector.load %arg1[%c0_63, %68, %c0_64, %c0_65] : memref<1x18x24x128xbf16, #tpu.memory_space<vmem>>, vector<1x8x16x128xbf16>
      %70 = vector.shape_cast %69 : vector<1x8x16x128xbf16> to vector<8x16x128xbf16>
      %71 = vector.shape_cast %70 : vector<8x16x128xbf16> to vector<128x128xbf16>
      %c6 = arith.constant 6 : index
      %c0_66 = arith.constant 0 : index
      %c0_67 = arith.constant 0 : index
      %72 = vector.load %arg2[%c6, %c0_66, %c0_67] : memref<9x128x128xbf16, #tpu.memory_space<vmem>>, vector<1x128x128xbf16>
      %73 = vector.shape_cast %72 : vector<1x128x128xbf16> to vector<128x128xbf16>
      %cst_68 = arith.constant dense<0.000000e+00> : vector<128x128xf32>
      %74 = tpu.matmul %71, %73, %cst_68 {dimension_numbers = #tpu.dot_dimension_numbers<[1], [0], [0], [1], [0, 0, 1, 1], [], []>} : vector<128x128xbf16>, vector<128x128xbf16>, vector<128x128xf32> -> vector<128x128xf32>
      %75 = arith.addf %66, %74 : vector<128x128xf32>
      %c2_i32_69 = arith.constant 2 : i32
      %76 = arith.addi %11, %c2_i32_69 : i32
      %c0_70 = arith.constant 0 : index
      %77 = arith.index_cast %76 : i32 to index
      %c1_71 = arith.constant 1 : index
      %c0_72 = arith.constant 0 : index
      %78 = vector.load %arg1[%c0_70, %77, %c1_71, %c0_72] : memref<1x18x24x128xbf16, #tpu.memory_space<vmem>>, vector<1x8x16x128xbf16>
      %79 = vector.shape_cast %78 : vector<1x8x16x128xbf16> to vector<8x16x128xbf16>
      %80 = vector.shape_cast %79 : vector<8x16x128xbf16> to vector<128x128xbf16>
      %c7 = arith.constant 7 : index
      %c0_73 = arith.constant 0 : index
      %c0_74 = arith.constant 0 : index
      %81 = vector.load %arg2[%c7, %c0_73, %c0_74] : memref<9x128x128xbf16, #tpu.memory_space<vmem>>, vector<1x128x128xbf16>
      %82 = vector.shape_cast %81 : vector<1x128x128xbf16> to vector<128x128xbf16>
      %cst_75 = arith.constant dense<0.000000e+00> : vector<128x128xf32>
      %83 = tpu.matmul %80, %82, %cst_75 {dimension_numbers = #tpu.dot_dimension_numbers<[1], [0], [0], [1], [0, 0, 1, 1], [], []>} : vector<128x128xbf16>, vector<128x128xbf16>, vector<128x128xf32> -> vector<128x128xf32>
      %84 = arith.addf %75, %83 : vector<128x128xf32>
      %c2_i32_76 = arith.constant 2 : i32
      %85 = arith.addi %11, %c2_i32_76 : i32
      %c0_77 = arith.constant 0 : index
      %86 = arith.index_cast %85 : i32 to index
      %c2_78 = arith.constant 2 : index
      %c0_79 = arith.constant 0 : index
      %87 = vector.load %arg1[%c0_77, %86, %c2_78, %c0_79] : memref<1x18x24x128xbf16, #tpu.memory_space<vmem>>, vector<1x8x16x128xbf16>
      %88 = vector.shape_cast %87 : vector<1x8x16x128xbf16> to vector<8x16x128xbf16>
      %89 = vector.shape_cast %88 : vector<8x16x128xbf16> to vector<128x128xbf16>
      %c8 = arith.constant 8 : index
      %c0_80 = arith.constant 0 : index
      %c0_81 = arith.constant 0 : index
      %90 = vector.load %arg2[%c8, %c0_80, %c0_81] : memref<9x128x128xbf16, #tpu.memory_space<vmem>>, vector<1x128x128xbf16>
      %91 = vector.shape_cast %90 : vector<1x128x128xbf16> to vector<128x128xbf16>
      %cst_82 = arith.constant dense<0.000000e+00> : vector<128x128xf32>
      %92 = tpu.matmul %89, %91, %cst_82 {dimension_numbers = #tpu.dot_dimension_numbers<[1], [0], [0], [1], [0, 0, 1, 1], [], []>} : vector<128x128xbf16>, vector<128x128xbf16>, vector<128x128xf32> -> vector<128x128xf32>
      %93 = arith.addf %84, %92 : vector<128x128xf32>
      %c0_83 = arith.constant 0 : index
      %c0_84 = arith.constant 0 : index
      %c0_85 = arith.constant 0 : index
      %94 = vector.load %arg3[%c0_83, %c0_84, %c0_85] : memref<1x1x128xf32, #tpu.memory_space<vmem>>, vector<1x1x128xf32>
      %95 = vector.shape_cast %94 : vector<1x1x128xf32> to vector<1x128xf32>
      %96 = vector.broadcast %95 : vector<1x128xf32> to vector<128x128xf32>
      %97 = arith.addf %93, %96 : vector<128x128xf32>
      %cst_86 = arith.constant 0.000000e+00 : f32
      %98 = vector.broadcast %cst_86 : f32 to vector<128x128xf32>
      %99 = arith.maximumf %97, %98 : vector<128x128xf32>
      %100 = vector.shape_cast %99 : vector<128x128xf32> to vector<8x16x128xf32>
      %101 = arith.truncf %100 : vector<8x16x128xf32> to vector<8x16x128xbf16>
      %c1_i32_87 = arith.constant 1 : i32
      %102 = arith.addi %11, %c1_i32_87 : i32
      %103 = arith.index_cast %102 : i32 to index
      %c1_88 = arith.constant 1 : index
      %c0_89 = arith.constant 0 : index
      %104 = vector.load %arg7[%103, %c1_88, %c0_89] : memref<18x24x128xbf16, #tpu.memory_space<vmem>>, vector<8x16x128xbf16>
      tpu.vector_store %arg7[%103, %c1_88, %c0_89], %101 {strides = array<i32>} : memref<18x24x128xbf16, #tpu.memory_space<vmem>>, vector<8x16x128xbf16>,
    }
    %c2_i32_13 = arith.constant 2 : i32
    %c0_i32_14 = arith.constant 0 : i32
    %c2_i32_15 = arith.constant 2 : i32
    %9 = arith.addi %c0_i32_14, %c2_i32_15 : i32
    %c1_i32_16 = arith.constant 1 : i32
    scf.for %arg8 = %c0_i32_14 to %9 step %c1_i32_16  : i32 {
      %c8_i32 = arith.constant 8 : i32
      %10 = arith.muli %arg8, %c8_i32 : i32
      %11 = tpu.assume_multiple %10, 8 : i32
      %cst_18 = arith.constant 0.000000e+00 : f32
      %12 = vector.broadcast %cst_18 : f32 to vector<128x128xf32>
      %c0_i32_19 = arith.constant 0 : i32
      %13 = arith.addi %11, %c0_i32_19 : i32
      %14 = arith.index_cast %13 : i32 to index
      %c0_20 = arith.constant 0 : index
      %c0_21 = arith.constant 0 : index
      %15 = vector.load %arg7[%14, %c0_20, %c0_21] : memref<18x24x128xbf16, #tpu.memory_space<vmem>>, vector<8x16x128xbf16>
      %16 = vector.shape_cast %15 : vector<8x16x128xbf16> to vector<128x128xbf16>
      %c0_22 = arith.constant 0 : index
      %c0_23 = arith.constant 0 : index
      %c0_24 = arith.constant 0 : index
      %17 = vector.load %arg4[%c0_22, %c0_23, %c0_24] : memref<9x128x128xbf16, #tpu.memory_space<vmem>>, vector<1x128x128xbf16>
      %18 = vector.shape_cast %17 : vector<1x128x128xbf16> to vector<128x128xbf16>
      %cst_25 = arith.constant dense<0.000000e+00> : vector<128x128xf32>
      %19 = tpu.matmul %16, %18, %cst_25 {dimension_numbers = #tpu.dot_dimension_numbers<[1], [0], [0], [1], [0, 0, 1, 1], [], []>} : vector<128x128xbf16>, vector<128x128xbf16>, vector<128x128xf32> -> vector<128x128xf32>
      %20 = arith.addf %12, %19 : vector<128x128xf32>
      %c0_i32_26 = arith.constant 0 : i32
      %21 = arith.addi %11, %c0_i32_26 : i32
      %22 = arith.index_cast %21 : i32 to index
      %c1 = arith.constant 1 : index
      %c0_27 = arith.constant 0 : index
      %23 = vector.load %arg7[%22, %c1, %c0_27] : memref<18x24x128xbf16, #tpu.memory_space<vmem>>, vector<8x16x128xbf16>
      %24 = vector.shape_cast %23 : vector<8x16x128xbf16> to vector<128x128xbf16>
      %c1_28 = arith.constant 1 : index
      %c0_29 = arith.constant 0 : index
      %c0_30 = arith.constant 0 : index
      %25 = vector.load %arg4[%c1_28, %c0_29, %c0_30] : memref<9x128x128xbf16, #tpu.memory_space<vmem>>, vector<1x128x128xbf16>
      %26 = vector.shape_cast %25 : vector<1x128x128xbf16> to vector<128x128xbf16>
      %cst_31 = arith.constant dense<0.000000e+00> : vector<128x128xf32>
      %27 = tpu.matmul %24, %26, %cst_31 {dimension_numbers = #tpu.dot_dimension_numbers<[1], [0], [0], [1], [0, 0, 1, 1], [], []>} : vector<128x128xbf16>, vector<128x128xbf16>, vector<128x128xf32> -> vector<128x128xf32>
      %28 = arith.addf %20, %27 : vector<128x128xf32>
      %c0_i32_32 = arith.constant 0 : i32
      %29 = arith.addi %11, %c0_i32_32 : i32
      %30 = arith.index_cast %29 : i32 to index
      %c2 = arith.constant 2 : index
      %c0_33 = arith.constant 0 : index
      %31 = vector.load %arg7[%30, %c2, %c0_33] : memref<18x24x128xbf16, #tpu.memory_space<vmem>>, vector<8x16x128xbf16>
      %32 = vector.shape_cast %31 : vector<8x16x128xbf16> to vector<128x128xbf16>
      %c2_34 = arith.constant 2 : index
      %c0_35 = arith.constant 0 : index
      %c0_36 = arith.constant 0 : index
      %33 = vector.load %arg4[%c2_34, %c0_35, %c0_36] : memref<9x128x128xbf16, #tpu.memory_space<vmem>>, vector<1x128x128xbf16>
      %34 = vector.shape_cast %33 : vector<1x128x128xbf16> to vector<128x128xbf16>
      %cst_37 = arith.constant dense<0.000000e+00> : vector<128x128xf32>
      %35 = tpu.matmul %32, %34, %cst_37 {dimension_numbers = #tpu.dot_dimension_numbers<[1], [0], [0], [1], [0, 0, 1, 1], [], []>} : vector<128x128xbf16>, vector<128x128xbf16>, vector<128x128xf32> -> vector<128x128xf32>
      %36 = arith.addf %28, %35 : vector<128x128xf32>
      %c1_i32_38 = arith.constant 1 : i32
      %37 = arith.addi %11, %c1_i32_38 : i32
      %38 = arith.index_cast %37 : i32 to index
      %c0_39 = arith.constant 0 : index
      %c0_40 = arith.constant 0 : index
      %39 = vector.load %arg7[%38, %c0_39, %c0_40] : memref<18x24x128xbf16, #tpu.memory_space<vmem>>, vector<8x16x128xbf16>
      %40 = vector.shape_cast %39 : vector<8x16x128xbf16> to vector<128x128xbf16>
      %c3 = arith.constant 3 : index
      %c0_41 = arith.constant 0 : index
      %c0_42 = arith.constant 0 : index
      %41 = vector.load %arg4[%c3, %c0_41, %c0_42] : memref<9x128x128xbf16, #tpu.memory_space<vmem>>, vector<1x128x128xbf16>
      %42 = vector.shape_cast %41 : vector<1x128x128xbf16> to vector<128x128xbf16>
      %cst_43 = arith.constant dense<0.000000e+00> : vector<128x128xf32>
      %43 = tpu.matmul %40, %42, %cst_43 {dimension_numbers = #tpu.dot_dimension_numbers<[1], [0], [0], [1], [0, 0, 1, 1], [], []>} : vector<128x128xbf16>, vector<128x128xbf16>, vector<128x128xf32> -> vector<128x128xf32>
      %44 = arith.addf %36, %43 : vector<128x128xf32>
      %c1_i32_44 = arith.constant 1 : i32
      %45 = arith.addi %11, %c1_i32_44 : i32
      %46 = arith.index_cast %45 : i32 to index
      %c1_45 = arith.constant 1 : index
      %c0_46 = arith.constant 0 : index
      %47 = vector.load %arg7[%46, %c1_45, %c0_46] : memref<18x24x128xbf16, #tpu.memory_space<vmem>>, vector<8x16x128xbf16>
      %48 = vector.shape_cast %47 : vector<8x16x128xbf16> to vector<128x128xbf16>
      %c4 = arith.constant 4 : index
      %c0_47 = arith.constant 0 : index
      %c0_48 = arith.constant 0 : index
      %49 = vector.load %arg4[%c4, %c0_47, %c0_48] : memref<9x128x128xbf16, #tpu.memory_space<vmem>>, vector<1x128x128xbf16>
      %50 = vector.shape_cast %49 : vector<1x128x128xbf16> to vector<128x128xbf16>
      %cst_49 = arith.constant dense<0.000000e+00> : vector<128x128xf32>
      %51 = tpu.matmul %48, %50, %cst_49 {dimension_numbers = #tpu.dot_dimension_numbers<[1], [0], [0], [1], [0, 0, 1, 1], [], []>} : vector<128x128xbf16>, vector<128x128xbf16>, vector<128x128xf32> -> vector<128x128xf32>
      %52 = arith.addf %44, %51 : vector<128x128xf32>
      %c1_i32_50 = arith.constant 1 : i32
      %53 = arith.addi %11, %c1_i32_50 : i32
      %54 = arith.index_cast %53 : i32 to index
      %c2_51 = arith.constant 2 : index
      %c0_52 = arith.constant 0 : index
      %55 = vector.load %arg7[%54, %c2_51, %c0_52] : memref<18x24x128xbf16, #tpu.memory_space<vmem>>, vector<8x16x128xbf16>
      %56 = vector.shape_cast %55 : vector<8x16x128xbf16> to vector<128x128xbf16>
      %c5 = arith.constant 5 : index
      %c0_53 = arith.constant 0 : index
      %c0_54 = arith.constant 0 : index
      %57 = vector.load %arg4[%c5, %c0_53, %c0_54] : memref<9x128x128xbf16, #tpu.memory_space<vmem>>, vector<1x128x128xbf16>
      %58 = vector.shape_cast %57 : vector<1x128x128xbf16> to vector<128x128xbf16>
      %cst_55 = arith.constant dense<0.000000e+00> : vector<128x128xf32>
      %59 = tpu.matmul %56, %58, %cst_55 {dimension_numbers = #tpu.dot_dimension_numbers<[1], [0], [0], [1], [0, 0, 1, 1], [], []>} : vector<128x128xbf16>, vector<128x128xbf16>, vector<128x128xf32> -> vector<128x128xf32>
      %60 = arith.addf %52, %59 : vector<128x128xf32>
      %c2_i32_56 = arith.constant 2 : i32
      %61 = arith.addi %11, %c2_i32_56 : i32
      %62 = arith.index_cast %61 : i32 to index
      %c0_57 = arith.constant 0 : index
      %c0_58 = arith.constant 0 : index
      %63 = vector.load %arg7[%62, %c0_57, %c0_58] : memref<18x24x128xbf16, #tpu.memory_space<vmem>>, vector<8x16x128xbf16>
      %64 = vector.shape_cast %63 : vector<8x16x128xbf16> to vector<128x128xbf16>
      %c6 = arith.constant 6 : index
      %c0_59 = arith.constant 0 : index
      %c0_60 = arith.constant 0 : index
      %65 = vector.load %arg4[%c6, %c0_59, %c0_60] : memref<9x128x128xbf16, #tpu.memory_space<vmem>>, vector<1x128x128xbf16>
      %66 = vector.shape_cast %65 : vector<1x128x128xbf16> to vector<128x128xbf16>
      %cst_61 = arith.constant dense<0.000000e+00> : vector<128x128xf32>
      %67 = tpu.matmul %64, %66, %cst_61 {dimension_numbers = #tpu.dot_dimension_numbers<[1], [0], [0], [1], [0, 0, 1, 1], [], []>} : vector<128x128xbf16>, vector<128x128xbf16>, vector<128x128xf32> -> vector<128x128xf32>
      %68 = arith.addf %60, %67 : vector<128x128xf32>
      %c2_i32_62 = arith.constant 2 : i32
      %69 = arith.addi %11, %c2_i32_62 : i32
      %70 = arith.index_cast %69 : i32 to index
      %c1_63 = arith.constant 1 : index
      %c0_64 = arith.constant 0 : index
      %71 = vector.load %arg7[%70, %c1_63, %c0_64] : memref<18x24x128xbf16, #tpu.memory_space<vmem>>, vector<8x16x128xbf16>
      %72 = vector.shape_cast %71 : vector<8x16x128xbf16> to vector<128x128xbf16>
      %c7 = arith.constant 7 : index
      %c0_65 = arith.constant 0 : index
      %c0_66 = arith.constant 0 : index
      %73 = vector.load %arg4[%c7, %c0_65, %c0_66] : memref<9x128x128xbf16, #tpu.memory_space<vmem>>, vector<1x128x128xbf16>
      %74 = vector.shape_cast %73 : vector<1x128x128xbf16> to vector<128x128xbf16>
      %cst_67 = arith.constant dense<0.000000e+00> : vector<128x128xf32>
      %75 = tpu.matmul %72, %74, %cst_67 {dimension_numbers = #tpu.dot_dimension_numbers<[1], [0], [0], [1], [0, 0, 1, 1], [], []>} : vector<128x128xbf16>, vector<128x128xbf16>, vector<128x128xf32> -> vector<128x128xf32>
      %76 = arith.addf %68, %75 : vector<128x128xf32>
      %c2_i32_68 = arith.constant 2 : i32
      %77 = arith.addi %11, %c2_i32_68 : i32
      %78 = arith.index_cast %77 : i32 to index
      %c2_69 = arith.constant 2 : index
      %c0_70 = arith.constant 0 : index
      %79 = vector.load %arg7[%78, %c2_69, %c0_70] : memref<18x24x128xbf16, #tpu.memory_space<vmem>>, vector<8x16x128xbf16>
      %80 = vector.shape_cast %79 : vector<8x16x128xbf16> to vector<128x128xbf16>
      %c8 = arith.constant 8 : index
      %c0_71 = arith.constant 0 : index
      %c0_72 = arith.constant 0 : index
      %81 = vector.load %arg4[%c8, %c0_71, %c0_72] : memref<9x128x128xbf16, #tpu.memory_space<vmem>>, vector<1x128x128xbf16>
      %82 = vector.shape_cast %81 : vector<1x128x128xbf16> to vector<128x128xbf16>
      %cst_73 = arith.constant dense<0.000000e+00> : vector<128x128xf32>
      %83 = tpu.matmul %80, %82, %cst_73 {dimension_numbers = #tpu.dot_dimension_numbers<[1], [0], [0], [1], [0, 0, 1, 1], [], []>} : vector<128x128xbf16>, vector<128x128xbf16>, vector<128x128xf32> -> vector<128x128xf32>
      %84 = arith.addf %76, %83 : vector<128x128xf32>
      %c1_i32_74 = arith.constant 1 : i32
      %85 = arith.addi %11, %c1_i32_74 : i32
      %c0_75 = arith.constant 0 : index
      %86 = arith.index_cast %85 : i32 to index
      %c1_76 = arith.constant 1 : index
      %c0_77 = arith.constant 0 : index
      %87 = vector.load %arg1[%c0_75, %86, %c1_76, %c0_77] : memref<1x18x24x128xbf16, #tpu.memory_space<vmem>>, vector<1x8x16x128xbf16>
      %88 = vector.shape_cast %87 : vector<1x8x16x128xbf16> to vector<8x16x128xbf16>
      %89 = vector.shape_cast %88 : vector<8x16x128xbf16> to vector<128x128xbf16>
      %c0_78 = arith.constant 0 : index
      %c0_79 = arith.constant 0 : index
      %c0_80 = arith.constant 0 : index
      %90 = vector.load %arg5[%c0_78, %c0_79, %c0_80] : memref<1x1x128xf32, #tpu.memory_space<vmem>>, vector<1x1x128xf32>
      %91 = vector.shape_cast %90 : vector<1x1x128xf32> to vector<1x128xf32>
      %92 = vector.broadcast %91 : vector<1x128xf32> to vector<128x128xf32>
      %93 = arith.addf %84, %92 : vector<128x128xf32>
      %94 = arith.extf %89 : vector<128x128xbf16> to vector<128x128xf32>
      %95 = arith.addf %93, %94 : vector<128x128xf32>
      %cst_81 = arith.constant 0.000000e+00 : f32
      %96 = vector.broadcast %cst_81 : f32 to vector<128x128xf32>
      %97 = arith.maximumf %95, %96 : vector<128x128xf32>
      %98 = vector.shape_cast %97 : vector<128x128xf32> to vector<8x16x128xf32>
      %c0_82 = arith.constant 0 : index
      %99 = arith.index_cast %11 : i32 to index
      %c0_83 = arith.constant 0 : index
      %c0_84 = arith.constant 0 : index
      %100 = vector.load %arg6[%c0_82, %99, %c0_83, %c0_84] : memref<1x16x16x128xf32, #tpu.memory_space<vmem>>, vector<1x8x16x128xf32>
      %101 = vector.shape_cast %100 : vector<1x8x16x128xf32> to vector<8x16x128xf32>
      %102 = vector.shape_cast %98 : vector<8x16x128xf32> to vector<1x8x16x128xf32>
      tpu.vector_store %arg6[%c0_82, %99, %c0_83, %c0_84], %102 {strides = array<i32>} : memref<1x16x16x128xf32, #tpu.memory_space<vmem>>, vector<1x8x16x128xf32>,
    }
    %c2_i32_17 = arith.constant 2 : i32
    return
  }
  func.func @transform_0(%arg0: i32) -> (i32, i32, i32, i32) {
    %c0_i32 = arith.constant 0 : i32
    %c0_i32_0 = arith.constant 0 : i32
    %c0_i32_1 = arith.constant 0 : i32
    %c0_i32_2 = arith.constant 0 : i32
    return %arg0, %c0_i32, %c0_i32_0, %c0_i32_1 : i32, i32, i32, i32
  }
  func.func @transform_1(%arg0: i32) -> (i32, i32, i32) {
    %c0_i32 = arith.constant 0 : i32
    %c0_i32_0 = arith.constant 0 : i32
    %c0_i32_1 = arith.constant 0 : i32
    %c0_i32_2 = arith.constant 0 : i32
    return %c0_i32, %c0_i32_0, %c0_i32_1 : i32, i32, i32
  }
  func.func @transform_2(%arg0: i32) -> (i32, i32, i32) {
    %c0_i32 = arith.constant 0 : i32
    %c0_i32_0 = arith.constant 0 : i32
    %c0_i32_1 = arith.constant 0 : i32
    %c0_i32_2 = arith.constant 0 : i32
    return %c0_i32, %c0_i32_0, %c0_i32_1 : i32, i32, i32
  }
  func.func @transform_3(%arg0: i32) -> (i32, i32, i32) {
    %c0_i32 = arith.constant 0 : i32
    %c0_i32_0 = arith.constant 0 : i32
    %c0_i32_1 = arith.constant 0 : i32
    %c0_i32_2 = arith.constant 0 : i32
    return %c0_i32, %c0_i32_0, %c0_i32_1 : i32, i32, i32
  }
  func.func @transform_4(%arg0: i32) -> (i32, i32, i32) {
    %c0_i32 = arith.constant 0 : i32
    %c0_i32_0 = arith.constant 0 : i32
    %c0_i32_1 = arith.constant 0 : i32
    %c0_i32_2 = arith.constant 0 : i32
    return %c0_i32, %c0_i32_0, %c0_i32_1 : i32, i32, i32
  }
  func.func @transform_5(%arg0: i32) -> (i32, i32, i32, i32) {
    %c0_i32 = arith.constant 0 : i32
    %c0_i32_0 = arith.constant 0 : i32
    %c0_i32_1 = arith.constant 0 : i32
    %c0_i32_2 = arith.constant 0 : i32
    return %arg0, %c0_i32, %c0_i32_0, %c0_i32_1 : i32, i32, i32, i32
  }
}

</mosaic_0001>

<bundles_post_ra>
// kernel: tpu_custom_call.1
= control target key start
LH: loop header
LB: loop body
LE: loop exit
PB: predicated region body
PF: predicated region fallthrough
CT: control target
= control target key end

     0   :  { %10 = vsyncpa [#allocation4], 0  ;;  %s11457_s0 = inlined_call_operand.hbm [shape: bf16[2,18,24,128], index: 0, kind: input, shape index: {}]   ;;  %s11458_s1 = inlined_call_operand.hbm [shape: bf16[9,128,128], index: 1, kind: input, shape index: {}]   ;;  %s11459_s2 = inlined_call_operand.vmem [shape: f32[1,1,128], index: 2, kind: input, shape index: {}]   ;;  %s11460_s3 = inlined_call_operand.hbm [shape: bf16[9,128,128], index: 3, kind: input, shape index: {}]   ;;  %s11461_s4 = inlined_call_operand.vmem [shape: f32[1,1,128], index: 4, kind: input, shape index: {}]   ;;  %s11462_s5 = inlined_call_operand.hbm [shape: f32[2,16,16,128], index: 5, kind: output, shape index: {}]  }
   0x1   :  { %12 = vsyncpa [#allocation4 + $0x1], 0 }
   0x2   :  { %13 = vsyncpa [#allocation7], 0 }
   0x3   :  { %14 = vsyncpa [#allocation5], 0 }
   0x4   :  { %16 = vsyncpa [#allocation5 + $0x1], 0  ;;  %s9221_s18 = smov 0   ;;  %s9223_s19 = smov 0  }
   0x5   :  { %s9225_s20 = smov 0   ;;  %s9227_s21 = smov 0  }
   0x6 LB: > { %s9242_s22 = sadd.s32 4294967295, %s9172_s21   ;;  %s6901_s23 = sadd.s32 4294967294, %s9172_s21   ;;  %s9172_s21 = sphi %s9227_s21, %s11528_s21   ;;  %s9168_s20 = sphi %s9225_s20, %s11527_s20   ;;  %s9164_s19 = sphi %s9223_s19, %s11526_s19   ;;  %s9160_s18 = sphi %s9221_s18, %s11525_s18  }
   0x7   : > { %p42_p0 = scmp.ne.s32.totalorder %s9164_s19, %s9160_s18  ;;  %p11463_p1 = scmp.eq.s32.totalorder %s9242_s22, 0 }
   0x8   : > { %p156_p3 = scmp.eq.s32.totalorder %s6901_s23, 1  ;;  %p6902_p5 = scmp.ge.s32.totalorder %s9172_s21, 1 }
   0x9   : > { %p9251_p4 = por %p11463_p1, %p42_p0  ;;  %p163_p7 = scmp.lt.s32.totalorder %s9172_s21, 3 }
   0xa   : > { %p9256_p6 = por %p156_p3, %p42_p0  ;;  %s9182_s27 = smov [#allocation6]  }
   0xb   : > { %s11476_s24 = scalar_select %p9251_p4, 1, 0 }
   0xc   : > { %s11477_s25 = scalar_select %p9256_p6, 1, 0 }
   0xd   : > { %p9261_p8 = pnand %p6902_p5, %p163_p7  ;;  %s175_s28 = sshll.u32 %s9182_s27, 4  ;;  %s9265_s28 = int_to_ptr.vmem [resolvable:$true] %s175_s28 }
   0xe   : > { %s9183_s30 = smov [#allocation8]   ;;  %s9008_s9 = scalar_lea.hbm %s11458_s1, 9216 }
   0xf   : > { %p8732_p9 = pneg %p9261_p8  ;;  %s191_s6 = sshll.u32 %s9183_s30, 4  ;;  %s9276_s6 = int_to_ptr.vmem [resolvable:$true] %s191_s6 }
  0x10   : > { %p9009_p12 = scmp.ne.s32.totalorder %s11458_s1, %s9008_s9  ;;  %p9015_p5 = scmp.lt.u32.totalorder %s9008_s9, %s11458_s1 }
  0x11   : > { %p9272_p11 = pnand %p8732_p9, %p11463_p1 }
  0x13   : > { %p9010_p13 = pneg %p9272_p11 }
  0x15   : > { %p9011_p0 = pnand %p9010_p13, %p9009_p12 }
  0x17   : > { %p9012_p3 = pneg %p9011_p0 }
  0x19   : > { %p9017_p7 = pnand %p9015_p5, %p9012_p3 }
  0x1b   : > { %9020 = shalt.err (!%p9017_p7)
}
  0x1c   : > { %s9021_s14 = scalar_lea.vmem %s9265_s28, 9216  ;;  %p9029_p2 = scmp.lt.s32.totalorder %s9265_s28, %s9265_s28 }
  0x1d   : > { %p9022_p9 = scmp.ne.s32.totalorder %s9265_s28, %s9021_s14  ;;  %p9030_p12 = scmp.lt.s32.totalorder %s9021_s14, %s9021_s14 }
  0x1f   : > { %p9024_p10 = pnand %p9022_p9, %p9010_p13  ;;  %p9031_p0 = por %p9030_p12, %p9029_p2 }
  0x21   : > { %p9025_p1 = pneg %p9024_p10 }
  0x23   : > { %p9032_p6 = pnand %p9031_p0, %p9025_p1 }
  0x25   : > { %9035 = shalt.err (!%p9032_p6)
}
  0x26   : > { %s11464_s15 = smov 64   ;;  %s9185_s16 = smov 4  }
  0x27   : > { %8735 = dma.hbm_to_vmem [thread:$0]  (!%p9272_p11), %s11458_s1, 9216, %s9265_s28, [#allocation7], %s11464_s15, %s11464_s15, %s9185_s16  }
  0x28   : > { %s9036_s7 = scalar_lea.hbm %s11460_s3, 9216 }
  0x29   : > { %p9037_p1 = scmp.ne.s32.totalorder %s11460_s3, %s9036_s7  ;;  %p9043_p10 = scmp.lt.u32.totalorder %s9036_s7, %s11460_s3 }
  0x2b   : > { %p9039_p2 = pnand %p9037_p1, %p9010_p13 }
  0x2d   : > { %p9040_p6 = pneg %p9039_p2 }
  0x2f   : > { %p9045_p3 = pnand %p9043_p10, %p9040_p6 }
  0x31   : > { %9048 = shalt.err (!%p9045_p3)
}
  0x32   : > { %s9049_s28 = scalar_lea.vmem %s9276_s6, 9216  ;;  %p9057_p12 = scmp.lt.s32.totalorder %s9276_s6, %s9276_s6 }
  0x33   : > { %p9050_p5 = scmp.ne.s32.totalorder %s9276_s6, %s9049_s28  ;;  %p9058_p0 = scmp.lt.s32.totalorder %s9049_s28, %s9049_s28 }
  0x35   : > { %p9052_p7 = pnand %p9050_p5, %p9010_p13  ;;  %p9059_p1 = por %p9058_p0, %p9057_p12 }
  0x37   : > { %p9053_p9 = pneg %p9052_p7 }
  0x39   : > { %p9060_p2 = pnand %p9059_p1, %p9053_p9 }
  0x3b   : > { %9063 = shalt.err (!%p9060_p2)
}
  0x3c   : > { %8738 = dma.hbm_to_vmem [thread:$0]  (!%p9272_p11), %s11460_s3, 9216, %s9276_s6, [#allocation7], %s11464_s15, %s11464_s15, %s9185_s16  }
  0x3d   : > { %s9337_s29 = sadd.s32 1, %s9172_s21   ;;  %s29_s14 = sadd.s32 1, %s9168_s20 }
  0x3e   : > { %s26_s17 = ssub.s32 %s9172_s21, %s9337_s29  ;;  %p36_p13 = scmp.ne.s32.totalorder %s9168_s20, %s9164_s19 }
  0x3f   : > { %p27_p6 = scmp.eq.s32.totalorder %s26_s17, 0  ;;  %p37_p10 = scmp.eq.s32.totalorder %s9172_s21, 0 }
  0x40   : > { %p11480_p3 = scmp.eq.s32.totalorder %s9242_s22, 1  ;;  %p8749_p7 = scmp.lt.s32.totalorder %s9172_s21, 2 }
  0x41   : > { %s9353_s27 = scalar_select %p27_p6, %s9168_s20, %s29_s14  }
  0x42   : > { %p9347_p5 = por %p11480_p3, %p36_p13  ;;  %p38_p9 = por %p37_p10, %p36_p13 }
  0x43   : > { %s208_s30 = sand.u32 1, %s9168_s20   ;;  %s8718_s6 = smul.u32 3456, %s9172_s21 }
  0x44   : > { %s11481_s23 = scalar_select %p9347_p5, 1, 0 }
  0x45   : > { %s8717_s7 = smul.u32 216, %s208_s30  ;;  %p9357_p11 = pnand %p8749_p7, %p38_p9 }
  0x46   : > { %s9364_s11 = scalar_lea.hbm %s11457_s0, %s8718_s6  ;;  %s9368_s13 = scalar_lea.sflag [#allocation4], %s208_s30 }
  0x47   : > { %s212_s28 = scalar_lea.vmem [#allocation3], %s8717_s7  ;;  %s9064_s14 = scalar_lea.hbm %s9364_s11, 3456 }
  0x48   : > { %s219_s12 = sshll.u32 %s212_s28, 4  ;;  %p9065_p12 = scmp.ne.s32.totalorder %s9364_s11, %s9064_s14  ;;  %s9366_s12 = int_to_ptr.vmem [resolvable:$true] %s219_s12 }
  0x49   : > { %p9066_p0 = pneg %p9357_p11  ;;  %s9069_s9 = scalar_lea.hbm %s11457_s0, 6912 }
  0x4a   : > { %p9070_p13 = scmp.lt.u32.totalorder %s9364_s11, %s11457_s0  ;;  %p9071_p6 = scmp.lt.u32.totalorder %s9069_s9, %s9064_s14 }
  0x4b   : > { %p9067_p1 = pnand %p9066_p0, %p9065_p12  ;;  %p9073_p3 = scmp.lt.u32.totalorder %s9064_s14, %s9364_s11 }
  0x4c   : > { %p9072_p10 = por %p9071_p6, %p9070_p13 }
  0x4d   : > { %p9068_p2 = pneg %p9067_p1 }
  0x4e   : > { %p9074_p7 = por %p9073_p3, %p9072_p10 }
  0x50   : > { %p9075_p9 = pnand %p9074_p7, %p9068_p2 }
  0x52   : > { %9078 = shalt.err (!%p9075_p9)
}
  0x53   : > { %s9079_s30 = scalar_lea.vmem %s9366_s12, 3456  ;;  %s9186_s7 = smov [#allocation3]  }
  0x54   : > { %p9080_p12 = scmp.ne.s32.totalorder %s9366_s12, %s9079_s30  ;;  %s9084_s28 = sshll.u32 %s9186_s7, 4  ;;  %s9085_s28 = int_to_ptr.vmem [resolvable:$false] %s9084_s28 }
  0x55   : > { %s9086_s15 = scalar_lea.vmem %s9085_s28, 6912  ;;  %p9087_p4 = scmp.lt.s32.totalorder %s9366_s12, %s9085_s28 }
  0x56   : > { %p9082_p1 = pnand %p9080_p12, %p9066_p0  ;;  %p9088_p13 = scmp.lt.s32.totalorder %s9086_s15, %s9079_s30 }
  0x58   : > { %p9083_p5 = pneg %p9082_p1  ;;  %p9089_p6 = por %p9088_p13, %p9087_p4 }
  0x5a   : > { %p9090_p10 = pnand %p9089_p6, %p9083_p5 }
  0x5c   : > { %9093 = shalt.err (!%p9090_p10)
}
  0x5d   : > { %s11483_s14 = smov 64   ;;  %231 = sbr.rel (%p9261_p8) target bundleno = 1027 (0x403), region = 40 }
  0x5e   : > { %8742 = dma.hbm_to_vmem [thread:$0]  (!%p9357_p11), %s9364_s11, 3456, %s9366_s12, %s9368_s13, %s11483_s14, %s11483_s14, %s9185_s16  }
  0x64   : > { %s9402_s17 = sand.u32 1, %s9164_s19   ;;  %p11484_p4 = scmp.ne.s32.totalorder %s11476_s24, 0 }
  0x65   : > { %s8719_s6 = smul.u32 216, %s9402_s17  ;;  %s234_s9 = scalar_lea.sflag [#allocation4], %s9402_s17 }
  0x67   : > { %s9406_s10 = scalar_lea.vmem [#allocation3], %s8719_s6 }
  0x68   : > { %9147 = dma.done.wait (%p11484_p4), %s234_s9, 3456  }
  0x69   : > { %9149 = vsyncadd (%p11484_p4), %s234_s9, 4294963840  ;;  %p11485_p5 = scmp.eq.s32.totalorder %s9242_s22, 0 }
  0x6b   : > { %9151 = dma.done.wait (%p11485_p5), [#allocation7], 18432   ;;  %p11486_p8 = pmov %p11485_p5 }
  0x6c   : > { %s6910_s26 = sshll.u32 %s9402_s17, 8  ;;  %v9187_v0 = vmov 0   ;;  %vm280_vm0 = vcmask 1040384   ;;  %vm281_vm1 = vsmask.f32 256  ;;  %v11487_v1 = vmov 0 }
  0x6d   : > { %9153 = vsyncadd (%p11486_p8), [#allocation7], 4294948864  ;;  %273 = vst [vmem:[#allocation2] sm:$0xf] %v9187_v0  ;;  %vm337_vm3 = vsmask.f32 7938 }
  0x6e   : > { %274 = vst [vmem:[#allocation2 + $0x4] sm:$0xf] %v9187_v0  ;;  %275 = vst [vmem:[#allocation2 + $0x8] sm:$0xf] %v9187_v0  ;;  %v286_v2 = vld [vmem:[#allocation2 + $0xc] sm:$0x1] }
  0x6f   : > { %277 = vst [vmem:[#allocation2 + $0xcc] sm:$0xf] %v9187_v0  ;;  %278 = vst [vmem:[#allocation2 + $0xd0] sm:$0xf] %v9187_v0  ;;  %v289_v3 = vld [vmem:[#allocation2 + $0x18] sm:$0x1] }
  0x70   : > { %279 = vst [vmem:[#allocation2 + $0xd4] sm:$0xf] %v9187_v0  ;;  %vm9419_vm2 = vmand %vm280_vm0, %vm281_vm1  ;;  %v292_v4 = vld [vmem:[#allocation2 + $0x24] sm:$0x1]  ;;  %v295_v10 = vld [vmem:[#allocation2 + $0x30] sm:$0x1] }
  0x71   : > { %v11488_v1 = vsel %vm9419_vm2, 4294967295, %v11487_v1  ;;  %v287_v6 = vsel %vm9419_vm2, 0, %v286_v2  ;;  %v290_v7 = vsel %vm9419_vm2, 0, %v289_v3  ;;  %v293_v8 = vsel %vm9419_vm2, 0, %v292_v4  ;;  %v298_v11 = vld [vmem:[#allocation2 + $0x3c] sm:$0x1]  ;;  %vm9453_vm4 = vmand %vm280_vm0, %vm337_vm3 }
  0x72   : > { %11489 = vst [vmem:[#allocation13_spill] sm:$0xff] %v11488_v1  ;;  %288 = vst [vmem:[#allocation2 + $0xc] sm:$0x1] %v287_v6  ;;  %v296_v12 = vsel %vm9419_vm2, 0, %v295_v10  ;;  %v299_v13 = vsel %vm9419_vm2, 0, %v298_v11  ;;  %s9503_s24 = scalar_lea.vmem [#allocation9], %s6910_s26 }
  0x73   : > { %291 = vst [vmem:[#allocation2 + $0x18] sm:$0x1] %v290_v7  ;;  %294 = vst [vmem:[#allocation2 + $0x24] sm:$0x1] %v293_v8  ;;  %v301_v14 = vld [vmem:[#allocation2 + $0x48] sm:$0x1] }
  0x74   : > { %v283_v5 = vld [vmem:[#allocation2] sm:$0x1]  ;;  %v304_v15 = vld [vmem:[#allocation2 + $0x54] sm:$0x1]  ;;  %297 = vst [vmem:[#allocation2 + $0x30] sm:$0x1] %v296_v12 }
  0x75   : > { %v284_v9 = vsel %vm9419_vm2, 0, %v283_v5  ;;  %300 = vst [vmem:[#allocation2 + $0x3c] sm:$0x1] %v299_v13  ;;  %v302_v16 = vsel %vm9419_vm2, 0, %v301_v14  ;;  %v305_v17 = vsel %vm9419_vm2, 0, %v304_v15  ;;  %s9505_s16 = smov 0  }
  0x76   : > { %285 = vst [vmem:[#allocation2] sm:$0x1] %v284_v9  ;;  %v307_v18 = vld [vmem:[#allocation2 + $0x60] sm:$0x1]  ;;  %v310_v19 = vld [vmem:[#allocation2 + $0x6c] sm:$0x1] }
  0x77   : > { %303 = vst [vmem:[#allocation2 + $0x48] sm:$0x1] %v302_v16  ;;  %306 = vst [vmem:[#allocation2 + $0x54] sm:$0x1] %v305_v17  ;;  %v308_v20 = vsel %vm9419_vm2, 0, %v307_v18  ;;  %v311_v21 = vsel %vm9419_vm2, 0, %v310_v19 }
  0x78   : > { %v313_v22 = vld [vmem:[#allocation2 + $0x78] sm:$0x1]  ;;  %v316_v23 = vld [vmem:[#allocation2 + $0x84] sm:$0x1]  ;;  %309 = vst [vmem:[#allocation2 + $0x60] sm:$0x1] %v308_v20 }
  0x79   : > { %312 = vst [vmem:[#allocation2 + $0x6c] sm:$0x1] %v311_v21  ;;  %v314_v24 = vsel %vm9419_vm2, 0, %v313_v22  ;;  %v317_v25 = vsel %vm9419_vm2, 0, %v316_v23  ;;  %v319_v26 = vld [vmem:[#allocation2 + $0x90] sm:$0x1] }
  0x7a   : > { %v322_v27 = vld [vmem:[#allocation2 + $0x9c] sm:$0x1]  ;;  %315 = vst [vmem:[#allocation2 + $0x78] sm:$0x1] %v314_v24  ;;  %318 = vst [vmem:[#allocation2 + $0x84] sm:$0x1] %v317_v25 }
  0x7b   : > { %v320_v28 = vsel %vm9419_vm2, 0, %v319_v26  ;;  %v323_v29 = vsel %vm9419_vm2, 0, %v322_v27  ;;  %v325_v30 = vld [vmem:[#allocation2 + $0xa8] sm:$0x1]  ;;  %v328_v31 = vld [vmem:[#allocation2 + $0xb4] sm:$0x1] }
  0x7c   : > { %321 = vst [vmem:[#allocation2 + $0x90] sm:$0x1] %v320_v28  ;;  %324 = vst [vmem:[#allocation2 + $0x9c] sm:$0x1] %v323_v29  ;;  %v326_v33 = vsel %vm9419_vm2, 0, %v325_v30  ;;  %v329_v34 = vsel %vm9419_vm2, 0, %v328_v31 }
  0x7d   : > { %v331_v35 = vld [vmem:[#allocation2 + $0xc0] sm:$0x1]  ;;  %v334_v36 = vld [vmem:[#allocation2 + $0xcc] sm:$0x1]  ;;  %327 = vst [vmem:[#allocation2 + $0xa8] sm:$0x1] %v326_v33 }
  0x7e   : > { %330 = vst [vmem:[#allocation2 + $0xb4] sm:$0x1] %v329_v34  ;;  %v332_v37 = vsel %vm9419_vm2, 0, %v331_v35  ;;  %v335_v38 = vsel %vm9419_vm2, 0, %v334_v36  ;;  %v339_v39 = vld [vmem:[#allocation2 + $0x8] sm:$0x1] }
  0x7f   : > { %v342_v40 = vld [vmem:[#allocation2 + $0x14] sm:$0x1]  ;;  %333 = vst [vmem:[#allocation2 + $0xc0] sm:$0x1] %v332_v37  ;;  %336 = vst [vmem:[#allocation2 + $0xcc] sm:$0x1] %v335_v38 }
  0x80   : > { %v340_v41 = vsel %vm9453_vm4, 0, %v339_v39  ;;  %v343_v42 = vsel %vm9453_vm4, 0, %v342_v40  ;;  %v345_v43 = vld [vmem:[#allocation2 + $0x20] sm:$0x1]  ;;  %v348_v44 = vld [vmem:[#allocation2 + $0x2c] sm:$0x1] }
  0x81   : > { %341 = vst [vmem:[#allocation2 + $0x8] sm:$0x1] %v340_v41  ;;  %344 = vst [vmem:[#allocation2 + $0x14] sm:$0x1] %v343_v42  ;;  %v346_v45 = vsel %vm9453_vm4, 0, %v345_v43  ;;  %v349_v46 = vsel %vm9453_vm4, 0, %v348_v44 }
  0x82   : > { %v351_v47 = vld [vmem:[#allocation2 + $0x38] sm:$0x1]  ;;  %v354_v48 = vld [vmem:[#allocation2 + $0x44] sm:$0x1]  ;;  %347 = vst [vmem:[#allocation2 + $0x20] sm:$0x1] %v346_v45 }
  0x83   : > { %350 = vst [vmem:[#allocation2 + $0x2c] sm:$0x1] %v349_v46  ;;  %v352_v49 = vsel %vm9453_vm4, 0, %v351_v47  ;;  %v355_v50 = vsel %vm9453_vm4, 0, %v354_v48  ;;  %v357_v51 = vld [vmem:[#allocation2 + $0x50] sm:$0x1] }
  0x84   : > { %v360_v52 = vld [vmem:[#allocation2 + $0x5c] sm:$0x1]  ;;  %353 = vst [vmem:[#allocation2 + $0x38] sm:$0x1] %v352_v49  ;;  %356 = vst [vmem:[#allocation2 + $0x44] sm:$0x1] %v355_v50 }
  0x85   : > { %v358_v53 = vsel %vm9453_vm4, 0, %v357_v51  ;;  %v361_v54 = vsel %vm9453_vm4, 0, %v360_v52  ;;  %v363_v55 = vld [vmem:[#allocation2 + $0x68] sm:$0x1]  ;;  %v366_v56 = vld [vmem:[#allocation2 + $0x74] sm:$0x1] }
  0x86   : > { %359 = vst [vmem:[#allocation2 + $0x50] sm:$0x1] %v358_v53  ;;  %362 = vst [vmem:[#allocation2 + $0x5c] sm:$0x1] %v361_v54  ;;  %v364_v57 = vsel %vm9453_vm4, 0, %v363_v55  ;;  %v367_v58 = vsel %vm9453_vm4, 0, %v366_v56 }
  0x87   : > { %v369_v59 = vld [vmem:[#allocation2 + $0x80] sm:$0x1]  ;;  %v372_v60 = vld [vmem:[#allocation2 + $0x8c] sm:$0x1]  ;;  %365 = vst [vmem:[#allocation2 + $0x68] sm:$0x1] %v364_v57 }
  0x88   : > { %368 = vst [vmem:[#allocation2 + $0x74] sm:$0x1] %v367_v58  ;;  %v370_v61 = vsel %vm9453_vm4, 0, %v369_v59  ;;  %v373_v62 = vsel %vm9453_vm4, 0, %v372_v60  ;;  %v375_v63 = vld [vmem:[#allocation2 + $0x98] sm:$0x1] }
  0x89   : > { %v378_v0 = vld [vmem:[#allocation2 + $0xa4] sm:$0x1]  ;;  %371 = vst [vmem:[#allocation2 + $0x80] sm:$0x1] %v370_v61  ;;  %374 = vst [vmem:[#allocation2 + $0x8c] sm:$0x1] %v373_v62 }
  0x8a   : > { %v376_v2 = vsel %vm9453_vm4, 0, %v375_v63  ;;  %v379_v3 = vsel %vm9453_vm4, 0, %v378_v0  ;;  %v381_v4 = vld [vmem:[#allocation2 + $0xb0] sm:$0x1]  ;;  %v384_v5 = vld [vmem:[#allocation2 + $0xbc] sm:$0x1] }
  0x8b   : > { %377 = vst [vmem:[#allocation2 + $0x98] sm:$0x1] %v376_v2  ;;  %380 = vst [vmem:[#allocation2 + $0xa4] sm:$0x1] %v379_v3  ;;  %v382_v6 = vsel %vm9453_vm4, 0, %v381_v4  ;;  %v385_v7 = vsel %vm9453_vm4, 0, %v384_v5 }
  0x8c   : > { %v387_v8 = vld [vmem:[#allocation2 + $0xc8] sm:$0x1]  ;;  %v390_v9 = vld [vmem:[#allocation2 + $0xd4] sm:$0x1]  ;;  %383 = vst [vmem:[#allocation2 + $0xb0] sm:$0x1] %v382_v6 }
  0x8d   : > { %386 = vst [vmem:[#allocation2 + $0xbc] sm:$0x1] %v385_v7  ;;  %v388_v10 = vsel %vm9453_vm4, 0, %v387_v8  ;;  %v391_v11 = vsel %vm9453_vm4, 0, %v390_v9 }
  0x8e   : > { %389 = vst [vmem:[#allocation2 + $0xc8] sm:$0x1] %v388_v10  ;;  %392 = vst [vmem:[#allocation2 + $0xd4] sm:$0x1] %v391_v11 }
  0x8f LB: >> { %v8808_v12 = vld [vmem:[#allocation6 + $0x40] sm:$0xff]   ;;  %v8810_v14 = vld [vmem:[#allocation6 + $0x48] sm:$0xff]   ;;  %v8812_v16 = vld [vmem:[#allocation6 + $0x50] sm:$0xff]   ;;  %s7545_s8 = smul.u32 96, %s9176_s16  ;;  %vm443_vm5 = vsmask.f32 3328  ;;  %s9176_s16 = sphi %s9505_s16, %s398_s16  }
  0x90   : >> { %v8809_v13 = vld [vmem:[#allocation6 + $0x100] sm:$0xff]   ;;  %7853 = vmatprep.subr.bf16.mxu1 %v8808_v12  ;;  %v8811_v15 = vld [vmem:[#allocation6 + $0x108] sm:$0xff]   ;;  %v8813_v17 = vld [vmem:[#allocation6 + $0x110] sm:$0xff]   ;;  %vm444_vm6 = vsmask.f32 7440  ;;  %vm1049_vm8 = vcmask 1042432  }
  0x91   : >> { %7981 = vmatprep.subr.bf16.mxu0 %v8809_v13  ;;  %7854 = vmatpush3.bf16.msra.mxu1 %v8808_v12  ;;  %v8814_v18 = vld [vmem:[#allocation6 + $0x58] sm:$0xff]   ;;  %v8816_v20 = vld [vmem:[#allocation6 + $0x60] sm:$0xff]   ;;  %s9514_s11 = scalar_lea.vmem %s9406_s10, %s7545_s8 [#allocation3]  ;;  %v8818_v22 = vld [vmem:[#allocation6 + $0x68] sm:$0xff]   ;;  %vm1050_vm9 = vcmask 1046532   ;;  %vm3509_vm11 = vcmask 1043456   ;;  %s10333_s30 = scalar_lea.vmem [#allocation2], %s7545_s8 }
  0x92   : >> { %7982 = vmatpush3.bf16.msra.mxu0 %v8809_v13  ;;  %7855 = vmatprep.subr.bf16.mxu1 %v8810_v14  ;;  %v8815_v19 = vld [vmem:[#allocation6 + $0x118] sm:$0xff]   ;;  %v8817_v21 = vld [vmem:[#allocation6 + $0x120] sm:$0xff]   ;;  %v8819_v23 = vld [vmem:[#allocation6 + $0x128] sm:$0xff]   ;;  %vm3345_vm12 = vsmask.f32 4368  ;;  %s398_s16 = sadd.s32 1, %s9176_s16  }
  0x93   : >> { %7983 = vmatprep.subr.bf16.mxu0 %v8811_v15  ;;  %v9517_v24 = vld [vmem:[%s9514_s11] sm:$0xf]  ;;  %v9520_v25 = vld [vmem:[%s9514_s11 + $0x4] sm:$0xf]  ;;  %v9523_v26 = vld [vmem:[%s9514_s11 + $0x8] sm:$0x1] }
  0x94   : >> { %v447_v27 = vshrl.u32 %v9517_v24, 16  ;;  %v450_v28 = vshll.u32 %v9517_v24, 16  ;;  %v456_v29 = vshll.u32 %v9520_v25, 16  ;;  %v460_v30 = vshrl.u32 %v9520_v25, 16  ;;  %v7004_v32 = vld [vmem:[%s9514_s11 + $0xc] sm:$0xf]  ;;  %vm9544_vm7 = vmor %vm443_vm5, %vm444_vm6 }
  0x95   : >> { %7856 = vmatpush3.bf16.msra.mxu1 %v8810_v14  ;;  %v466_v31 = vshll.u32 %v9523_v26, 16  ;;  %v9532_v35 = vld [vmem:[%s9514_s11 + $0x10] sm:$0xf]  ;;  %v9535_v36 = vld [vmem:[%s9514_s11 + $0x14] sm:$0x1]  ;;  %v8820_v37 = vld [vmem:[#allocation6 + $0x70] sm:$0xff]  }
  0x96   : >> { %7984 = vmatpush3.bf16.msra.mxu0 %v8811_v15  ;;  %7857 = vmatprep.subr.bf16.mxu1 %v8812_v16  ;;  %v449_v33 = vrot.slane %v447_v27, 4  ;;  %v452_v34 = vrot.slane %v450_v28, 5  ;;  %v458_v38 = vrot.slane %v456_v29, 5  ;;  %v462_v39 = vrot.slane %v460_v30, 4  ;;  %v8821_v41 = vld [vmem:[#allocation6 + $0x130] sm:$0xff]   ;;  %v8822_v47 = vld [vmem:[#allocation6 + $0x78] sm:$0xff]   ;;  %vm9784_vm10 = vmor %vm1049_vm8, %vm1050_vm9 }
  0x97   : >> { %7985 = vmatprep.subr.bf16.mxu0 %v8813_v17  ;;  %v1589_v40 = vshrl.u32 %v7004_v32, 16  ;;  %v1592_v43 = vshll.u32 %v7004_v32, 16  ;;  %v1598_v44 = vshll.u32 %v9532_v35, 16  ;;  %v1602_v45 = vshrl.u32 %v9532_v35, 16  ;;  %v9540_v46 = vld [vmem:[%s9514_s11 + $0xc] sm:$0xf]  ;;  %vm10327_vm13 = vmand %vm3509_vm11, %vm337_vm3 }
  0x98   : >> { %v453_v42 = vor.u32 %v452_v34, %v449_v33  ;;  %v463_v49 = vor.u32 %v462_v39, %v458_v38  ;;  %v468_v50 = vrot.slane %v466_v31, 5  ;;  %v1608_v52 = vshll.u32 %v9535_v36, 16  ;;  %v9550_v53 = vld [vmem:[%s9514_s11 + $0x10] sm:$0xf]  ;;  %v8823_v62 = vld [vmem:[#allocation6 + $0x138] sm:$0xff]   ;;  %v8824_v15 = vld [vmem:[#allocation6] sm:$0xff]  }
  0x99   : >> { %7858 = vmatpush3.bf16.msra.mxu1 %v8812_v16  ;;  %v1591_v51 = vrot.slane %v1589_v40, 4  ;;  %v1594_v55 = vrot.slane %v1592_v43, 5  ;;  %v1600_v56 = vrot.slane %v1598_v44, 5  ;;  %v1604_v57 = vrot.slane %v1602_v45, 4  ;;  %v9557_v3 = vld [vmem:[%s9514_s11 + $0x14] sm:$0x1]  ;;  %vm10346_vm14 = vmor %vm281_vm1, %vm3345_vm12 }
  0x9a   : >> { %7986 = vmatpush3.bf16.msra.mxu0 %v8813_v17  ;;  %7859 = vmatprep.subr.bf16.mxu1 %v8814_v18  ;;  %v454_v54 = vrot.slane %v453_v42, 4  ;;  %v464_v58 = vrot.slane %v463_v49, 4  ;;  %v1610_v59 = vrot.slane %v1608_v52, 5  ;;  %v471_v60 = vshrl.u32 %v9540_v46, 16  ;;  %v7007_v5 = vld [vmem:[%s9514_s11 + $0x18] sm:$0xf] }
  0x9b   : >> { %7987 = vmatprep.subr.bf16.mxu0 %v8815_v19  ;;  %v474_v61 = vshll.u32 %v9540_v46, 16  ;;  %v1595_v0 = vor.u32 %v1594_v55, %v1591_v51  ;;  %v1605_v2 = vor.u32 %v1604_v57, %v1600_v56  ;;  %v480_v4 = vshll.u32 %v9550_v53, 16  ;;  %v9565_v10 = vld [vmem:[%s9514_s11 + $0x1c] sm:$0xf]  ;;  %v9567_v16 = vld [vmem:[#allocation6 + $0x140] sm:$0xff]   ;;  %p395_p11 = scmp.ge.s32.totalorder %s398_s16, 2  }
  0x9c   : >> { %v459_v63 = vsel %vm9544_vm7, %v454_v54, %v458_v38  ;;  %v469_v6 = vsel %vm9544_vm7, %v464_v58, %v468_v50  ;;  %v473_v7 = vrot.slane %v471_v60, 4  ;;  %v484_v9 = vshrl.u32 %v9550_v53, 16  ;;  %v9580_v38 = vld [vmem:[%s9514_s11 + $0x18] sm:$0xf]  ;;  %v437_v49 = vld [vmem:[%s9514_s11 + $0x20] sm:$0x1] }
  0x9d   : >> { %7860 = vmatpush3.bf16.msra.mxu1 %v8814_v18  ;;  %v476_v8 = vrot.slane %v474_v61, 5  ;;  %v6914_v11 = vcombine.low %v459_v63, %v469_v6  ;;  %v1596_v12 = vrot.slane %v1595_v0, 4  ;;  %v1606_v13 = vrot.slane %v1605_v2, 4  ;;  %v7010_v55 = vld [vmem:[%s9514_s11 + $0x24] sm:$0xf]  ;;  %s10466_s7 = smov (%p395_p11), 0  }
  0x9e   : >> { %7988 = vmatpush3.bf16.msra.mxu0 %v8815_v19  ;;  %7861 = vmatprep.subr.bf16.mxu1 %v8816_v20  ;;  %v482_v14 = vrot.slane %v480_v4, 5  ;;  %v486_v18 = vrot.slane %v484_v9, 4  ;;  %v490_v19 = vshll.u32 %v9557_v3, 16  ;;  %v1616_v27 = vshll.u32 %v7007_v5, 16  ;;  %v9600_v2 = vld [vmem:[%s9514_s11 + $0x28] sm:$0xf] }
  0x9f   : >> { %7989 = vmatprep.subr.bf16.mxu0 %v8817_v21  ;;  %v477_v17 = vor.u32 %v476_v8, %v473_v7  ;;  %7869 = vmatprep.mubr.bf16.mxu1 %v6914_v11  ;;  %v1622_v34 = vshll.u32 %v9565_v10, 16  ;;  %v495_v54 = vshrl.u32 %v9580_v38, 16  ;;  %v498_v60 = vshll.u32 %v9580_v38, 16  ;;  %v9605_v7 = vld [vmem:[%s9514_s11 + $0x2c] sm:$0x1]  ;;  %v8828_v9 = vld [vmem:[#allocation6 + $0x10] sm:$0xff]  }
  0xa0   : >> { %v487_v30 = vor.u32 %v486_v18, %v482_v14  ;;  %v492_v31 = vrot.slane %v490_v19, 5  ;;  %v1618_v33 = vrot.slane %v1616_v27, 5  ;;  %v514_v0 = vshll.u32 %v437_v49, 16  ;;  %v8827_v11 = vld [vmem:[#allocation6 + $0x148] sm:$0xff]   ;;  %v9608_v18 = vld [vmem:[%s9514_s11 + $0x24] sm:$0xf] }
  0xa1   : >> { %7862 = vmatpush3.bf16.msra.mxu1 %v8816_v20  ;;  %v9571_v20 = vld [vmem:[%s9514_s11 + $0x20] sm:$0x1]  ;;  %v478_v29 = vrot.slane %v477_v17, 4  ;;  %v1624_v44 = vrot.slane %v1622_v34, 5  ;;  %v497_v61 = vrot.slane %v495_v54, 4  ;;  %v500_v6 = vrot.slane %v498_v60, 5 }
  0xa2   : >> { %7990 = vmatpush3.bf16.msra.mxu0 %v8817_v21  ;;  %7863 = vmatprep.subr.bf16.mxu1 %v8818_v22  ;;  %v1601_v21 = vsel %vm9544_vm7, %v1596_v12, %v1600_v56  ;;  %v1632_v42 = vshll.u32 %v9571_v20, 16  ;;  %v1637_v8 = vshrl.u32 %v7010_v55, 16  ;;  %v1640_v17 = vshll.u32 %v7010_v55, 16  ;;  %v8829_v49 = vld [vmem:[#allocation6 + $0x150] sm:$0xff]  }
  0xa3   : >> { %7991 = vmatprep.subr.bf16.mxu0 %v8819_v23  ;;  %v483_v40 = vsel %vm9544_vm7, %v478_v29, %v482_v14  ;;  %v516_v14 = vrot.slane %v514_v0, 5  ;;  %v1650_v29 = vshrl.u32 %v9600_v2, 16  ;;  %v1656_v34 = vshll.u32 %v9605_v7, 16 }
  0xa4   : >> { %v1634_v51 = vrot.slane %v1632_v42, 5 }
  0xa5   : >> { %7864 = vmatpush3.bf16.msra.mxu1 %v8818_v22  ;;  %v1611_v22 = vsel %vm9544_vm7, %v1606_v13, %v1610_v59  ;;  %v8826_v59 = vld [vmem:[#allocation6 + $0x8] sm:$0xff]  }
  0xa6   : >> { %7992 = vmatpush3.bf16.msra.mxu0 %v8819_v23  ;;  %7865 = vmatprep.subr.bf16.mxu1 %v8820_v37  ;;  %v1613_v23 = vshrl.u32 %v7007_v5, 16  ;;  %v7028_v28 = vcombine.low %v1601_v21, %v1611_v22  ;;  %v501_v21 = vor.u32 %v500_v6, %v497_v61  ;;  %v1639_v22 = vrot.slane %v1637_v8, 4  ;;  %v9638_v6 = vld [vmem:[%s9514_s11 + $0x38] sm:$0x1] }
  0xa7   : >> { %7993 = vmatprep.subr.bf16.mxu0 %v8821_v41 }
  0xa8   : >> { %v1615_v32 = vrot.slane %v1613_v23, 4  ;;  %7997 = vmatprep.mubr.bf16.mxu0 %v7028_v28  ;;  %v1646_v23 = vshll.u32 %v9600_v2, 16  ;;  %v1642_v28 = vrot.slane %v1640_v17, 5 }
  0xa9   : >> { %7866 = vmatpush3.bf16.msra.mxu1 %v8820_v37  ;;  %v1626_v37 = vshrl.u32 %v9565_v10, 16 }
  0xaa   : >> { %7994 = vmatpush3.bf16.msra.mxu0 %v8821_v41  ;;  %7867 = vmatprep.subr.bf16.mxu1 %v8822_v47  ;;  %v488_v41 = vrot.slane %v487_v30, 4  ;;  %v1619_v43 = vor.u32 %v1618_v33, %v1615_v32  ;;  %v9615_v30 = vld [vmem:[%s9514_s11 + $0x28] sm:$0xf]  ;;  %v502_v32 = vrot.slane %v501_v21, 4  ;;  %v1648_v33 = vrot.slane %v1646_v23, 5 }
  0xab   : >> { %7995 = vmatprep.subr.bf16.mxu0 %v8823_v62  ;;  %v1628_v45 = vrot.slane %v1626_v37, 4  ;;  %v519_v37 = vshrl.u32 %v9608_v18, 16  ;;  %v1643_v42 = vor.u32 %v1642_v28, %v1639_v22  ;;  %v528_v55 = vshll.u32 %v9615_v30, 16  ;;  %v9642_v21 = vld [vmem:[%s9514_s11 + $0x30] sm:$0xf] }
  0xac   : >> { %v493_v50 = vsel %vm9544_vm7, %v488_v41, %v492_v31  ;;  %v1620_v57 = vrot.slane %v1619_v43, 4  ;;  %v9618_v31 = vld [vmem:[%s9514_s11 + $0x2c] sm:$0x1]  ;;  %v1652_v43 = vrot.slane %v1650_v29, 4 }
  0xad   : >> { %7868 = vmatpush3.bf16.msra.mxu1 %v8822_v47  ;;  %v9588_v47 = vld [vmem:[%s9514_s11 + $0x1c] sm:$0xf]  ;;  %v6915_v56 = vcombine.low %v483_v40, %v493_v50  ;;  %v1629_v58 = vor.u32 %v1628_v45, %v1624_v44  ;;  %v7013_v40 = vld [vmem:[%s9514_s11 + $0x30] sm:$0xf]  ;;  %v9625_v45 = vld [vmem:[%s9514_s11 + $0x34] sm:$0xf] }
  0xae   : >> { %7996 = vmatpush3.bf16.msra.mxu0 %v8823_v62  ;;  %7885 = vmatprep.subr.bf16.mxu1 %v8824_v15  ;;  %v504_v62 = vshll.u32 %v9588_v47, 16  ;;  %v508_v63 = vshrl.u32 %v9588_v47, 16  ;;  %v1625_v4 = vsel %vm9544_vm7, %v1620_v57, %v1624_v44  ;;  %v522_v44 = vshll.u32 %v9608_v18, 16 }
  0xaf   : >> { %8013 = vmatprep.subr.bf16.mxu0 %v9567_v16  ;;  %v1630_v5 = vrot.slane %v1629_v58, 4  ;;  %v521_v54 = vrot.slane %v519_v37, 4  ;;  %v1644_v58 = vrot.slane %v1643_v42, 4  ;;  %v1661_v8 = vshrl.u32 %v7013_v40, 16 }
  0xb0   : >> { %7870 = vmatmul.mubr.bf16.vlgmr.msra.gmra.mrb[0].mxu1 %v6915_v56  ;;  %v506_v12 = vrot.slane %v504_v62, 5  ;;  %v510_v13 = vrot.slane %v508_v63, 4  ;;  %v8830_v56 = vld [vmem:[#allocation6 + $0x18] sm:$0xff]   ;;  %v524_v60 = vrot.slane %v522_v44, 5  ;;  %v530_v62 = vrot.slane %v528_v55, 5 }
  0xb1   : >> { %7886 = vmatpush3.bf16.msra.mxu1 %v8824_v15  ;;  %v1635_v19 = vsel %vm9544_vm7, %v1630_v5, %v1634_v51  ;;  %v1658_v51 = vrot.slane %v1656_v34, 5  ;;  %v538_v63 = vshll.u32 %v9618_v31, 16  ;;  %v1649_v0 = vsel %vm9544_vm7, %v1644_v58, %v1648_v33  ;;  %v9655_v44 = vld [vmem:[%s9514_s11 + $0x38] sm:$0x1] }
  0xb2   : >> { %7887 = vmatprep.subr.bf16.mxu1 %v8826_v59  ;;  %v7029_v27 = vcombine.low %v1625_v4, %v1635_v19  ;;  %v511_v15 = vor.u32 %v510_v13, %v506_v12  ;;  %v507_v50 = vsel %vm9544_vm7, %v502_v32, %v506_v12  ;;  %v525_v5 = vor.u32 %v524_v60, %v521_v54  ;;  %v8831_v12 = vld [vmem:[#allocation6 + $0x158] sm:$0xff]   ;;  %v8834_v54 = vld [vmem:[#allocation6 + $0x28] sm:$0xff]   ;;  %v8833_v60 = vld [vmem:[#allocation6 + $0x160] sm:$0xff]  }
  0xb3   : >> { %v1664_v17 = vshll.u32 %v7013_v40, 16  ;;  %v1670_v19 = vshll.u32 %v9625_v45, 16  ;;  %v1680_v40 = vshll.u32 %v9638_v6, 16 }
  0xb4   : >> { %7998 = vmatmul.mubr.bf16.vlgmr.msra.gmra.mrb[0].mxu0 %v7029_v27  ;;  %v512_v41 = vrot.slane %v511_v15, 4  ;;  %v526_v23 = vrot.slane %v525_v5, 4  ;;  %v1663_v27 = vrot.slane %v1661_v8, 4  ;;  %v1674_v15 = vshrl.u32 %v9625_v45, 16 }
  0xb5   : >> { %7888 = vmatpush3.bf16.msra.mxu1 %v8826_v59  ;;  %8014 = vmatpush3.bf16.msra.mxu0 %v9567_v16  ;;  %v1653_v59 = vor.u32 %v1652_v43, %v1648_v33  ;;  %v532_v16 = vshrl.u32 %v9615_v30, 16  ;;  %v1666_v32 = vrot.slane %v1664_v17, 5  ;;  %v1672_v33 = vrot.slane %v1670_v19, 5 }
  0xb6   : >> { %7889 = vmatprep.subr.bf16.mxu1 %v8828_v9  ;;  %8015 = vmatprep.subr.bf16.mxu0 %v8827_v11  ;;  %v517_v57 = vsel %vm9544_vm7, %v512_v41, %v516_v14  ;;  %v540_v14 = vrot.slane %v538_v63, 5  ;;  %v531_v34 = vsel %vm9544_vm7, %v526_v23, %v530_v62  ;;  %v1676_v37 = vrot.slane %v1674_v15, 4  ;;  %v9664_v63 = vld [vmem:[%s9514_s11 + $0x40] sm:$0xf] }
  0xb7   : >> { %v6916_v61 = vcombine.low %v507_v50, %v517_v57  ;;  %v1654_v4 = vrot.slane %v1653_v59, 4  ;;  %v534_v13 = vrot.slane %v532_v16, 4  ;;  %v543_v41 = vshrl.u32 %v9642_v21, 16  ;;  %v7016_v59 = vld [vmem:[%s9514_s11 + $0x3c] sm:$0xf] }
  0xb8   : >> { %v1667_v43 = vor.u32 %v1666_v32, %v1663_v27  ;;  %v546_v50 = vshll.u32 %v9642_v21, 16  ;;  %v1677_v55 = vor.u32 %v1676_v37, %v1672_v33  ;;  %v1682_v57 = vrot.slane %v1680_v40, 5  ;;  %v8835_v27 = vld [vmem:[#allocation6 + $0x168] sm:$0xff]   ;;  %v9676_v32 = vld [vmem:[%s9514_s11 + $0x3c] sm:$0xf] }
  0xb9   : >> { %7890 = vmatpush3.bf16.msra.mxu1 %v8828_v9  ;;  %8016 = vmatpush3.bf16.msra.mxu0 %v8827_v11  ;;  %v1659_v22 = vsel %vm9544_vm7, %v1654_v4, %v1658_v51  ;;  %v9648_v9 = vld [vmem:[%s9514_s11 + $0x34] sm:$0xf]  ;;  %v8832_v11 = vld [vmem:[#allocation6 + $0x20] sm:$0xff]   ;;  %v535_v29 = vor.u32 %v534_v13, %v530_v62  ;;  %v545_v58 = vrot.slane %v543_v41, 4  ;;  %v562_v8 = vshll.u32 %v9655_v44, 16  ;;  %v8836_v13 = vld [vmem:[#allocation6 + $0x30] sm:$0xff]  }
  0xba   : >> { %7873 = vmatprep.mubr.bf16.mxu1 %v6916_v61  ;;  %8017 = vmatprep.subr.bf16.mxu0 %v8829_v49  ;;  %v7030_v28 = vcombine.low %v1649_v0, %v1659_v22  ;;  %v552_v51 = vshll.u32 %v9648_v9, 16  ;;  %v1668_v61 = vrot.slane %v1667_v43, 4  ;;  %v548_v62 = vrot.slane %v546_v50, 5  ;;  %v9682_v41 = vld [vmem:[%s9514_s11 + $0x44] sm:$0x1] }
  0xbb   : >> { %7891 = vmatprep.subr.bf16.mxu1 %v8830_v56  ;;  %v536_v42 = vrot.slane %v535_v29, 4  ;;  %v1678_v4 = vrot.slane %v1677_v55, 4  ;;  %v1685_v22 = vshrl.u32 %v7016_v59, 16  ;;  %v1688_v23 = vshll.u32 %v7016_v59, 16  ;;  %11494 = vst [vmem:[#allocation14_spill] sm:$0xff] %v9682_v41 }
  0xbc   : >> { %8001 = vmatprep.mubr.bf16.mxu0 %v7030_v28  ;;  %v554_v16 = vrot.slane %v552_v51, 5  ;;  %v1673_v17 = vsel %vm9544_vm7, %v1668_v61, %v1672_v33  ;;  %v549_v19 = vor.u32 %v548_v62, %v545_v58  ;;  %v1694_v29 = vshll.u32 %v9664_v63, 16  ;;  %v9692_v61 = vld [vmem:[%s9514_s11 + $0x4c] sm:$0xf] }
  0xbd   : >> { %7892 = vmatpush3.bf16.msra.mxu1 %v8830_v56  ;;  %8018 = vmatpush3.bf16.msra.mxu0 %v8829_v49  ;;  %v556_v56 = vshrl.u32 %v9648_v9, 16  ;;  %v541_v49 = vsel %vm9544_vm7, %v536_v42, %v540_v14  ;;  %v9670_v14 = vld [vmem:[%s9514_s11 + $0x44] sm:$0x1]  ;;  %v1683_v15 = vsel %vm9544_vm7, %v1678_v4, %v1682_v57  ;;  %v1687_v37 = vrot.slane %v1685_v22, 4  ;;  %v7019_v57 = vld [vmem:[%s9514_s11 + $0x48] sm:$0xf] }
  0xbe   : >> { %8019 = vmatprep.subr.bf16.mxu0 %v8831_v12  ;;  %7893 = vmatprep.subr.bf16.mxu1 %v8832_v11  ;;  %v6917_v0 = vcombine.low %v531_v34, %v541_v49  ;;  %v7031_v33 = vcombine.low %v1673_v17, %v1683_v15  ;;  %v550_v34 = vrot.slane %v549_v19, 4  ;;  %v1690_v40 = vrot.slane %v1688_v23, 5  ;;  %v8838_v42 = vld [vmem:[#allocation6 + $0x38] sm:$0xff]   ;;  %v8837_v19 = vld [vmem:[#allocation6 + $0x170] sm:$0xff]  }
  0xbf   : >> { %v558_v5 = vrot.slane %v556_v56, 4  ;;  %v1696_v50 = vrot.slane %v1694_v29, 5  ;;  %v1698_v51 = vshrl.u32 %v9664_v63, 16  ;;  %v1704_v55 = vshll.u32 %v9670_v14, 16 }
  0xc0   : >> { %7874 = vmatmul.mubr.bf16.gmra.mrb[4].mxu1 %v6917_v0  ;;  %8002 = vmatmul.mubr.bf16.gmra.mrb[4].mxu0 %v7031_v33  ;;  %v555_v58 = vsel %vm9544_vm7, %v550_v34, %v554_v16  ;;  %v1691_v56 = vor.u32 %v1690_v40, %v1687_v37  ;;  %v567_v59 = vshrl.u32 %v9676_v32, 16  ;;  %v570_v49 = vshll.u32 %v9676_v32, 16  ;;  %v9704_v37 = vld [vmem:[#allocation6 + $0x80] sm:$0xff]  }
  0xc1   : >> { %7894 = vmatpush3.bf16.msra.mxu1 %v8832_v11  ;;  %8020 = vmatpush3.bf16.msra.mxu0 %v8831_v12  ;;  %v559_v28 = vor.u32 %v558_v5, %v554_v16  ;;  %v564_v11 = vrot.slane %v562_v8, 5  ;;  %v9679_v12 = vld [vmem:[%s9514_s11 + $0x40] sm:$0xf]  ;;  %v1700_v0 = vrot.slane %v1698_v51, 4  ;;  %v1706_v4 = vrot.slane %v1704_v55, 5 }
  0xc2   : >> { %7895 = vmatprep.subr.bf16.mxu1 %v8834_v54  ;;  %8021 = vmatprep.subr.bf16.mxu0 %v8833_v60  ;;  %v576_v5 = vshll.u32 %v9679_v12, 16  ;;  %v1692_v8 = vrot.slane %v1691_v56, 4  ;;  %v569_v16 = vrot.slane %v567_v59, 4  ;;  %v572_v17 = vrot.slane %v570_v49, 5  ;;  %v9709_v49 = vld [vmem:[%s9514_s11 + $0x48] sm:$0xf] }
  0xc3   : >> { %v560_v43 = vrot.slane %v559_v28, 4  ;;  %v1701_v22 = vor.u32 %v1700_v0, %v1696_v50  ;;  %v580_v15 = vshrl.u32 %v9679_v12, 16  ;;  %v586_v28 = vshll.u32 %v9682_v41, 16 }
  0xc4   : >> { %v578_v23 = vrot.slane %v576_v5, 5  ;;  %v573_v29 = vor.u32 %v572_v17, %v569_v16  ;;  %v1709_v33 = vshrl.u32 %v7019_v57, 16  ;;  %v1712_v34 = vshll.u32 %v7019_v57, 16 }
  0xc5   : >> { %7896 = vmatpush3.bf16.msra.mxu1 %v8834_v54  ;;  %v565_v62 = vsel %vm9544_vm7, %v560_v43, %v564_v11  ;;  %8022 = vmatpush3.bf16.msra.mxu0 %v8833_v60  ;;  %v1697_v11 = vsel %vm9544_vm7, %v1692_v8, %v1696_v50  ;;  %v9702_v60 = vld [vmem:[%s9514_s11 + $0x50] sm:$0x1]  ;;  %v1702_v40 = vrot.slane %v1701_v22, 4  ;;  %v582_v43 = vrot.slane %v580_v15, 4  ;;  %v7022_v15 = vld [vmem:[%s9514_s11 + $0x54] sm:$0xf] }
  0xc6   : >> { %7897 = vmatprep.subr.bf16.mxu1 %v8836_v13  ;;  %v6918_v54 = vcombine.low %v555_v58, %v565_v62  ;;  %8023 = vmatprep.subr.bf16.mxu0 %v8835_v27  ;;  %v588_v51 = vrot.slane %v586_v28, 5  ;;  %v1718_v55 = vshll.u32 %v9692_v61, 16  ;;  %v574_v58 = vrot.slane %v573_v29, 4  ;;  %v9720_v22 = vld [vmem:[%s9514_s11 + $0x50] sm:$0x1] }
  0xc7   : >> { %v1711_v50 = vrot.slane %v1709_v33, 4  ;;  %v1714_v56 = vrot.slane %v1712_v34, 5  ;;  %v1722_v59 = vshrl.u32 %v9692_v61, 16  ;;  %v1707_v57 = vsel %vm9544_vm7, %v1702_v40, %v1706_v4  ;;  %11495 = vst [vmem:[#allocation15_spill] sm:$0xff] %v9720_v22  ;;  %v9728_v40 = vld [vmem:[#allocation6 + $0x180] sm:$0xff]  }
  0xc8   : >> { %7877 = vmatprep.mubr.bf16.mxu1 %v6918_v54  ;;  %v583_v62 = vor.u32 %v582_v43, %v578_v23  ;;  %v1720_v0 = vrot.slane %v1718_v55, 5  ;;  %v1728_v5 = vshll.u32 %v9702_v60, 16  ;;  %v9715_v54 = vld [vmem:[%s9514_s11 + $0x4c] sm:$0xf]  ;;  %v579_v8 = vsel %vm9544_vm7, %v574_v58, %v578_v23 }
  0xc9   : >> { %7898 = vmatpush3.bf16.msra.mxu1 %v8836_v13  ;;  %8024 = vmatpush3.bf16.msra.mxu0 %v8835_v27  ;;  %v8839_v13 = vld [vmem:[#allocation6 + $0x178] sm:$0xff]   ;;  %v7032_v27 = vcombine.low %v1697_v11, %v1707_v57  ;;  %v1715_v16 = vor.u32 %v1714_v56, %v1711_v50  ;;  %v1724_v17 = vrot.slane %v1722_v59, 4  ;;  %v591_v29 = vshrl.u32 %v9709_v49, 16  ;;  %v9734_v50 = vld [vmem:[%s9514_s11 + $0x58] sm:$0xf] }
  0xca   : >> { %7899 = vmatprep.subr.bf16.mxu1 %v8838_v42  ;;  %8025 = vmatprep.subr.bf16.mxu0 %v8837_v19  ;;  %v584_v28 = vrot.slane %v583_v62, 4  ;;  %v1730_v4 = vrot.slane %v1728_v5, 5  ;;  %v594_v33 = vshll.u32 %v9709_v49, 16  ;;  %v600_v11 = vshll.u32 %v9715_v54, 16  ;;  %v9739_v5 = vld [vmem:[%s9514_s11 + $0x5c] sm:$0x1] }
  0xcb   : >> { %8005 = vmatprep.mubr.bf16.mxu0 %v7032_v27  ;;  %v1725_v23 = vor.u32 %v1724_v17, %v1720_v0  ;;  %v604_v34 = vshrl.u32 %v9715_v54, 16  ;;  %v593_v55 = vrot.slane %v591_v29, 4  ;;  %v9742_v27 = vld [vmem:[%s9514_s11 + $0x54] sm:$0xf]  ;;  %v1742_v29 = vshll.u32 %v9734_v50, 16 }
  0xcc   : >> { %v589_v43 = vsel %vm9544_vm7, %v584_v28, %v588_v51  ;;  %v596_v58 = vrot.slane %v594_v33, 5  ;;  %v602_v62 = vrot.slane %v600_v11, 5  ;;  %v1733_v51 = vshrl.u32 %v7022_v15, 16  ;;  %v9745_v28 = vld [vmem:[%s9514_s11 + $0x58] sm:$0xf] }
  0xcd   : >> { %7900 = vmatpush3.bf16.msra.mxu1 %v8838_v42  ;;  %8026 = vmatpush3.bf16.msra.mxu0 %v8837_v19  ;;  %v1716_v42 = vrot.slane %v1715_v16, 4  ;;  %v610_v19 = vshll.u32 %v9720_v22, 16  ;;  %v6919_v56 = vcombine.low %v579_v8, %v589_v43  ;;  %v1726_v57 = vrot.slane %v1725_v23, 4  ;;  %v9769_v22 = vld [vmem:[%s9514_s11 + $0x68] sm:$0x1] }
  0xce   : >> { %7917 = vmatprep.subr.bf16.mxu1 %v9704_v37  ;;  %8027 = vmatprep.subr.bf16.mxu0 %v8839_v13  ;;  %v597_v16 = vor.u32 %v596_v58, %v593_v55  ;;  %v606_v17 = vrot.slane %v604_v34, 4  ;;  %v1746_v33 = vshrl.u32 %v9734_v50, 16  ;;  %v1735_v34 = vrot.slane %v1733_v51, 4  ;;  %v9754_v58 = vld [vmem:[%s9514_s11 + $0x5c] sm:$0x1] }
  0xcf   : >> { %v1721_v59 = vsel %vm9544_vm7, %v1716_v42, %v1720_v0  ;;  %v612_v39 = vrot.slane %v610_v19, 5  ;;  %7878 = vmatmul.mubr.bf16.gmra.mrb[8].mxu1 %v6919_v56  ;;  %v1731_v8 = vsel %vm9544_vm7, %v1726_v57, %v1730_v4  ;;  %v1736_v0 = vshll.u32 %v7022_v15, 16  ;;  %v7025_v15 = vld [vmem:[%s9514_s11 + $0x60] sm:$0xf] }
  0xd0   : >> { %v7033_v42 = vcombine.low %v1721_v59, %v1731_v8  ;;  %v598_v23 = vrot.slane %v597_v16, 4  ;;  %v607_v11 = vor.u32 %v606_v17, %v602_v62  ;;  %v1744_v43 = vrot.slane %v1742_v29, 5 }
  0xd1   : >> { %8028 = vmatpush3.bf16.msra.mxu0 %v8839_v13  ;;  %v1738_v13 = vrot.slane %v1736_v0, 5  ;;  %v1748_v55 = vrot.slane %v1746_v33, 4  ;;  %v1752_v4 = vshll.u32 %v9739_v5, 16  ;;  %v615_v59 = vshrl.u32 %v9742_v27, 16  ;;  %v9763_v0 = vld [vmem:[%s9514_s11 + $0x64] sm:$0xf] }
  0xd2   : >> { %8045 = vmatprep.subr.bf16.mxu0 %v9728_v40  ;;  %8006 = vmatmul.mubr.bf16.gmra.mrb[8].mxu0 %v7033_v42  ;;  %v603_v19 = vsel %vm9544_vm7, %v598_v23, %v602_v62  ;;  %v608_v56 = vrot.slane %v607_v11, 4  ;;  %v618_v57 = vshll.u32 %v9742_v27, 16  ;;  %v624_v8 = vshll.u32 %v9745_v28, 16 }
  0xd3   : >> { %v1739_v16 = vor.u32 %v1738_v13, %v1735_v34  ;;  %v1749_v17 = vor.u32 %v1748_v55, %v1744_v43  ;;  %v1754_v51 = vrot.slane %v1752_v4, 5  ;;  %v617_v33 = vrot.slane %v615_v59, 4  ;;  %v7044_v34 = vld [vmem:[%s9514_s11 + $0xc] sm:$0xe] }
  0xd4   : >> { %v613_v29 = vsel %vm9544_vm7, %v608_v56, %v612_v39  ;;  %v620_v42 = vrot.slane %v618_v57, 5  ;;  %v628_v62 = vshrl.u32 %v9745_v28, 16  ;;  %v626_v1 = vrot.slane %v624_v8, 5 }
  0xd5   : >> { %v6920_v23 = vcombine.low %v603_v19, %v613_v29  ;;  %v1740_v11 = vrot.slane %v1739_v16, 4  ;;  %v1750_v52 = vrot.slane %v1749_v17, 4  ;;  %v634_v4 = vshll.u32 %v9754_v58, 16 }
  0xd6   : >> { %v621_v13 = vor.u32 %v620_v42, %v617_v33  ;;  %v630_v55 = vrot.slane %v628_v62, 4  ;;  %v1757_v41 = vshrl.u32 %v7025_v15, 16  ;;  %v1760_v59 = vshll.u32 %v7025_v15, 16 }
  0xd7   : >> { %7881 = vmatprep.mubr.bf16.mxu1 %v6920_v23  ;;  %v1745_v39 = vsel %vm9544_vm7, %v1740_v11, %v1744_v43  ;;  %v1755_v56 = vsel %vm9544_vm7, %v1750_v52, %v1754_v51  ;;  %v1766_v19 = vshll.u32 %v9763_v0, 16  ;;  %v636_v8 = vrot.slane %v634_v4, 5  ;;  %v7045_v4 = vld [vmem:[%s9514_s11 + $0x18] sm:$0xe] }
  0xd8   : >> { %v7034_v57 = vcombine.low %v1745_v39, %v1755_v56  ;;  %v622_v16 = vrot.slane %v621_v13, 4  ;;  %v631_v17 = vor.u32 %v630_v55, %v626_v1  ;;  %v1759_v29 = vrot.slane %v1757_v41, 4  ;;  %v7046_v39 = vld [vmem:[%s9514_s11 + $0x24] sm:$0xe] }
  0xd9   : >> { %v1762_v33 = vrot.slane %v1760_v59, 5  ;;  %v1768_v42 = vrot.slane %v1766_v19, 5  ;;  %v1770_v62 = vshrl.u32 %v9763_v0, 16  ;;  %v1776_v52 = vshll.u32 %v9769_v22, 16 }
  0xda   : >> { %8009 = vmatprep.mubr.bf16.mxu0 %v7034_v57  ;;  %v627_v43 = vsel %vm9544_vm7, %v622_v16, %v626_v1  ;;  %v632_v23 = vrot.slane %v631_v17, 4  ;;  %v7052_v15 = vrot.slane %v7044_v34, 9  ;;  %v2024_v41 = vrot.slane %v9532_v35, 5 }
  0xdb   : >> { %v1763_v51 = vor.u32 %v1762_v33, %v1759_v29  ;;  %v1772_v11 = vrot.slane %v1770_v62, 4  ;;  %v6930_v1 = vcombine.low %v9517_v24, %v9520_v25  ;;  %v1778_v19 = vrot.slane %v1776_v52, 5 }
  0xdc   : >> { %v637_v55 = vsel %vm9544_vm7, %v632_v23, %v636_v8  ;;  %v2025_v57 = vsel %vm9784_vm10, %v7052_v15, %v2024_v41  ;;  %v2026_v16 = vrot.slane %v2024_v41, 4  ;;  %v2038_v8 = vrot.slane %v9600_v2, 5  ;;  %v7047_v15 = vld [vmem:[%s9514_s11 + $0x30] sm:$0xe] }
  0xdd   : >> { %v6921_v56 = vcombine.low %v627_v43, %v637_v55  ;;  %v1764_v34 = vrot.slane %v1763_v51, 4  ;;  %v1773_v59 = vor.u32 %v1772_v11, %v1768_v42  ;;  %v11498_v24 = vrot.slane %v9565_v10, 5 }
  0xde   : >> { %v2034_v29 = vrot.slane %v9571_v20, 5  ;;  %v11499_v33 = vrot.slane %v9535_v36, 5  ;;  %v7054_v52 = vrot.slane %v7046_v39, 9  ;;  %v2040_v51 = vrot.slane %v2038_v8, 4 }
  0xdf   : >> { %7882 = vmatmul.mubr.bf16.gmra.mrb[12].mxu1 %v6921_v56  ;;  %v1769_v35 = vsel %vm9544_vm7, %v1764_v34, %v1768_v42  ;;  %v1774_v17 = vrot.slane %v1773_v59, 4  ;;  %v2033_v25 = vrot.slane %v11498_v24, 4  ;;  %v7053_v42 = vrot.slane %v7045_v4, 9  ;;  %v7048_v4 = vld [vmem:[%s9514_s11 + $0x3c] sm:$0xe]  ;;  %v8844_v56 = vld [vmem:[#allocation6 + $0x88] sm:$0xff]  }
  0xe0   : >> { %7901 = vmatprep.mubr.bf16.mxu1 %v6930_v1  ;;  %v2028_v62 = vsel %vm9784_vm10, %v2026_v16, %v11499_v33  ;;  %v2041_v11 = vrot.slane %v9605_v7, 5  ;;  %v1057_v20 = vrot.slane %v9523_v26, 5  ;;  %v1064_v36 = vrot.slane %v9557_v3, 5 }
  0xe1   : >> { %v1779_v43 = vsel %vm9544_vm7, %v1774_v17, %v1778_v19  ;;  %v7060_v23 = vcombine.low %v2025_v57, %v2028_v62  ;;  %v6931_v41 = vcombine.low %v9540_v46, %v9550_v53  ;;  %v2035_v55 = vsel %vm9784_vm10, %v2033_v25, %v2034_v29  ;;  %v9841_v25 = vld [vmem:[%s9514_s11 + $0x60] sm:$0xe] }
  0xe2   : >> { %v7035_v2 = vcombine.low %v1769_v35, %v1779_v43  ;;  %v6932_v1 = vcombine.low %v9580_v38, %v9588_v47  ;;  %v11500_v39 = vmov %v11498_v24  ;;  %v7055_v34 = vrot.slane %v7047_v15, 9  ;;  %v9831_v47 = vld [vmem:[%s9514_s11 + $0x48] sm:$0xe]  ;;  %v9838_v35 = vld [vmem:[%s9514_s11 + $0x54] sm:$0xe]  ;;  %v8850_v62 = vld [vmem:[#allocation6 + $0x98] sm:$0xff]  }
  0xe3   : >> { %v2032_v7 = vsel %vm9784_vm10, %v7053_v42, %v11500_v39  ;;  %v2045_v59 = vrot.slane %v9625_v45, 5  ;;  %v2052_v46 = vrot.slane %v9664_v63, 5  ;;  %v2039_v53 = vsel %vm9784_vm10, %v7054_v52, %v2038_v8  ;;  %v8845_v63 = vld [vmem:[#allocation6 + $0x188] sm:$0xff]   ;;  %v8849_v52 = vld [vmem:[#allocation6 + $0x190] sm:$0xff]  }
  0xe4   : >> { %8010 = vmatmul.mubr.bf16.gmra.mrb[12].mxu0 %v7035_v2  ;;  %v2042_v38 = vsel %vm9784_vm10, %v2040_v51, %v2041_v11  ;;  %v2048_v10 = vrot.slane %v9638_v6, 5  ;;  %v7056_v19 = vrot.slane %v7048_v4, 9  ;;  %v2055_v57 = vrot.slane %v9670_v14, 5  ;;  %v8848_v14 = vld [vmem:[#allocation6 + $0x90] sm:$0xff]   ;;  %v9859_v51 = vld [vmem:[%s9514_s11 + $0x4] sm:$0xf] }
  0xe5   : >> { %8029 = vmatprep.mubr.bf16.mxu0 %v7060_v23  ;;  %v2059_v16 = vrot.slane %v9692_v61, 5  ;;  %v7061_v45 = vcombine.low %v2032_v7, %v2035_v55  ;;  %v7062_v17 = vcombine.low %v2039_v53, %v2042_v38  ;;  %v2047_v8 = vrot.slane %v2045_v59, 4  ;;  %v8854_v4 = vld [vmem:[#allocation6 + $0xa0] sm:$0xff]  }
  0xe6   : >> { %v2054_v24 = vrot.slane %v2052_v46, 4  ;;  %v6933_v6 = vcombine.low %v9608_v18, %v9615_v30  ;;  %v2046_v29 = vsel %vm9784_vm10, %v7055_v34, %v2045_v59  ;;  %v7057_v33 = vrot.slane %v9831_v47, 9  ;;  %v9876_v59 = vld [vmem:[%s9514_s11 + $0x10] sm:$0xf]  ;;  %v1028_v47 = vld [vmem:[%s9514_s11 + $0x24] sm:$0xe] }
  0xe7   : >> { %7902 = vmatmul.mubr.bf16.vlgmr.msra.gmra.mrb[0].mxu1 %v6931_v41  ;;  %v2061_v43 = vrot.slane %v2059_v16, 4  ;;  %v2062_v23 = vrot.slane %v9702_v60, 5  ;;  %v7058_v42 = vrot.slane %v9838_v35, 9  ;;  %v2066_v18 = vrot.slane %v9734_v50, 5  ;;  %v1025_v41 = vld [vmem:[%s9514_s11] sm:$0xe] }
  0xe8   : >> { %7918 = vmatpush3.bf16.msra.mxu1 %v9704_v37  ;;  %7905 = vmatprep.mubr.bf16.mxu1 %v6932_v1  ;;  %v6934_v37 = vcombine.low %v9642_v21, %v9648_v9  ;;  %v2069_v15 = vrot.slane %v9739_v5, 5  ;;  %v7059_v21 = vrot.slane %v9841_v25, 9  ;;  %v2073_v2 = vrot.slane %v9763_v0, 5  ;;  %v8851_v1 = vld [vmem:[#allocation6 + $0x198] sm:$0xff]  }
  0xe9   : >> { %7919 = vmatprep.subr.bf16.mxu1 %v8844_v56  ;;  %v1054_v11 = vrot.slane %v9859_v51, 5  ;;  %v2049_v60 = vsel %vm9784_vm10, %v2047_v8, %v2048_v10  ;;  %v2053_v50 = vsel %vm9784_vm10, %v7056_v19, %v2052_v46  ;;  %v2056_v5 = vsel %vm9784_vm10, %v2054_v24, %v2055_v57  ;;  %v8856_v57 = vld [vmem:[#allocation6 + $0xa8] sm:$0xff]   ;;  %v8855_v8 = vld [vmem:[#allocation6 + $0x1a0] sm:$0xff]   ;;  %v9902_v24 = vld [vmem:[%s9514_s11 + $0x18] sm:$0xe] }
  0xea   : >> { %v7063_v55 = vcombine.low %v2046_v29, %v2049_v60  ;;  %v2068_v39 = vrot.slane %v2066_v18, 4  ;;  %v2076_v7 = vrot.slane %v9769_v22, 5  ;;  %v6946_v34 = vrot.slane %v1025_v41, 9  ;;  %v8906_v60 = vld [vmem:[%s9514_s11 + $0x1c] sm:$0xf]  ;;  %v11501_v51 = vld [vmem:[#allocation14_spill] sm:$0xff] }
  0xeb   : >> { %v1061_v46 = vrot.slane %v9876_v59, 5  ;;  %v1075_v53 = vrot.slane %v9615_v30, 5  ;;  %v1056_v38 = vrot.slane %v1054_v11, 4  ;;  %v1078_v10 = vrot.slane %v9618_v31, 5  ;;  %v8861_v22 = vld [vmem:[#allocation6 + $0x1b0] sm:$0xff]  }
  0xec   : >> { %8030 = vmatmul.mubr.bf16.vlgmr.msra.gmra.mrb[0].mxu0 %v7061_v45  ;;  %7920 = vmatpush3.bf16.msra.mxu1 %v8844_v56  ;;  %v9873_v56 = vrot.slane %v2073_v2, 4  ;;  %v6935_v19 = vcombine.low %v9676_v32, %v9679_v12  ;;  %v6936_v45 = vcombine.low %v9709_v49, %v9715_v54  ;;  %v6949_v35 = vrot.slane %v1028_v47, 9 }
  0xed   : >> { %8046 = vmatpush3.bf16.msra.mxu0 %v9728_v40  ;;  %8033 = vmatprep.mubr.bf16.mxu0 %v7062_v17  ;;  %v7064_v40 = vcombine.low %v2053_v50, %v2056_v5  ;;  %v1077_v17 = vrot.slane %v1075_v53, 4  ;;  %v2060_v30 = vsel %vm9784_vm10, %v7057_v33, %v2059_v16  ;;  %v2063_v31 = vsel %vm9784_vm10, %v2061_v43, %v2062_v23  ;;  %v1029_v43 = vld [vmem:[%s9514_s11 + $0x30] sm:$0xe]  ;;  %v1030_v5 = vld [vmem:[%s9514_s11 + $0x3c] sm:$0xe] }
  0xee   : >> { %8047 = vmatprep.subr.bf16.mxu0 %v8845_v63  ;;  %7921 = vmatprep.subr.bf16.mxu1 %v8848_v14  ;;  %v2067_v32 = vsel %vm9784_vm10, %v7058_v42, %v2066_v18  ;;  %v2070_v49 = vsel %vm9784_vm10, %v2068_v39, %v2069_v15  ;;  %v9906_v61 = vsel %vm9784_vm10, %v6949_v35, %v1075_v53  ;;  %v1082_v29 = vrot.slane %v9648_v9, 5  ;;  %v8857_v42 = vld [vmem:[#allocation6 + $0x1a8] sm:$0xff]   ;;  %v8863_v35 = vld [vmem:[#allocation6 + $0x1b8] sm:$0xff]  }
  0xef   : >> { %7906 = vmatmul.mubr.bf16.gmra.mrb[4].mxu1 %v6933_v6  ;;  %v9910_v16 = vsel %vm9784_vm10, %v1077_v17, %v1078_v10  ;;  %v6937_v33 = vcombine.low %v9742_v27, %v9745_v28  ;;  %v1085_v23 = vrot.slane %v9655_v44, 5  ;;  %v7066_v18 = vcombine.low %v2067_v32, %v2070_v49  ;;  %v8860_v27 = vld [vmem:[#allocation6 + $0xb0] sm:$0xff]  }
  0xf0   : >> { %7922 = vmatpush3.bf16.msra.mxu1 %v8848_v14  ;;  %7909 = vmatprep.mubr.bf16.mxu1 %v6934_v37  ;;  %v6957_v14 = vcombine.low %v9906_v61, %v9910_v16  ;;  %v7065_v37 = vcombine.low %v2060_v30, %v2063_v31  ;;  %v1055_v9 = vsel %vm9784_vm10, %v6946_v34, %v1054_v11  ;;  %v1084_v15 = vrot.slane %v1082_v29, 4  ;;  %v11502_v10 = vld [vmem:[#allocation15_spill] sm:$0xff]  ;;  %v1032_v31 = vld [vmem:[%s9514_s11 + $0x54] sm:$0xe]  ;;  %v8877_v61 = vld [vmem:[#allocation6 + $0xe0] sm:$0xff]  }
  0xf1   : >> { %8048 = vmatpush3.bf16.msra.mxu0 %v8845_v63  ;;  %7923 = vmatprep.subr.bf16.mxu1 %v8850_v62  ;;  %v9889_v63 = vld [vmem:[%s9514_s11 + $0xc] sm:$0xe]  ;;  %v1058_v44 = vsel %vm9784_vm10, %v1056_v38, %v1057_v20  ;;  %v1068_v50 = vrot.slane %v8906_v60, 5  ;;  %v1089_v41 = vrot.slane %v9679_v12, 5  ;;  %v6948_v11 = vrot.slane %v9902_v24, 9  ;;  %v8862_v20 = vld [vmem:[#allocation6 + $0xb8] sm:$0xff]  }
  0xf2   : >> { %8049 = vmatprep.subr.bf16.mxu0 %v8849_v52  ;;  %v6947_v6 = vrot.slane %v9889_v63, 9  ;;  %v9941_v26 = vsel %vm9784_vm10, %v1084_v15, %v1085_v23  ;;  %v2074_v12 = vsel %vm9784_vm10, %v7059_v21, %v2073_v2  ;;  %v2077_v0 = vsel %vm9784_vm10, %v9873_v56, %v2076_v7  ;;  %v1031_v56 = vld [vmem:[%s9514_s11 + $0x48] sm:$0xe] }
  0xf3   : >> { %v1091_v53 = vrot.slane %v1089_v41, 4  ;;  %v6954_v25 = vcombine.low %v1055_v9, %v1058_v44  ;;  %v1070_v2 = vrot.slane %v1068_v50, 4  ;;  %v1096_v47 = vrot.slane %v9715_v54, 5  ;;  %v8865_v24 = vld [vmem:[#allocation6 + $0xc0] sm:$0xff]   ;;  %v10013_v44 = vld [vmem:[%s9514_s11 + $0x20] sm:$0x1] }
  0xf4   : >> { %8034 = vmatmul.mubr.bf16.gmra.mrb[4].mxu0 %v7063_v55  ;;  %7924 = vmatpush3.bf16.msra.mxu1 %v8850_v62  ;;  %v1063_v62 = vrot.slane %v1061_v46, 4  ;;  %v1092_v55 = vrot.slane %v11501_v51, 5  ;;  %v6952_v63 = vrot.slane %v1031_v56, 9  ;;  %v1069_v30 = vsel %vm9784_vm10, %v6948_v11, %v1068_v50  ;;  %v8867_v23 = vld [vmem:[#allocation6 + $0x1c0] sm:$0xff]   ;;  %v7113_v11 = vld [vmem:[%s9514_s11 + $0x24] sm:$0xf] }
  0xf5   : >> { %8050 = vmatpush3.bf16.msra.mxu0 %v8849_v52  ;;  %8037 = vmatprep.mubr.bf16.mxu0 %v7064_v40  ;;  %v6950_v52 = vrot.slane %v1029_v43, 9  ;;  %v6951_v40 = vrot.slane %v1030_v5, 9  ;;  %v1098_v54 = vrot.slane %v1096_v47, 4  ;;  %v1106_v59 = vrot.slane %v9754_v58, 5  ;;  %v8866_v15 = vld [vmem:[%s9514_s11 + $0x24] sm:$0xff]   ;;  %v8869_v5 = vld [vmem:[#allocation6 + $0x1c8] sm:$0xff]  }
  0xf6   : >> { %8051 = vmatprep.subr.bf16.mxu0 %v8851_v1  ;;  %7925 = vmatprep.subr.bf16.mxu1 %v8854_v4  ;;  %v9963_v38 = vsel %vm9784_vm10, %v1091_v53, %v1092_v55  ;;  %v1065_v17 = vsel %vm9784_vm10, %v1063_v62, %v1064_v36  ;;  %v9988_v3 = vsel %vm9784_vm10, %v6952_v63, %v1096_v47  ;;  %v6953_v49 = vrot.slane %v1032_v31, 9  ;;  %v8868_v62 = vld [vmem:[#allocation6 + $0xc8] sm:$0xff]   ;;  %v10022_v53 = vld [vmem:[%s9514_s11 + $0x28] sm:$0xf]  ;;  %v8872_v56 = vld [vmem:[%s9514_s11 + $0x3c] sm:$0xff]  }
  0xf7   : >> { %7910 = vmatmul.mubr.bf16.gmra.mrb[8].mxu1 %v6935_v19  ;;  %v9959_v21 = vsel %vm9784_vm10, %v6951_v40, %v1089_v41  ;;  %v1099_v19 = vrot.slane %v11502_v10, 5  ;;  %v8871_v41 = vld [vmem:[#allocation6 + $0xd0] sm:$0xff]   ;;  %v8875_v10 = vld [vmem:[#allocation6 + $0x1d8] sm:$0xff]   ;;  %v8876_v63 = vld [vmem:[%s9514_s11 + $0x48] sm:$0xff]  }
  0xf8   : >> { %7926 = vmatpush3.bf16.msra.mxu1 %v8854_v4  ;;  %7913 = vmatprep.mubr.bf16.mxu1 %v6936_v45  ;;  %v8907_v4 = vld [vmem:[%s9514_s11 + $0x20] sm:$0x1]  ;;  %v6959_v7 = vcombine.low %v9959_v21, %v9963_v38  ;;  %v1062_v45 = vsel %vm9784_vm10, %v6947_v6, %v1061_v46  ;;  %v8864_v46 = vld [vmem:[%s9514_s11 + $0x18] sm:$0xff]  }
  0xf9   : >> { %8052 = vmatpush3.bf16.msra.mxu0 %v8851_v1  ;;  %7927 = vmatprep.subr.bf16.mxu1 %v8856_v57  ;;  %v9937_v1 = vsel %vm9784_vm10, %v6950_v52, %v1082_v29  ;;  %v1071_v39 = vrot.slane %v8907_v4, 5  ;;  %v9992_v36 = vsel %vm9784_vm10, %v1098_v54, %v1099_v19  ;;  %v6955_v6 = vcombine.low %v1062_v45, %v1065_v17  ;;  %v8873_v40 = vld [vmem:[#allocation6 + $0x1d0] sm:$0xff]   ;;  %v10038_v45 = vld [vmem:[%s9514_s11 + $0x34] sm:$0xf] }
  0xfa   : >> { %8053 = vmatprep.subr.bf16.mxu0 %v8855_v8  ;;  %v6958_v34 = vcombine.low %v9937_v1, %v9941_v26  ;;  %v2592_v19 = vshll.u32 %v10022_v53, 16  ;;  %v2616_v31 = vshll.u32 %v10038_v45, 16 }
  0xfb   : >> { %v1072_v32 = vsel %vm9784_vm10, %v1070_v2, %v1071_v39  ;;  %v2586_v2 = vshll.u32 %v7113_v11, 16 }
  0xfc   : >> { %8038 = vmatmul.mubr.bf16.gmra.mrb[8].mxu0 %v7065_v37  ;;  %7928 = vmatpush3.bf16.msra.mxu1 %v8856_v57  ;;  %v7067_v57 = vcombine.low %v2074_v12, %v2077_v0  ;;  %v6956_v37 = vcombine.low %v1069_v30, %v1072_v32  ;;  %v8874_v12 = vld [vmem:[#allocation6 + $0xd8] sm:$0xff]   ;;  %v10025_v0 = vld [vmem:[%s9514_s11 + $0x2c] sm:$0x1] }
  0xfd   : >> { %8054 = vmatpush3.bf16.msra.mxu0 %v8855_v8  ;;  %8041 = vmatprep.mubr.bf16.mxu0 %v7066_v18  ;;  %v1103_v8 = vrot.slane %v9745_v28, 5  ;;  %v6960_v28 = vcombine.low %v9988_v3, %v9992_v36  ;;  %v10008_v18 = vld [vmem:[%s9514_s11 + $0x1c] sm:$0xf]  ;;  %v2588_v1 = vrot.slane %v2586_v2, 5  ;;  %v2602_v26 = vshll.u32 %v10025_v0, 16  ;;  %v8888_v2 = vld [vmem:[%s9514_s11 + $0xc] sm:$0xff]  }
  0xfe   : >> { %8055 = vmatprep.subr.bf16.mxu0 %v8857_v42  ;;  %7929 = vmatprep.subr.bf16.mxu1 %v8860_v27  ;;  %v2568_v60 = vshll.u32 %v10008_v18, 16  ;;  %v2572_v50 = vshrl.u32 %v10008_v18, 16 }
  0xff   : >> { %7914 = vmatmul.mubr.bf16.gmra.mrb[12].mxu1 %v6937_v33  ;;  %v1105_v58 = vrot.slane %v1103_v8, 4  ;;  %v9998_v29 = vsel %vm9784_vm10, %v6953_v49, %v1103_v8  ;;  %v2620_v8 = vshrl.u32 %v10038_v45, 16  ;;  %v10052_v49 = vld [vmem:[%s9514_s11 + $0x38] sm:$0x1] }
 0x100   : >> { %7930 = vmatpush3.bf16.msra.mxu1 %v8860_v27  ;;  %7933 = vmatprep.mubr.bf16.mxu1 %v6954_v25  ;;  %v8870_v27 = vld [vmem:[%s9514_s11 + $0x30] sm:$0xff]   ;;  %v10019_v4 = vrot.slane %v2568_v60, 5  ;;  %v2574_v39 = vrot.slane %v2572_v50, 4  ;;  %v2583_v25 = vshrl.u32 %v7113_v11, 16  ;;  %v10090_v11 = vrot.slane %v2602_v26, 5 }
 0x101   : >> { %8056 = vmatpush3.bf16.msra.mxu0 %v8857_v42  ;;  %7931 = vmatprep.subr.bf16.mxu1 %v8862_v20  ;;  %v10002_v33 = vsel %vm9784_vm10, %v1105_v58, %v1106_v59  ;;  %v7110_v42 = vld [vmem:[%s9514_s11 + $0x18] sm:$0xf]  ;;  %v8879_v59 = vld [vmem:[#allocation6 + $0x1e0] sm:$0xff]  }
 0x102   : >> { %8057 = vmatprep.subr.bf16.mxu0 %v8861_v22  ;;  %v6961_v43 = vcombine.low %v9998_v29, %v10002_v33  ;;  %v2559_v9 = vshrl.u32 %v7110_v42, 16  ;;  %v2562_v52 = vshll.u32 %v7110_v42, 16  ;;  %v2575_v16 = vor.u32 %v2574_v39, %v10019_v4  ;;  %v8882_v42 = vld [vmem:[%s9514_s11 + $0x60] sm:$0xff]  }
 0x104   : >> { %8042 = vmatmul.mubr.bf16.gmra.mrb[12].mxu0 %v7067_v57  ;;  %7932 = vmatpush3.bf16.msra.mxu1 %v8862_v20  ;;  %v2561_v51 = vrot.slane %v2559_v9, 4  ;;  %v2564_v55 = vrot.slane %v2562_v52, 5  ;;  %v2578_v20 = vshll.u32 %v10013_v44, 16  ;;  %v2596_v57 = vshrl.u32 %v10022_v53, 16 }
 0x105   : >> { %8058 = vmatpush3.bf16.msra.mxu0 %v8861_v22  ;;  %8061 = vmatprep.mubr.bf16.mxu0 %v8864_v46  ;;  %v7116_v22 = vld [vmem:[%s9514_s11 + $0x30] sm:$0xf]  ;;  %v10049_v46 = vrot.slane %v2592_v19, 5  ;;  %v10067_v52 = vrot.slane %v2616_v31, 5  ;;  %v10102_v19 = vld [vmem:[%s9514_s11 + $0x44] sm:$0x1] }
 0x106   : >> { %8059 = vmatprep.subr.bf16.mxu0 %v8863_v35  ;;  %7949 = vmatprep.subr.bf16.mxu1 %v8865_v24  ;;  %v2565_v47 = vor.u32 %v2564_v55, %v2561_v51  ;;  %v10042_v54 = vrot.slane %v2578_v20, 5  ;;  %v2610_v30 = vshll.u32 %v7116_v22, 16  ;;  %v2598_v32 = vrot.slane %v2596_v57, 4  ;;  %v8881_v51 = vld [vmem:[#allocation6 + $0x1e8] sm:$0xff]   ;;  %v8883_v55 = vld [vmem:[#allocation6 + $0xf0] sm:$0xff]  }
 0x107   : >> { %7934 = vmatmul.mubr.bf16.vlgmr.msra.gmra.mrb[0].mxu1 %v6955_v6  ;;  %v7119_v6 = vld [vmem:[%s9514_s11 + $0x3c] sm:$0xf] }
 0x108   : >> { %7950 = vmatpush3.bf16.msra.mxu1 %v8865_v24  ;;  %7937 = vmatprep.mubr.bf16.mxu1 %v6956_v37  ;;  %v10045_v17 = vrot.slane %v2565_v47, 4  ;;  %v10054_v24 = vrot.slane %v2575_v16, 4  ;;  %v2612_v9 = vrot.slane %v2610_v30, 5  ;;  %v2599_v60 = vor.u32 %v2598_v32, %v10049_v46 }
 0x109   : >> { %8060 = vmatpush3.bf16.msra.mxu0 %v8863_v35  ;;  %7951 = vmatprep.subr.bf16.mxu1 %v8868_v62  ;;  %v2585_v35 = vrot.slane %v2583_v25, 4  ;;  %v2631_v50 = vshrl.u32 %v7119_v6, 16  ;;  %v2634_v21 = vshll.u32 %v7119_v6, 16  ;;  %v8885_v25 = vld [vmem:[#allocation6 + $0x1f0] sm:$0xff]  }
 0x10a   : >> { %8077 = vmatprep.subr.bf16.mxu0 %v8867_v23  ;;  %v2571_v3 = vsel %vm9544_vm7, %v10045_v17, %v10019_v4  ;;  %v2581_v36 = vsel %vm9544_vm7, %v10054_v24, %v10042_v54  ;;  %v8886_v4 = vld [vmem:[#allocation6 + $0xf8] sm:$0xff]   ;;  %v10095_v47 = vrot.slane %v2599_v60, 4  ;;  %v10108_v54 = vld [vmem:[%s9514_s11 + $0x50] sm:$0x1]  ;;  %v10120_v24 = vld [vmem:[%s9514_s11 + $0x58] sm:$0xf] }
 0x10b   : >> { %v2589_v37 = vor.u32 %v2588_v1, %v2585_v35  ;;  %v2633_v57 = vrot.slane %v2631_v50, 4  ;;  %v8887_v17 = vld [vmem:[#allocation6 + $0x1f8] sm:$0xff]   ;;  %v7134_v30 = vcombine.low %v2571_v3, %v2581_v36  ;;  %v2674_v32 = vshll.u32 %v10108_v54, 16 }
 0x10c   : >> { %8062 = vmatmul.mubr.bf16.vlgmr.msra.gmra.mrb[0].mxu0 %v8866_v15  ;;  %7952 = vmatpush3.bf16.msra.mxu1 %v8868_v62  ;;  %v10060_v62 = vld [vmem:[%s9514_s11 + $0x40] sm:$0xf]  ;;  %v2622_v15 = vrot.slane %v2620_v8, 4  ;;  %v2650_v8 = vshll.u32 %v10102_v19, 16  ;;  %v10134_v50 = vld [vmem:[%s9514_s11 + $0x64] sm:$0xf] }
 0x10d   : >> { %8078 = vmatpush3.bf16.msra.mxu0 %v8867_v23  ;;  %8065 = vmatprep.mubr.bf16.mxu0 %v8870_v27  ;;  %v8878_v23 = vld [vmem:[%s9514_s11 + $0x54] sm:$0xff]   ;;  %v2626_v27 = vshll.u32 %v10052_v49, 16  ;;  %v2640_v38 = vshll.u32 %v10060_v62, 16  ;;  %v7128_v60 = vld [vmem:[%s9514_s11 + $0x60] sm:$0xf] }
 0x10e   : >> { %8079 = vmatprep.subr.bf16.mxu0 %v8869_v5  ;;  %7953 = vmatprep.subr.bf16.mxu1 %v8871_v41 }
 0x10f   : >> { %7938 = vmatmul.mubr.bf16.gmra.mrb[4].mxu1 %v6957_v14  ;;  %v2607_v14 = vshrl.u32 %v7116_v22, 16 }
 0x110   : >> { %7954 = vmatpush3.bf16.msra.mxu1 %v8871_v41  ;;  %7941 = vmatprep.mubr.bf16.mxu1 %v6958_v34  ;;  %v8880_v34 = vld [vmem:[#allocation6 + $0xe8] sm:$0xff]   ;;  %v10078_v41 = vld [vmem:[%s9514_s11 + $0x4c] sm:$0xf] }
 0x111   : >> { %8080 = vmatpush3.bf16.msra.mxu0 %v8869_v5  ;;  %7955 = vmatprep.subr.bf16.mxu1 %v8874_v12  ;;  %v10056_v58 = vrot.slane %v2607_v14, 4  ;;  %v7122_v5 = vld [vmem:[%s9514_s11 + $0x48] sm:$0xf]  ;;  %v2664_v20 = vshll.u32 %v10078_v41, 16  ;;  %v2668_v39 = vshrl.u32 %v10078_v41, 16  ;;  %v8884_v14 = vld [vmem:[%s9514_s11 + $0x6c] sm:$0xff]  }
 0x112   : >> { %8081 = vmatprep.subr.bf16.mxu0 %v8873_v40 }
 0x113   : >> { %v2613_v22 = vor.u32 %v2612_v9, %v10056_v58  ;;  %v10113_v26 = vrot.slane %v2664_v20, 5  ;;  %v8889_v58 = vld [vmem:[%s9514_s11 + $0x18] sm:$0xff]  }
 0x114   : >> { %8066 = vmatmul.mubr.bf16.gmra.mrb[4].mxu0 %v8872_v56  ;;  %7956 = vmatpush3.bf16.msra.mxu1 %v8874_v12  ;;  %v2658_v12 = vshll.u32 %v7122_v5, 16  ;;  %v2623_v56 = vor.u32 %v2622_v15, %v10067_v52 }
 0x115   : >> { %8082 = vmatpush3.bf16.msra.mxu0 %v8873_v40  ;;  %8069 = vmatprep.mubr.bf16.mxu0 %v8876_v63  ;;  %v2655_v40 = vshrl.u32 %v7122_v5, 16  ;;  %v2636_v63 = vrot.slane %v2634_v21, 5  ;;  %v2614_v31 = vrot.slane %v2613_v22, 4  ;;  %v8892_v21 = vld [vmem:[%s9514_s11 + $0x24] sm:$0xff]   ;;  %v2692_v5 = vshrl.u32 %v10120_v24, 16 }
 0x116   : >> { %8083 = vmatprep.subr.bf16.mxu0 %v8875_v10  ;;  %7957 = vmatprep.subr.bf16.mxu1 %v8877_v61  ;;  %v2660_v1 = vrot.slane %v2658_v12, 5  ;;  %v2624_v29 = vrot.slane %v2623_v56, 4  ;;  %v2716_v12 = vshrl.u32 %v10134_v50, 16  ;;  %v10156_v22 = vld [vmem:[%s9514_s11 + $0x5c] sm:$0x1] }
 0x117   : >> { %7942 = vmatmul.mubr.bf16.gmra.mrb[8].mxu1 %v6959_v7  ;;  %v2644_v7 = vshrl.u32 %v10060_v62, 16  ;;  %v2657_v35 = vrot.slane %v2655_v40, 4  ;;  %v2637_v33 = vor.u32 %v2636_v63, %v2633_v57  ;;  %v2712_v40 = vshll.u32 %v10134_v50, 16  ;;  %v7131_v63 = vld [vmem:[%s9514_s11 + $0x6c] sm:$0xf] }
 0x118   : >> { %7958 = vmatpush3.bf16.msra.mxu1 %v8877_v61  ;;  %7945 = vmatprep.mubr.bf16.mxu1 %v6960_v28  ;;  %v10088_v28 = vrot.slane %v2589_v37, 4  ;;  %v10104_v61 = vrot.slane %v2640_v38, 5  ;;  %v2605_v37 = vsel %vm9544_vm7, %v10095_v47, %v10090_v11  ;;  %v10140_v38 = vrot.slane %v2650_v8, 5  ;;  %v10153_v47 = vld [vmem:[#allocation6 + $0x210] sm:$0xff]  }
 0x119   : >> { %8084 = vmatpush3.bf16.msra.mxu0 %v8875_v10  ;;  %7959 = vmatprep.subr.bf16.mxu1 %v8880_v34  ;;  %v10099_v10 = vrot.slane %v2626_v27, 5  ;;  %v2646_v16 = vrot.slane %v2644_v7, 4  ;;  %v2688_v7 = vshll.u32 %v10120_v24, 16  ;;  %v2638_v3 = vrot.slane %v2637_v33, 4 }
 0x11a   : >> { %8085 = vmatprep.subr.bf16.mxu0 %v8879_v59  ;;  %v2595_v6 = vsel %vm9544_vm7, %v10088_v28, %v10049_v46  ;;  %v2619_v46 = vsel %vm9544_vm7, %v2614_v31, %v10067_v52  ;;  %v10149_v28 = vrot.slane %v2674_v32, 5  ;;  %v2703_v52 = vshrl.u32 %v7128_v60, 16 }
 0x11b   : >> { %v2706_v11 = vshll.u32 %v7128_v60, 16  ;;  %v10158_v56 = vrot.slane %v2688_v7, 5  ;;  %v2643_v31 = vsel %vm9544_vm7, %v2638_v3, %v10104_v61  ;;  %v2727_v33 = vshrl.u32 %v7131_v63, 16 }
 0x11c   : >> { %8070 = vmatmul.mubr.bf16.gmra.mrb[8].mxu0 %v8878_v23  ;;  %7960 = vmatpush3.bf16.msra.mxu1 %v8880_v34  ;;  %v2670_v34 = vrot.slane %v2668_v39, 4  ;;  %v8890_v23 = vld [vmem:[#allocation6 + $0x200] sm:$0xff]  }
 0x11d   : >> { %8086 = vmatpush3.bf16.msra.mxu0 %v8879_v59  ;;  %8073 = vmatprep.mubr.bf16.mxu0 %v8882_v42  ;;  %v7125_v59 = vld [vmem:[%s9514_s11 + $0x54] sm:$0xf]  ;;  %v2661_v42 = vor.u32 %v2660_v1, %v2657_v35  ;;  %v2708_v35 = vrot.slane %v2706_v11, 5  ;;  %v10165_v1 = vrot.slane %v2712_v40, 5 }
 0x11e   : >> { %8087 = vmatprep.subr.bf16.mxu0 %v8881_v51  ;;  %7961 = vmatprep.subr.bf16.mxu1 %v8883_v55  ;;  %v2671_v9 = vor.u32 %v2670_v34, %v10113_v26  ;;  %v2679_v15 = vshrl.u32 %v7125_v59, 16  ;;  %v2682_v27 = vshll.u32 %v7125_v59, 16  ;;  %v2718_v34 = vrot.slane %v2716_v12, 4  ;;  %v10175_v59 = vld [vmem:[%s9514_s11 + $0x68] sm:$0x1] }
 0x11f   : >> { %7946 = vmatmul.mubr.bf16.gmra.mrb[12].mxu1 %v6961_v43  ;;  %v2647_v43 = vor.u32 %v2646_v16, %v10104_v61  ;;  %v2662_v20 = vrot.slane %v2661_v42, 4  ;;  %v10163_v16 = vld [vmem:[%s9514_s11 + $0x70] sm:$0xf]  ;;  %v10181_v61 = vld [vmem:[#allocation6 + $0x218] sm:$0xff]   ;;  %v2698_v42 = vshll.u32 %v10156_v22, 16 }
 0x120   : >> { %7962 = vmatpush3.bf16.msra.mxu1 %v8883_v55  ;;  %7965 = vmatprep.mubr.bf16.mxu1 %v8888_v2  ;;  %v2629_v55 = vsel %vm9544_vm7, %v2624_v29, %v10099_v10  ;;  %v2672_v39 = vrot.slane %v2671_v9, 4  ;;  %v7135_v2 = vcombine.low %v2595_v6, %v2605_v37  ;;  %v2694_v10 = vrot.slane %v2692_v5, 4  ;;  %v8896_v29 = vld [vmem:[%s9514_s11 + $0x3c] sm:$0xff]  }
 0x121   : >> { %8088 = vmatpush3.bf16.msra.mxu0 %v8881_v51  ;;  %7963 = vmatprep.subr.bf16.mxu1 %v8886_v4  ;;  %v10144_v51 = vld [vmem:[#allocation6 + $0x208] sm:$0xff]   ;;  %v2648_v36 = vrot.slane %v2647_v43, 4  ;;  %v7136_v57 = vcombine.low %v2619_v46, %v2629_v55  ;;  %v2730_v43 = vshll.u32 %v7131_v63, 16  ;;  %v2736_v32 = vshll.u32 %v10163_v16, 16 }
 0x122   : >> { %8089 = vmatprep.subr.bf16.mxu0 %v8885_v25  ;;  %v2667_v6 = vsel %vm9544_vm7, %v2662_v20, %v10113_v26  ;;  %v2695_v37 = vor.u32 %v2694_v10, %v10158_v56  ;;  %v2677_v9 = vsel %vm9544_vm7, %v2672_v39, %v10149_v28  ;;  %v2700_v3 = vrot.slane %v2698_v42, 5  ;;  %v7154_v20 = vld [vmem:[%s9514_s11 + $0x48] sm:$0xe]  ;;  %v8899_v63 = vld [vmem:[#allocation6 + $0x228] sm:$0xff]  }
 0x123   : >> { %v2732_v46 = vrot.slane %v2730_v43, 5  ;;  %v7138_v5 = vcombine.low %v2667_v6, %v2677_v9  ;;  %v3022_v28 = vrot.slane %v10078_v41, 5  ;;  %v8897_v39 = vld [vmem:[%s9514_s11 + $0x48] sm:$0xff]   ;;  %v8902_v6 = vld [vmem:[#allocation6 + $0x230] sm:$0xff]   ;;  %v3032_v9 = vrot.slane %v10156_v22, 5 }
 0x124   : >> { %8074 = vmatmul.mubr.bf16.gmra.mrb[12].mxu0 %v8884_v14  ;;  %7964 = vmatpush3.bf16.msra.mxu1 %v8886_v4  ;;  %v2684_v4 = vrot.slane %v2682_v27, 5  ;;  %v2705_v14 = vrot.slane %v2703_v52, 4  ;;  %v2722_v27 = vshll.u32 %v10175_v59, 16  ;;  %v2696_v55 = vrot.slane %v2695_v37, 4  ;;  %v8898_v52 = vld [vmem:[#allocation6 + $0x220] sm:$0xff]  }
 0x125   : >> { %8090 = vmatpush3.bf16.msra.mxu0 %v8885_v25  ;;  %8093 = vmatprep.mubr.bf16.mxu0 %v7134_v30  ;;  %v2681_v25 = vrot.slane %v2679_v15, 4  ;;  %v8893_v30 = vld [vmem:[%s9514_s11 + $0x30] sm:$0xff]   ;;  %v2719_v15 = vor.u32 %v2718_v34, %v10165_v1  ;;  %v3025_v34 = vrot.slane %v10108_v54, 5  ;;  %v7156_v37 = vld [vmem:[%s9514_s11 + $0x60] sm:$0xe] }
 0x126   : >> { %8091 = vmatprep.subr.bf16.mxu0 %v8887_v17  ;;  %8429 = vmatprep.subr.bf16.mxu1 %v8890_v23  ;;  %v2724_v12 = vrot.slane %v2722_v27, 5 }
 0x127   : >> { %7966 = vmatmul.mubr.bf16.vlgmr.msra.gmra.mrb[0].mxu1 %v8889_v58  ;;  %v2685_v8 = vor.u32 %v2684_v4, %v2681_v25  ;;  %v2740_v58 = vshrl.u32 %v10163_v16, 16  ;;  %v2720_v40 = vrot.slane %v2719_v15, 4  ;;  %v8900_v4 = vld [vmem:[%s9514_s11 + $0x54] sm:$0xff]  }
 0x128   : >> { %8437 = vmatpush3.bf16.msra.mxu1 %v8890_v23  ;;  %7969 = vmatprep.mubr.bf16.mxu1 %v8892_v21  ;;  %v2729_v21 = vrot.slane %v2727_v33, 4 }
 0x129   : >> { %8092 = vmatpush3.bf16.msra.mxu0 %v8887_v17  ;;  %8430 = vmatprep.subr.bf16.mxu1 %v10144_v51  ;;  %v2653_v17 = vsel %vm9544_vm7, %v2648_v36, %v10140_v38  ;;  %v2686_v60 = vrot.slane %v2685_v8, 4  ;;  %v10196_v38 = vrot.slane %v2736_v32, 5  ;;  %v2742_v7 = vrot.slane %v2740_v58, 4  ;;  %v10201_v36 = vld [vmem:[%s9514_s11 + $0x74] sm:$0x1] }
 0x12a   : >> { %8109 = vmatprep.subr.bf16.mxu0 %v8890_v23  ;;  %v7137_v26 = vcombine.low %v2643_v31, %v2653_v17  ;;  %v2733_v41 = vor.u32 %v2732_v46, %v2729_v21  ;;  %v2746_v10 = vshll.u32 %v10201_v36, 16  ;;  %v2997_v8 = vrot.slane %v10013_v44, 5  ;;  %v7155_v44 = vld [vmem:[%s9514_s11 + $0x54] sm:$0xe]  ;;  %v8903_v21 = vld [vmem:[#allocation6 + $0x238] sm:$0xff]  }
 0x12b   : >> { %v2691_v25 = vsel %vm9544_vm7, %v2686_v60, %v10158_v56  ;;  %v3036_v58 = vrot.slane %v10134_v50, 5  ;;  %v7151_v60 = vld [vmem:[%s9514_s11 + $0x24] sm:$0xe]  ;;  %v7163_v22 = vrot.slane %v7155_v44, 9  ;;  %v3001_v46 = vrot.slane %v10022_v53, 5 }
 0x12c   : >> { %8094 = vmatmul.mubr.bf16.vlgmr.msra.gmra.mrb[0].mxu0 %v7135_v2  ;;  %8438 = vmatpush3.bf16.msra.mxu1 %v10144_v51  ;;  %v2743_v2 = vor.u32 %v2742_v7, %v10196_v38  ;;  %v2748_v43 = vrot.slane %v2746_v10, 5  ;;  %v7164_v7 = vrot.slane %v7156_v37, 9 }
 0x12d   : >> { %8110 = vmatpush3.bf16.msra.mxu0 %v8890_v23  ;;  %8097 = vmatprep.mubr.bf16.mxu0 %v7136_v57  ;;  %v2709_v23 = vor.u32 %v2708_v35, %v2705_v14  ;;  %v7150_v57 = vld [vmem:[%s9514_s11 + $0x18] sm:$0xe]  ;;  %v7162_v14 = vrot.slane %v7154_v20, 9  ;;  %v3024_v35 = vrot.slane %v3022_v28, 4 }
 0x12e   : >> { %8111 = vmatprep.subr.bf16.mxu0 %v10144_v51  ;;  %8431 = vmatprep.subr.bf16.mxu1 %v10153_v47  ;;  %v7158_v31 = vrot.slane %v7150_v57, 9  ;;  %v2744_v33 = vrot.slane %v2743_v2, 4  ;;  %v3037_v20 = vsel %vm9784_vm10, %v7164_v7, %v3036_v58 }
 0x12f   : >> { %7970 = vmatmul.mubr.bf16.gmra.mrb[4].mxu1 %v8893_v30  ;;  %v2710_v11 = vrot.slane %v2709_v23, 4  ;;  %v2725_v30 = vsel %vm9544_vm7, %v2720_v40, %v2724_v12  ;;  %v3023_v32 = vsel %vm9784_vm10, %v7162_v14, %v3022_v28  ;;  %v8901_v23 = vld [vmem:[%s9514_s11 + $0x60] sm:$0xff]   ;;  %v3003_v12 = vrot.slane %v3001_v46, 4 }
 0x130   : >> { %8439 = vmatpush3.bf16.msra.mxu1 %v10153_v47  ;;  %7973 = vmatprep.mubr.bf16.mxu1 %v8896_v29  ;;  %v2734_v29 = vrot.slane %v2733_v41, 4  ;;  %v2749_v50 = vsel %vm9544_vm7, %v2744_v33, %v2748_v43  ;;  %v3011_v41 = vrot.slane %v10052_v49, 5  ;;  %v3015_v14 = vrot.slane %v10060_v62, 5 }
 0x131   : >> { %8112 = vmatpush3.bf16.msra.mxu0 %v10144_v51  ;;  %8432 = vmatprep.subr.bf16.mxu1 %v10181_v61  ;;  %v2994_v51 = vrot.slane %v10008_v18, 5  ;;  %v2701_v18 = vsel %vm9544_vm7, %v2696_v55, %v2700_v3  ;;  %v2715_v56 = vsel %vm9544_vm7, %v2710_v11, %v10165_v1  ;;  %v3039_v55 = vrot.slane %v10175_v59, 5  ;;  %v7152_v11 = vld [vmem:[%s9514_s11 + $0x30] sm:$0xe] }
 0x132   : >> { %8113 = vmatprep.subr.bf16.mxu0 %v10153_v47  ;;  %v7139_v54 = vcombine.low %v2691_v25, %v2701_v18  ;;  %v7140_v1 = vcombine.low %v2715_v56, %v2725_v30  ;;  %v2739_v27 = vsel %vm9544_vm7, %v2734_v29, %v10196_v38  ;;  %v3008_v38 = vrot.slane %v10038_v45, 5 }
 0x133   : >> { %v2996_v17 = vrot.slane %v2994_v51, 4  ;;  %v7159_v3 = vrot.slane %v7151_v60, 9  ;;  %v3043_v59 = vrot.slane %v10163_v16, 5  ;;  %v3004_v45 = vrot.slane %v10025_v0, 5 }
 0x134   : >> { %8098 = vmatmul.mubr.bf16.gmra.mrb[4].mxu0 %v7137_v26  ;;  %8440 = vmatpush3.bf16.msra.mxu1 %v10181_v61  ;;  %v7160_v25 = vrot.slane %v7152_v11, 9  ;;  %v3046_v0 = vrot.slane %v10201_v36, 5 }
 0x135   : >> { %8114 = vmatpush3.bf16.msra.mxu0 %v10153_v47  ;;  %8101 = vmatprep.mubr.bf16.mxu0 %v7138_v5  ;;  %v3029_v47 = vrot.slane %v10120_v24, 5  ;;  %v3026_v24 = vsel %vm9784_vm10, %v3024_v35, %v3025_v34  ;;  %v2998_v15 = vsel %vm9784_vm10, %v2996_v17, %v2997_v8  ;;  %v3038_v5 = vrot.slane %v3036_v58, 4  ;;  %v7153_v34 = vld [vmem:[%s9514_s11 + $0x3c] sm:$0xe] }
 0x136   : >> { %8115 = vmatprep.subr.bf16.mxu0 %v10181_v61  ;;  %8433 = vmatprep.subr.bf16.mxu1 %v8898_v52  ;;  %v7170_v26 = vcombine.low %v3023_v32, %v3026_v24  ;;  %v3045_v57 = vrot.slane %v3043_v59, 4  ;;  %v3002_v18 = vsel %vm9784_vm10, %v7159_v3, %v3001_v46  ;;  %v3009_v49 = vsel %vm9784_vm10, %v7160_v25, %v3008_v38 }
 0x137   : >> { %7974 = vmatmul.mubr.bf16.gmra.mrb[8].mxu1 %v8897_v39  ;;  %v3031_v42 = vrot.slane %v3029_v47, 4  ;;  %v3030_v53 = vsel %vm9784_vm10, %v7163_v22, %v3029_v47  ;;  %v3040_v39 = vsel %vm9784_vm10, %v3038_v5, %v3039_v55  ;;  %v7161_v62 = vrot.slane %v7153_v34, 9 }
 0x138   : >> { %8441 = vmatpush3.bf16.msra.mxu1 %v8898_v52  ;;  %7977 = vmatprep.mubr.bf16.mxu1 %v8900_v4  ;;  %v3010_v4 = vrot.slane %v3008_v38, 4  ;;  %v7172_v16 = vcombine.low %v3037_v20, %v3040_v39  ;;  %v3047_v30 = vsel %vm9784_vm10, %v3045_v57, %v3046_v0  ;;  %v3018_v17 = vrot.slane %v10102_v19, 5 }
 0x139   : >> { %8116 = vmatpush3.bf16.msra.mxu0 %v10181_v61  ;;  %8434 = vmatprep.subr.bf16.mxu1 %v8899_v63  ;;  %v2995_v61 = vsel %vm9784_vm10, %v7158_v31, %v2994_v51  ;;  %v3033_v28 = vsel %vm9784_vm10, %v3031_v42, %v3032_v9  ;;  %v7157_v51 = vld [vmem:[%s9514_s11 + $0x6c] sm:$0xe]  ;;  %v3017_v31 = vrot.slane %v3015_v14, 4 }
 0x13a   : >> { %8117 = vmatprep.subr.bf16.mxu0 %v8898_v52  ;;  %v7166_v40 = vcombine.low %v2995_v61, %v2998_v15  ;;  %v7171_v2 = vcombine.low %v3030_v53, %v3033_v28  ;;  %v7165_v10 = vrot.slane %v7157_v51, 9  ;;  %v3012_v35 = vsel %vm9784_vm10, %v3010_v4, %v3011_v41 }
 0x13b   : >> { %v7168_v47 = vcombine.low %v3009_v49, %v3012_v35  ;;  %v3019_v29 = vsel %vm9784_vm10, %v3017_v31, %v3018_v17 }
 0x13c   : >> { %8102 = vmatmul.mubr.bf16.gmra.mrb[8].mxu0 %v7139_v54  ;;  %8442 = vmatpush3.bf16.msra.mxu1 %v8899_v63  ;;  %v3044_v56 = vsel %vm9784_vm10, %v7165_v10, %v3043_v59  ;;  %v3016_v54 = vsel %vm9784_vm10, %v7161_v62, %v3015_v14  ;;  %v10303_v59 = vld [vmem:[%s11459_s2] ss:$0 sm:$0xff] }
 0x13d   : >> { %8118 = vmatpush3.bf16.msra.mxu0 %v8898_v52  ;;  %8105 = vmatprep.mubr.bf16.mxu0 %v7140_v1  ;;  %v7141_v52 = vcombine.low %v2739_v27, %v2749_v50  ;;  %v7173_v8 = vcombine.low %v3044_v56, %v3047_v30  ;;  %v7169_v33 = vcombine.low %v3016_v54, %v3019_v29 }
 0x13e   : >> { %8119 = vmatprep.subr.bf16.mxu0 %v8899_v63  ;;  %8435 = vmatprep.subr.bf16.mxu1 %v8902_v6 }
 0x13f   : >> { %7978 = vmatmul.mubr.bf16.gmra.mrb[12].mxu1 %v8901_v23 }
 0x140   : >> { %8443 = vmatpush3.bf16.msra.mxu1 %v8902_v6  ;;  %8133 = vmatprep.mubr.bf16.mxu1 %v7170_v26 }
 0x141   : >> { %8120 = vmatpush3.bf16.msra.mxu0 %v8899_v63  ;;  %8436 = vmatprep.subr.bf16.mxu1 %v8903_v21  ;;  %v3005_v63 = vsel %vm9784_vm10, %v3003_v12, %v3004_v45 }
 0x142   : >> { %8121 = vmatprep.subr.bf16.mxu0 %v8902_v6  ;;  %v7167_v36 = vcombine.low %v3002_v18, %v3005_v63 }
 0x144   : >> { %8106 = vmatmul.mubr.bf16.gmra.mrb[12].mxu0 %v7141_v52  ;;  %8444 = vmatpush3.bf16.msra.mxu1 %v8903_v21 }
 0x145   : >> { %8122 = vmatpush3.bf16.msra.mxu0 %v8902_v6  ;;  %8125 = vmatprep.mubr.bf16.mxu0 %v7166_v40 }
 0x146   : >> { %8123 = vmatprep.subr.bf16.mxu0 %v8903_v21 }
 0x147   : >> { %8134 = vmatmul.mubr.bf16.vlgmr.msra.gmra.mrb[16].mxu1 %v7171_v2 }
 0x148   : >> { %8137 = vmatprep.mubr.bf16.mxu1 %v7172_v16 }
 0x149   : >> { %8124 = vmatpush3.bf16.msra.mxu0 %v8903_v21 }
 0x14c   : >> { %8126 = vmatmul.mubr.bf16.vlgmr.msra.gmra.mrb[0].mxu0 %v7167_v36 }
 0x14d   : >> { %8129 = vmatprep.mubr.bf16.mxu0 %v7168_v47 }
 0x14f   : >> { %8138 = vmatmul.mubr.bf16.gmra.mrb[20].mxu1 %v7173_v8 }
 0x154   : >> { %8130 = vmatmul.mubr.bf16.gmra.mrb[4].mxu0 %v7169_v33 }
 0x1fa   : >> { %v7967_v43 = vpop.f32.mrb[0].mxu1 }
 0x1fb   : >> { %v1485_v1 = vpop.f32.mrb[1].mxu1 }
 0x1fc   : >> { %v7968_v32 = vpop.f32.mrb[2].mxu1 }
 0x1fd   : >> { %v10284_v24 = vpop.f32.mrb[3].mxu1 }
 0x202   : >> { %v10286_v44 = vpop.f32.mrb[4].mxu1 }
 0x203   : >> { %v10288_v19 = vpop.f32.mrb[5].mxu1 }
 0x204   : >> { %v10290_v58 = vpop.f32.mrb[6].mxu1 }
 0x205   : >> { %v10292_v6 = vpop.f32.mrb[7].mxu1 }
 0x20a   : >> { %v7975_v37 = vpop.f32.mrb[8].mxu1 }
 0x20b   : >> { %v1517_v42 = vpop.f32.mrb[9].mxu1 }
 0x20c   : >> { %v7976_v9 = vpop.f32.mrb[10].mxu1 }
 0x20d   : >> { %v1520_v23 = vpop.f32.mrb[11].mxu1 }
 0x20f   : >> { %v8103_v61 = vpop.f32.mrb[8].mxu0 }
 0x210   : >> { %v8453_v15 = vadd.f32 %v8103_v61, %v7975_v37  ;;  %v2913_v27 = vpop.f32.mrb[9].mxu0 }
 0x211   : >> { %v8455_v50 = vadd.f32 %v2913_v27, %v1517_v42  ;;  %v8104_v26 = vpop.f32.mrb[10].mxu0 }
 0x212   : >> { %v8457_v60 = vadd.f32 %v8104_v26, %v7976_v9  ;;  %v2916_v22 = vpop.f32.mrb[11].mxu0  ;;  %v7979_v21 = vpop.f32.mrb[12].mxu1 }
 0x213   : >> { %v8459_v46 = vadd.f32 %v2916_v22, %v1520_v23  ;;  %v1533_v7 = vpop.f32.mrb[13].mxu1 }
 0x214   : >> { %v7980_v5 = vpop.f32.mrb[14].mxu1 }
 0x215   : >> { %v1536_v55 = vpop.f32.mrb[15].mxu1 }
 0x217   : >> { %v8107_v38 = vpop.f32.mrb[12].mxu0 }
 0x218   : >> { %v10294_v3 = vadd.f32 %v8107_v38, %v7979_v21  ;;  %v2929_v28 = vpop.f32.mrb[13].mxu0 }
 0x219   : >> { %v10296_v11 = vadd.f32 %v2929_v28, %v1533_v7  ;;  %v8108_v52 = vpop.f32.mrb[14].mxu0 }
 0x21a   : >> { %v10298_v40 = vadd.f32 %v8108_v52, %v7980_v5  ;;  %v2932_v53 = vpop.f32.mrb[15].mxu0  ;;  %v8135_v12 = vpop.f32.mrb[16].mxu1 }
 0x21b   : >> { %v10305_v45 = vadd.f32 %v2932_v53, %v1536_v55  ;;  %v8454_v20 = vadd.f32 %v8453_v15, %v8135_v12  ;;  %v3211_v39 = vpop.f32.mrb[17].mxu1  ;;  %v7221_v53 = vld [vmem:[%s10333_s30 + $0x3c] sm:$0xf] }
 0x21c   : >> { %v8456_v51 = vadd.f32 %v8455_v50, %v3211_v39  ;;  %v8136_v25 = vpop.f32.mrb[18].mxu1 }
 0x21d   : >> { %v3275_v4 = vadd.f32 %v8454_v20, %v10303_v59  ;;  %v8458_v41 = vadd.f32 %v8457_v60, %v8136_v25  ;;  %v3214_v2 = vpop.f32.mrb[19].mxu1 }
 0x21e   : >> { %v3273_v16 = vadd.f32 %v8456_v51, %v10303_v59  ;;  %v8460_v10 = vadd.f32 %v8459_v46, %v3214_v2  ;;  %v7226_v46 = vld [vmem:[%s10333_s30 + $0x48] sm:$0xf] }
 0x21f   : >> { %v8127_v57 = vpop.f32.mrb[0].mxu0  ;;  %v3291_v0 = vmax.f32 %v3275_v4, 0.0  ;;  %v3276_v18 = vadd.f32 %v8458_v41, %v10303_v59 }
 0x220   : >> { %v8445_v63 = vadd.f32 %v8127_v57, %v7967_v43  ;;  %v3179_v14 = vpop.f32.mrb[1].mxu0  ;;  %v3289_v49 = vmax.f32 %v3273_v16, 0.0  ;;  %v10311_v35 = vadd.f32 %v8460_v10, %v10303_v59 }
 0x221   : >> { %v7556_v34 = vpack.c.bf16 %v3291_v0, %v3291_v0  ;;  %v8446_v36 = vadd.f32 %v3179_v14, %v1485_v1  ;;  %v8128_v56 = vpop.f32.mrb[2].mxu0  ;;  %v3292_v30 = vmax.f32 %v3276_v18, 0.0  ;;  %v7229_v0 = vld [vmem:[%s10333_s30 + $0x50] sm:$0x1] }
 0x222   : >> { %v3267_v47 = vadd.f32 %v8445_v63, %v10303_v59  ;;  %v7554_v62 = vpack.c.bf16 %v3289_v49, %v3289_v49  ;;  %v8447_v31 = vadd.f32 %v8128_v56, %v7968_v32  ;;  %v3182_v17 = vpop.f32.mrb[3].mxu0  ;;  %v3290_v8 = vmax.f32 %v10311_v35, 0.0  ;;  %v10315_v54 = vpop.f32.mrb[20].mxu1  ;;  %v7206_v56 = vld [vmem:[%s10333_s30 + $0x18] sm:$0xf] }
 0x223   : >> { %v3433_v29 = vshrl.u32 %v7556_v34, 16  ;;  %v3436_v33 = vshll.u32 %v7556_v34, 16  ;;  %v3265_v43 = vadd.f32 %v8446_v36, %v10303_v59  ;;  %v7557_v37 = vpack.c.bf16 %v3292_v30, %v3292_v30  ;;  %v10318_v42 = vpop.f32.mrb[21].mxu1 }
 0x224   : >> { %v3283_v1 = vmax.f32 %v3267_v47, 0.0  ;;  %v3416_v9 = vshrl.u32 %v7554_v62, 16  ;;  %v3419_v23 = vshll.u32 %v7554_v62, 16  ;;  %v3268_v61 = vadd.f32 %v8447_v31, %v10303_v59  ;;  %v10321_v15 = vpop.f32.mrb[22].mxu1 }
 0x225   : >> { %v3435_v32 = vrot.slane %v3433_v29, 7  ;;  %v3281_v27 = vmax.f32 %v3265_v43, 0.0  ;;  %v3441_v50 = vshrl.u32 %v7557_v37, 16  ;;  %v3444_v26 = vshll.u32 %v7557_v37, 16  ;;  %v10323_v60 = vpop.f32.mrb[23].mxu1 }
 0x226   : >> { %v7548_v22 = vpack.c.bf16 %v3283_v1, %v3283_v1  ;;  %v10336_v7 = vrot.slane %v3416_v9, 7  ;;  %v3284_v5 = vmax.f32 %v3268_v61, 0.0  ;;  %v8448_v55 = vadd.f32 %v3182_v17, %v10284_v24 }
 0x227   : >> { %v3438_v38 = vor.u32 %v3436_v33, %v3435_v32  ;;  %v3439_v28 = vrot.slane %v3435_v32, 4  ;;  %v7546_v52 = vpack.c.bf16 %v3281_v27, %v3281_v27  ;;  %v3443_v12 = vrot.slane %v3441_v50, 7  ;;  %v8131_v20 = vpop.f32.mrb[4].mxu0  ;;  %v7201_v33 = vld [vmem:[%s10333_s30 + $0xc] sm:$0xf] }
 0x228   : >> { %v3365_v39 = vshrl.u32 %v7548_v22, 16  ;;  %v3368_v51 = vshll.u32 %v7548_v22, 16  ;;  %v3421_v25 = vor.u32 %v3419_v23, %v10336_v7  ;;  %v3422_v4 = vrot.slane %v10336_v7, 4  ;;  %v3195_v41 = vpop.f32.mrb[5].mxu0  ;;  %v7209_v50 = vld [vmem:[%s10333_s30 + $0x20] sm:$0x1] }
 0x229   : >> { %v3547_v24 = vsel %vm10327_vm13, %v3438_v38, %v7226_v46  ;;  %v3348_v2 = vshrl.u32 %v7546_v52, 16  ;;  %v3351_v16 = vshll.u32 %v7546_v52, 16  ;;  %v7549_v10 = vpack.c.bf16 %v3284_v5, %v3284_v5  ;;  %v8132_v18 = vpop.f32.mrb[6].mxu0 }
 0x22a   : >> { %v3367_v63 = vrot.slane %v3365_v39, 7  ;;  %7227 = vst [vmem:[%s10333_s30 + $0x48] sm:$0xf] %v3547_v24  ;;  %v3540_v14 = vsel %vm10327_vm13, %v3421_v25, %v7221_v53  ;;  %v3446_v49 = vor.u32 %v3444_v26, %v3443_v12  ;;  %v3448_v34 = vrot.slane %v3443_v12, 4  ;;  %v10354_v36 = vpop.f32.mrb[7].mxu0 }
 0x22b   : >> { %v3350_v30 = vrot.slane %v3348_v2, 7  ;;  %7222 = vst [vmem:[%s10333_s30 + $0x3c] sm:$0xf] %v3540_v14  ;;  %v3373_v47 = vshrl.u32 %v7549_v10, 16  ;;  %v3376_v62 = vshll.u32 %v7549_v10, 16  ;;  %v3266_v31 = vadd.f32 %v8448_v55, %v10303_v59 }
 0x22c   : >> { %v3370_v17 = vor.u32 %v3368_v51, %v3367_v63  ;;  %v3371_v29 = vrot.slane %v3367_v63, 4  ;;  %v3447_v43 = vsel %vm10346_vm14, %v3439_v28, %v3446_v49  ;;  %v3551_v1 = vsel %vm9419_vm2, %v3448_v34, %v7229_v0  ;;  %v7224_v2 = vld [vmem:[%s10333_s30 + $0x44] sm:$0x1]  ;;  %v7204_v63 = vld [vmem:[%s10333_s30 + $0x14] sm:$0x1] }
 0x22d   : >> { %v3353_v9 = vor.u32 %v3351_v16, %v3350_v30  ;;  %v3354_v23 = vrot.slane %v3350_v30, 4  ;;  %v3375_v61 = vrot.slane %v3373_v47, 7  ;;  %7228 = vst [vmem:[%s10333_s30 + $0x4c] sm:$0xf] %v3447_v43  ;;  %7230 = vst [vmem:[%s10333_s30 + $0x50] sm:$0x1] %v3551_v1  ;;  %v7555_v26 = vpack.c.bf16 %v3290_v8, %v3290_v8 }
 0x22e   : >> { %v3282_v32 = vmax.f32 %v3266_v31, 0.0  ;;  %v3519_v27 = vsel %vm10327_vm13, %v3370_v17, %v7206_v56  ;;  %v8449_v22 = vadd.f32 %v8131_v20, %v10286_v44  ;;  %v8462_v46 = vadd.f32 %v10294_v3, %v10315_v54 }
 0x22f   : >> { %7207 = vst [vmem:[%s10333_s30 + $0x18] sm:$0xf] %v3519_v27  ;;  %v3512_v5 = vsel %vm10327_vm13, %v3353_v9, %v7201_v33  ;;  %v3378_v55 = vor.u32 %v3376_v62, %v3375_v61  ;;  %v3380_v38 = vrot.slane %v3375_v61, 4  ;;  %v3424_v52 = vshrl.u32 %v7555_v26, 16  ;;  %v7216_v33 = vld [vmem:[%s10333_s30 + $0x30] sm:$0xf] }
 0x230   : >> { %v7547_v28 = vpack.c.bf16 %v3282_v32, %v3282_v32  ;;  %7202 = vst [vmem:[%s10333_s30 + $0xc] sm:$0xf] %v3512_v5  ;;  %v3427_v35 = vshll.u32 %v7555_v26, 16  ;;  %v3271_v8 = vadd.f32 %v8449_v22, %v10303_v59  ;;  %v3279_v44 = vadd.f32 %v8462_v46, %v10303_v59  ;;  %v7236_v32 = vld [vmem:[%s10333_s30 + $0x60] sm:$0xf] }
 0x231   : >> { %v3379_v3 = vsel %vm10346_vm14, %v3371_v29, %v3378_v55  ;;  %v3523_v54 = vsel %vm9419_vm2, %v3380_v38, %v7209_v50  ;;  %v3426_v20 = vrot.slane %v3424_v52, 7  ;;  %v8450_v25 = vadd.f32 %v3195_v41, %v10288_v19 }
 0x232   : >> { %v3356_v53 = vshrl.u32 %v7547_v28, 16  ;;  %v3359_v12 = vshll.u32 %v7547_v28, 16  ;;  %7208 = vst [vmem:[%s10333_s30 + $0x1c] sm:$0xf] %v3379_v3  ;;  %7210 = vst [vmem:[%s10333_s30 + $0x20] sm:$0x1] %v3523_v54  ;;  %v8464_v16 = vadd.f32 %v10296_v11, %v10318_v42  ;;  %v8451_v10 = vadd.f32 %v8132_v18, %v10290_v58 }
 0x233   : >> { %v3287_v39 = vmax.f32 %v3271_v8, 0.0  ;;  %v3295_v51 = vmax.f32 %v3279_v44, 0.0  ;;  %v8466_v0 = vadd.f32 %v10298_v40, %v10321_v15  ;;  %v3429_v14 = vor.u32 %v3427_v35, %v3426_v20  ;;  %v7211_v3 = vld [vmem:[%s10333_s30 + $0x24] sm:$0xf]  ;;  %v7231_v54 = vld [vmem:[%s10333_s30 + $0x54] sm:$0xf] }
 0x234   : >> { %v3358_v24 = vrot.slane %v3356_v53, 7  ;;  %v3431_v49 = vrot.slane %v3426_v20, 4  ;;  %v3269_v30 = vadd.f32 %v8450_v25, %v10303_v59  ;;  %v3277_v11 = vadd.f32 %v8464_v16, %v10303_v59 }
 0x235   : >> { %v7552_v34 = vpack.c.bf16 %v3287_v39, %v3287_v39  ;;  %v7560_v56 = vpack.c.bf16 %v3295_v51, %v3295_v51  ;;  %v3430_v58 = vsel %vm10346_vm14, %v3422_v4, %v3429_v14  ;;  %v3272_v29 = vadd.f32 %v8451_v10, %v10303_v59 }
 0x236   : >> { %v3361_v19 = vor.u32 %v3359_v12, %v3358_v24  ;;  %v3363_v41 = vrot.slane %v3358_v24, 4  ;;  %v3544_v40 = vsel %vm9419_vm2, %v3431_v49, %v7224_v2  ;;  %7223 = vst [vmem:[%s10333_s30 + $0x40] sm:$0xf] %v3430_v58  ;;  %v3285_v31 = vmax.f32 %v3269_v30, 0.0  ;;  %v7219_v49 = vld [vmem:[%s10333_s30 + $0x38] sm:$0x1] }
 0x237   : >> { %v3399_v42 = vshrl.u32 %v7552_v34, 16  ;;  %v3402_v15 = vshll.u32 %v7552_v34, 16  ;;  %7225 = vst [vmem:[%s10333_s30 + $0x44] sm:$0x1] %v3544_v40  ;;  %v3467_v62 = vshrl.u32 %v7560_v56, 16  ;;  %v3470_v7 = vshll.u32 %v7560_v56, 16 }
 0x238   : >> { %v3362_v18 = vsel %vm10346_vm14, %v3354_v23, %v3361_v19  ;;  %v3516_v47 = vsel %vm9419_vm2, %v3363_v41, %v7204_v63  ;;  %v3293_v17 = vmax.f32 %v3277_v11, 0.0  ;;  %v3280_v1 = vadd.f32 %v8466_v0, %v10303_v59  ;;  %v7239_v34 = vld [vmem:[%s10333_s30 + $0x68] sm:$0x1] }
 0x239   : >> { %7203 = vst [vmem:[%s10333_s30 + $0x10] sm:$0xf] %v3362_v18  ;;  %7205 = vst [vmem:[%s10333_s30 + $0x14] sm:$0x1] %v3516_v47  ;;  %v3401_v4 = vrot.slane %v3399_v42, 7  ;;  %v3469_v43 = vrot.slane %v3467_v62, 7  ;;  %v8452_v9 = vadd.f32 %v10354_v36, %v10292_v6  ;;  %v8468_v23 = vadd.f32 %v10305_v45, %v10323_v60 }
 0x23a   : >> { %v7550_v27 = vpack.c.bf16 %v3285_v31, %v3285_v31  ;;  %v7558_v50 = vpack.c.bf16 %v3293_v17, %v3293_v17  ;;  %v3288_v22 = vmax.f32 %v3272_v29, 0.0  ;;  %v3296_v46 = vmax.f32 %v3280_v1, 0.0 }
 0x23b   : >> { %v3404_v61 = vor.u32 %v3402_v15, %v3401_v4  ;;  %v3472_v26 = vor.u32 %v3470_v7, %v3469_v43  ;;  %v3270_v8 = vadd.f32 %v8452_v9, %v10303_v59  ;;  %v3278_v44 = vadd.f32 %v8468_v23, %v10303_v59 }
 0x23c   : >> { %v3382_v55 = vshrl.u32 %v7550_v27, 16  ;;  %v3385_v38 = vshll.u32 %v7550_v27, 16  ;;  %v3450_v28 = vshrl.u32 %v7558_v50, 16  ;;  %v3453_v45 = vshll.u32 %v7558_v50, 16 }
 0x23d   : >> { %v3533_v5 = vsel %vm10327_vm13, %v3404_v61, %v7216_v33  ;;  %v3561_v6 = vsel %vm10327_vm13, %v3472_v26, %v7236_v32  ;;  %v7553_v60 = vpack.c.bf16 %v3288_v22, %v3288_v22  ;;  %v7561_v36 = vpack.c.bf16 %v3296_v46, %v3296_v46  ;;  %v7214_v33 = vld [vmem:[%s10333_s30 + $0x2c] sm:$0x1] }
 0x23e   : >> { %7217 = vst [vmem:[%s10333_s30 + $0x30] sm:$0xf] %v3533_v5  ;;  %7237 = vst [vmem:[%s10333_s30 + $0x60] sm:$0xf] %v3561_v6  ;;  %v3384_v52 = vrot.slane %v3382_v55, 7  ;;  %v3452_v35 = vrot.slane %v3450_v28, 7 }
 0x23f   : >> { %v3407_v53 = vshrl.u32 %v7553_v60, 16  ;;  %v3475_v12 = vshrl.u32 %v7561_v36, 16  ;;  %v3410_v51 = vshll.u32 %v7553_v60, 16  ;;  %v3478_v25 = vshll.u32 %v7561_v36, 16 }
 0x240   : >> { %v3387_v20 = vor.u32 %v3385_v38, %v3384_v52  ;;  %v3455_v39 = vor.u32 %v3453_v45, %v3452_v35  ;;  %v3286_v16 = vmax.f32 %v3270_v8, 0.0  ;;  %v3294_v10 = vmax.f32 %v3278_v44, 0.0 }
 0x241   : >> { %v3409_v24 = vrot.slane %v3407_v53, 7  ;;  %v3477_v2 = vrot.slane %v3475_v12, 7  ;;  %v3405_v0 = vrot.slane %v3401_v4, 4  ;;  %v3473_v63 = vrot.slane %v3469_v43, 4  ;;  %v7234_v43 = vld [vmem:[%s10333_s30 + $0x5c] sm:$0x1] }
 0x242   : >> { %v3526_v59 = vsel %vm10327_vm13, %v3387_v20, %v7211_v3  ;;  %v3554_v14 = vsel %vm10327_vm13, %v3455_v39, %v7231_v54  ;;  %v7551_v11 = vpack.c.bf16 %v3286_v16, %v3286_v16  ;;  %v7559_v58 = vpack.c.bf16 %v3294_v10, %v3294_v10 }
 0x243   : >> { %7212 = vst [vmem:[%s10333_s30 + $0x24] sm:$0xf] %v3526_v59  ;;  %7232 = vst [vmem:[%s10333_s30 + $0x54] sm:$0xf] %v3554_v14  ;;  %v3412_v56 = vor.u32 %v3410_v51, %v3409_v24  ;;  %v3414_v19 = vrot.slane %v3409_v24, 4  ;;  %v3480_v41 = vor.u32 %v3478_v25, %v3477_v2  ;;  %v3482_v30 = vrot.slane %v3477_v2, 4 }
 0x244   : >> { %v3390_v18 = vshrl.u32 %v7551_v11, 16  ;;  %v3458_v47 = vshrl.u32 %v7559_v58, 16  ;;  %v3393_v7 = vshll.u32 %v7551_v11, 16  ;;  %v3461_v31 = vshll.u32 %v7559_v58, 16 }
 0x245   : >> { %v3413_v40 = vsel %vm10346_vm14, %v3405_v0, %v3412_v56  ;;  %v3537_v21 = vsel %vm9419_vm2, %v3414_v19, %v7219_v49  ;;  %v3481_v42 = vsel %vm10346_vm14, %v3473_v63, %v3480_v41  ;;  %v3565_v15 = vsel %vm9419_vm2, %v3482_v30, %v7239_v34 }
 0x246   : >> { %7218 = vst [vmem:[%s10333_s30 + $0x34] sm:$0xf] %v3413_v40  ;;  %7220 = vst [vmem:[%s10333_s30 + $0x38] sm:$0x1] %v3537_v21  ;;  %v3392_v62 = vrot.slane %v3390_v18, 7  ;;  %v3460_v4 = vrot.slane %v3458_v47, 7 }
 0x247   : >> { %7238 = vst [vmem:[%s10333_s30 + $0x64] sm:$0xf] %v3481_v42  ;;  %7240 = vst [vmem:[%s10333_s30 + $0x68] sm:$0x1] %v3565_v15  ;;  %v3388_v17 = vrot.slane %v3384_v52, 4  ;;  %v3456_v29 = vrot.slane %v3452_v35, 4 }
 0x248   : >> { %v3395_v1 = vor.u32 %v3393_v7, %v3392_v62  ;;  %v3397_v9 = vrot.slane %v3392_v62, 4  ;;  %v3463_v23 = vor.u32 %v3461_v31, %v3460_v4  ;;  %v3465_v61 = vrot.slane %v3460_v4, 4  ;;  %397 = sbr.rel (!%p395_p11) target bundleno = 143 (0x8f), region = 133 }
 0x24a   : >> { %v3396_v32 = vsel %vm10346_vm14, %v3388_v17, %v3395_v1  ;;  %v3530_v27 = vsel %vm9419_vm2, %v3397_v9, %v7214_v33  ;;  %v3464_v50 = vsel %vm10346_vm14, %v3456_v29, %v3463_v23  ;;  %v3558_v26 = vsel %vm9419_vm2, %v3465_v61, %v7234_v43 }
 0x24b   : >> { %7213 = vst [vmem:[%s10333_s30 + $0x28] sm:$0xf] %v3396_v32  ;;  %7215 = vst [vmem:[%s10333_s30 + $0x2c] sm:$0x1] %v3530_v27 }
 0x24c   : >> { %7233 = vst [vmem:[%s10333_s30 + $0x58] sm:$0xf] %v3464_v50  ;;  %7235 = vst [vmem:[%s10333_s30 + $0x5c] sm:$0x1] %v3558_v26 }
 0x24f LB: >> { %v8908_v57 = vld [vmem:[#allocation8 + $0x40] sm:$0xff]   ;;  %v8910_v46 = vld [vmem:[#allocation8 + $0x48] sm:$0xff]   ;;  %v8912_v55 = vld [vmem:[#allocation8 + $0x50] sm:$0xff]   ;;  %s7562_s28 = smul.u32 96, %s9180_s7  ;;  %s7563_s26 = sshll.u32 %s9180_s7, 7  ;;  %s9180_s7 = sphi %s10466_s7, %s3572_s7  }
 0x250   : >> { %v8909_v22 = vld [vmem:[#allocation8 + $0x100] sm:$0xff]   ;;  %8141 = vmatprep.subr.bf16.mxu1 %v8908_v57  ;;  %v8911_v5 = vld [vmem:[#allocation8 + $0x108] sm:$0xff]   ;;  %v8913_v38 = vld [vmem:[#allocation8 + $0x110] sm:$0xff]   ;;  %s11352_s16 = scalar_lea.vmem %s9503_s24, %s7563_s26 [#allocation9]  ;;  %s3572_s7 = sadd.s32 1, %s9180_s7  }
 0x251   : >> { %8269 = vmatprep.subr.bf16.mxu0 %v8909_v22  ;;  %8142 = vmatpush3.bf16.msra.mxu1 %v8908_v57  ;;  %v8914_v37 = vld [vmem:[#allocation8 + $0x58] sm:$0xff]   ;;  %v8916_v6 = vld [vmem:[#allocation8 + $0x60] sm:$0xff]   ;;  %v8918_v60 = vld [vmem:[#allocation8 + $0x68] sm:$0xff]   ;;  %s10474_s15 = scalar_lea.vmem [#allocation2], %s7562_s28  ;;  %s11179_s14 = scalar_lea.vmem %s9406_s10, %s7562_s28 [#allocation3] }
 0x252   : >> { %8270 = vmatpush3.bf16.msra.mxu0 %v8909_v22  ;;  %8143 = vmatprep.subr.bf16.mxu1 %v8910_v46  ;;  %v8915_v28 = vld [vmem:[#allocation8 + $0x118] sm:$0xff]   ;;  %v8917_v45 = vld [vmem:[#allocation8 + $0x120] sm:$0xff]   ;;  %v8919_v36 = vld [vmem:[#allocation8 + $0x128] sm:$0xff]   ;;  %p3569_p0 = scmp.ge.s32.totalorder %s3572_s7, 2  }
 0x253   : >> { %8271 = vmatprep.subr.bf16.mxu0 %v8911_v5  ;;  %v10477_v52 = vld [vmem:[%s10474_s15] sm:$0xf]  ;;  %v10480_v35 = vld [vmem:[%s10474_s15 + $0x4] sm:$0xf]  ;;  %v3609_v8 = vld [vmem:[%s10474_s15 + $0x8] sm:$0x1] }
 0x254   : >> { %v3621_v44 = vshrl.u32 %v10477_v52, 16  ;;  %v3624_v3 = vshll.u32 %v10477_v52, 16  ;;  %v3630_v54 = vshll.u32 %v10480_v35, 16  ;;  %v3634_v53 = vshrl.u32 %v10480_v35, 16  ;;  %v7334_v12 = vld [vmem:[%s10474_s15 + $0xc] sm:$0xf] }
 0x255   : >> { %8144 = vmatpush3.bf16.msra.mxu1 %v8910_v46  ;;  %v3640_v20 = vshll.u32 %v3609_v8, 16  ;;  %v10489_v39 = vld [vmem:[%s10474_s15 + $0x10] sm:$0xf]  ;;  %v10492_v51 = vld [vmem:[%s10474_s15 + $0x14] sm:$0x1]  ;;  %v8920_v25 = vld [vmem:[#allocation8 + $0x70] sm:$0xff]  }
 0x256   : >> { %8272 = vmatpush3.bf16.msra.mxu0 %v8911_v5  ;;  %8145 = vmatprep.subr.bf16.mxu1 %v8912_v55  ;;  %v8921_v24 = vld [vmem:[#allocation8 + $0x130] sm:$0xff]   ;;  %v3623_v2 = vrot.slane %v3621_v44, 4  ;;  %v3626_v16 = vrot.slane %v3624_v3, 5  ;;  %v3632_v10 = vrot.slane %v3630_v54, 5  ;;  %v3636_v0 = vrot.slane %v3634_v53, 4  ;;  %v8922_v62 = vld [vmem:[#allocation8 + $0x78] sm:$0xff]  }
 0x257   : >> { %8273 = vmatprep.subr.bf16.mxu0 %v8913_v38  ;;  %v3642_v63 = vrot.slane %v3640_v20, 5  ;;  %v4763_v59 = vshrl.u32 %v7334_v12, 16  ;;  %v4766_v14 = vshll.u32 %v7334_v12, 16  ;;  %v4772_v49 = vshll.u32 %v10489_v39, 16  ;;  %v10496_v34 = vld [vmem:[%s10474_s15 + $0xc] sm:$0xf] }
 0x258   : >> { %v3627_v56 = vor.u32 %v3626_v16, %v3623_v2  ;;  %v3637_v19 = vor.u32 %v3636_v0, %v3632_v10  ;;  %v4776_v41 = vshrl.u32 %v10489_v39, 16  ;;  %v4782_v30 = vshll.u32 %v10492_v51, 16  ;;  %v10501_v11 = vld [vmem:[%s10474_s15 + $0x10] sm:$0xf]  ;;  %v3610_v4 = vld [vmem:[%s10474_s15 + $0x14] sm:$0x1] }
 0x259   : >> { %8146 = vmatpush3.bf16.msra.mxu1 %v8912_v55  ;;  %v4765_v58 = vrot.slane %v4763_v59, 4  ;;  %v4768_v40 = vrot.slane %v4766_v14, 5  ;;  %v4774_v21 = vrot.slane %v4772_v49, 5  ;;  %v3645_v31 = vshrl.u32 %v10496_v34, 16  ;;  %v8923_v33 = vld [vmem:[#allocation8 + $0x138] sm:$0xff]   ;;  %s7564_s8 = sshll.u32 (%p3569_p0), %s9242_s22, 12 }
 0x25a   : >> { %8274 = vmatpush3.bf16.msra.mxu0 %v8913_v38  ;;  %8147 = vmatprep.subr.bf16.mxu1 %v8914_v37  ;;  %v3628_v42 = vrot.slane %v3627_v56, 4  ;;  %v3638_v15 = vrot.slane %v3637_v19, 4  ;;  %v4778_v18 = vrot.slane %v4776_v41, 4  ;;  %v4784_v47 = vrot.slane %v4782_v30, 5  ;;  %v7337_v61 = vld [vmem:[%s10474_s15 + $0x18] sm:$0xf]  ;;  %s11410_s13 = scalar_lea.hbm (%p3569_p0), %s11462_s5, %s7564_s8 }
 0x25b   : >> { %8275 = vmatprep.subr.bf16.mxu0 %v8915_v28  ;;  %v4769_v7 = vor.u32 %v4768_v40, %v4765_v58  ;;  %v3648_v17 = vshll.u32 %v10496_v34, 16  ;;  %v3654_v29 = vshll.u32 %v10501_v11, 16  ;;  %v3658_v23 = vshrl.u32 %v10501_v11, 16  ;;  %v10514_v57 = vld [vmem:[%s10474_s15 + $0x1c] sm:$0xf]  ;;  %v8924_v38 = vld [vmem:[#allocation8] sm:$0xff]  }
 0x25c   : >> { %v3633_v43 = vsel %vm9544_vm7, %v3628_v42, %v3632_v10  ;;  %v3643_v1 = vsel %vm9544_vm7, %v3638_v15, %v3642_v63  ;;  %v4779_v9 = vor.u32 %v4778_v18, %v4774_v21  ;;  %v3647_v50 = vrot.slane %v3645_v31, 4  ;;  %v10538_v49 = vld [vmem:[%s10474_s15 + $0x18] sm:$0xf]  ;;  %v10544_v30 = vld [vmem:[%s10474_s15 + $0x1c] sm:$0xf]  ;;  %s6769_s30 = sshll.u32 (%p3569_p0), %s9503_s24, 4  ;;  %s11413_s30 = int_to_ptr.vmem [resolvable:$true] %s6769_s30 }
 0x25d   : >> { %8148 = vmatpush3.bf16.msra.mxu1 %v8914_v37  ;;  %v7244_v32 = vcombine.low %v3633_v43, %v3643_v1  ;;  %v4770_v27 = vrot.slane %v4769_v7, 4  ;;  %v3650_v26 = vrot.slane %v3648_v17, 5  ;;  %v3656_v46 = vrot.slane %v3654_v29, 5  ;;  %v10517_v37 = vld [vmem:[%s10474_s15 + $0x20] sm:$0x1]  ;;  %s6756_s28 = scalar_lea.sflag (%p3569_p0), [#allocation5], %s9402_s17 }
 0x25e   : >> { %8276 = vmatpush3.bf16.msra.mxu0 %v8915_v28  ;;  %8149 = vmatprep.subr.bf16.mxu1 %v8916_v6  ;;  %v4780_v22 = vrot.slane %v4779_v9, 4  ;;  %v3660_v5 = vrot.slane %v3658_v23, 4  ;;  %v3664_v55 = vshll.u32 %v3610_v4, 16  ;;  %v10519_v28 = vld [vmem:[#allocation8 + $0x140] sm:$0xff]   ;;  %v4787_v54 = vshrl.u32 %v7337_v61, 16  ;;  %p11522_p3 = scmp.ne.s32.totalorder (%p3569_p0), %s11481_s23, 0 }
 0x25f   : >> { %8277 = vmatprep.subr.bf16.mxu0 %v8917_v45  ;;  %8157 = vmatprep.mubr.bf16.mxu1 %v7244_v32  ;;  %v4796_v16 = vshll.u32 %v10514_v57, 16  ;;  %v4800_v10 = vshrl.u32 %v10514_v57, 16  ;;  %v4806_v14 = vshll.u32 %v10517_v37, 16  ;;  %v3611_v58 = vld [vmem:[%s10474_s15 + $0x20] sm:$0x1]  ;;  %v3669_v31 = vshrl.u32 %v10538_v49, 16 }
 0x260   : >> { %v4785_v8 = vsel %vm9544_vm7, %v4780_v22, %v4784_v47  ;;  %v3661_v44 = vor.u32 %v3660_v5, %v3656_v46  ;;  %v3666_v3 = vrot.slane %v3664_v55, 5  ;;  %v4789_v2 = vrot.slane %v4787_v54, 4  ;;  %v8926_v47 = vld [vmem:[#allocation8 + $0x8] sm:$0xff]   ;;  %v10555_v29 = vld [vmem:[%s10474_s15 + $0x28] sm:$0xf]  ;;  %v8928_v55 = vld [vmem:[#allocation8 + $0x10] sm:$0xff]  }
 0x261   : >> { %8150 = vmatpush3.bf16.msra.mxu1 %v8916_v6  ;;  %v4775_v6 = vsel %vm9544_vm7, %v4770_v27, %v4774_v21  ;;  %v4798_v19 = vrot.slane %v4796_v16, 5  ;;  %v4802_v41 = vrot.slane %v4800_v10, 4  ;;  %v3672_v17 = vshll.u32 %v10538_v49, 16  ;;  %v10560_v23 = vld [vmem:[%s10474_s15 + $0x2c] sm:$0x1]  ;;  %s9188_s10 = smov (%p3569_p0), [#allocation9]  }
 0x262   : >> { %8278 = vmatpush3.bf16.msra.mxu0 %v8917_v45  ;;  %8151 = vmatprep.subr.bf16.mxu1 %v8918_v60  ;;  %v3651_v45 = vor.u32 %v3650_v26, %v3647_v50  ;;  %v7358_v53 = vcombine.low %v4775_v6, %v4785_v8  ;;  %v3678_v43 = vshll.u32 %v10544_v30, 16  ;;  %v3682_v1 = vshrl.u32 %v10544_v30, 16  ;;  %s9098_s7 = sshll.u32 (%p3569_p0), %s9188_s10, 4  ;;  %s9099_s7 = int_to_ptr.vmem [resolvable:$false] %s9098_s7 }
 0x263   : >> { %8279 = vmatprep.subr.bf16.mxu0 %v8919_v36  ;;  %v4803_v7 = vor.u32 %v4802_v41, %v4798_v19  ;;  %v3688_v9 = vshll.u32 %v3611_v58, 16  ;;  %v3671_v27 = vrot.slane %v3669_v31, 4  ;;  %v3674_v50 = vrot.slane %v3672_v17, 5  ;;  %v8929_v17 = vld [vmem:[#allocation8 + $0x150] sm:$0xff]   ;;  %s9100_s22 = scalar_lea.vmem (%p3569_p0), %s9099_s7, 8192  ;;  %p9101_p12 = scmp.lt.s32.totalorder (%p3569_p0), %s11413_s30, %s9099_s7 }
 0x264   : >> { %v3652_v12 = vrot.slane %v3651_v45, 4  ;;  %8285 = vmatprep.mubr.bf16.mxu0 %v7358_v53  ;;  %v3680_v22 = vrot.slane %v3678_v43, 5  ;;  %v8927_v45 = vld [vmem:[#allocation8 + $0x148] sm:$0xff]   ;;  %v4820_v53 = vshll.u32 %v10555_v29, 16  ;;  %v4830_v10 = vshll.u32 %v10560_v23, 16 }
 0x265   : >> { %8152 = vmatpush3.bf16.msra.mxu1 %v8918_v60  ;;  %v11471_v60 = vrot.slane %v10501_v11, 5  ;;  %v3690_v5 = vrot.slane %v3688_v9, 5  ;;  %v10590_v9 = vld [vmem:[%s10474_s15 + $0x34] sm:$0xf] }
 0x266   : >> { %8280 = vmatpush3.bf16.msra.mxu0 %v8919_v36  ;;  %8153 = vmatprep.subr.bf16.mxu1 %v8920_v25  ;;  %v4238_v36 = vrot.slane %v3610_v4, 5  ;;  %v3657_v0 = vsel %vm9544_vm7, %v3652_v12, %v3656_v46  ;;  %v4808_v4 = vrot.slane %v4806_v14, 5  ;;  %v3684_v46 = vrot.slane %v3682_v1, 4 }
 0x267   : >> { %8281 = vmatprep.subr.bf16.mxu0 %v8921_v24  ;;  %v4237_v20 = vrot.slane %v11471_v60, 4  ;;  %v4824_v12 = vshrl.u32 %v10555_v29, 16 }
 0x268   : >> { %v3685_v54 = vor.u32 %v3684_v46, %v3680_v22 }
 0x269   : >> { %8154 = vmatpush3.bf16.msra.mxu1 %v8920_v25  ;;  %v4790_v25 = vshll.u32 %v7337_v61, 16  ;;  %v10534_v63 = vsel %vm9784_vm10, %v4237_v20, %v4238_v36  ;;  %v4804_v61 = vrot.slane %v4803_v7, 4  ;;  %v3675_v36 = vor.u32 %v3674_v50, %v3671_v27  ;;  %v10573_v20 = vld [vmem:[%s10474_s15 + $0x28] sm:$0xf] }
 0x26a   : >> { %8282 = vmatpush3.bf16.msra.mxu0 %v8921_v24  ;;  %8155 = vmatprep.subr.bf16.mxu1 %v8922_v62  ;;  %v3662_v24 = vrot.slane %v3661_v44, 4  ;;  %v10568_v44 = vld [vmem:[%s10474_s15 + $0x24] sm:$0xf]  ;;  %v3686_v14 = vrot.slane %v3685_v54, 4  ;;  %v3702_v31 = vshll.u32 %v10573_v20, 16  ;;  %v3706_v1 = vshrl.u32 %v10573_v20, 16 }
 0x26b   : >> { %8283 = vmatprep.subr.bf16.mxu0 %v8923_v33  ;;  %v4792_v59 = vrot.slane %v4790_v25, 5  ;;  %v4809_v6 = vsel %vm9544_vm7, %v4804_v61, %v4808_v4  ;;  %v8930_v25 = vld [vmem:[#allocation8 + $0x18] sm:$0xff]   ;;  %v3693_v41 = vshrl.u32 %v10568_v44, 16 }
 0x26c   : >> { %v3667_v56 = vsel %vm9544_vm7, %v3662_v24, %v3666_v3  ;;  %v3676_v24 = vrot.slane %v3675_v36, 4  ;;  %v3704_v27 = vrot.slane %v3702_v31, 5  ;;  %v10596_v36 = vld [vmem:[%s10474_s15 + $0x38] sm:$0x1] }
 0x26d   : >> { %8156 = vmatpush3.bf16.msra.mxu1 %v8922_v62  ;;  %v7245_v42 = vcombine.low %v3657_v0, %v3667_v56  ;;  %v4793_v15 = vor.u32 %v4792_v59, %v4789_v2  ;;  %v7340_v62 = vld [vmem:[%s10474_s15 + $0x24] sm:$0xf]  ;;  %v10577_v0 = vld [vmem:[%s10474_s15 + $0x2c] sm:$0x1]  ;;  %v7343_v59 = vld [vmem:[%s10474_s15 + $0x30] sm:$0xf] }
 0x26e   : >> { %8284 = vmatpush3.bf16.msra.mxu0 %v8923_v33  ;;  %8173 = vmatprep.subr.bf16.mxu1 %v8924_v38  ;;  %v4811_v8 = vshrl.u32 %v7340_v62, 16  ;;  %v4822_v56 = vrot.slane %v4820_v53, 5  ;;  %v3681_v58 = vsel %vm9544_vm7, %v3676_v24, %v3680_v22  ;;  %v3695_v4 = vrot.slane %v3693_v41, 4  ;;  %v8932_v22 = vld [vmem:[#allocation8 + $0x20] sm:$0xff]   ;;  %v8931_v53 = vld [vmem:[#allocation8 + $0x158] sm:$0xff]  }
 0x26f   : >> { %8301 = vmatprep.subr.bf16.mxu0 %v10519_v28  ;;  %v4794_v33 = vrot.slane %v4793_v15, 4  ;;  %v4832_v15 = vrot.slane %v4830_v10, 5  ;;  %v3712_v50 = vshll.u32 %v10577_v0, 16  ;;  %v4854_v41 = vshll.u32 %v10596_v36, 16 }
 0x270   : >> { %8158 = vmatmul.mubr.bf16.vlgmr.msra.gmra.mrb[0].mxu1 %v7245_v42  ;;  %v4813_v2 = vrot.slane %v4811_v8, 4  ;;  %v4838_v8 = vshll.u32 %v7343_v59, 16 }
 0x271   : >> { %8174 = vmatpush3.bf16.msra.mxu1 %v8924_v38  ;;  %v4799_v26 = vsel %vm9544_vm7, %v4794_v33, %v4798_v19  ;;  %v4814_v38 = vshll.u32 %v7340_v62, 16  ;;  %v4826_v19 = vrot.slane %v4824_v12, 4  ;;  %v3691_v62 = vsel %vm9544_vm7, %v3686_v14, %v3690_v5  ;;  %v10605_v12 = vld [vmem:[%s10474_s15 + $0x34] sm:$0xf] }
 0x272   : >> { %8175 = vmatprep.subr.bf16.mxu1 %v8926_v47  ;;  %v7359_v3 = vcombine.low %v4799_v26, %v4809_v6  ;;  %v7246_v33 = vcombine.low %v3681_v58, %v3691_v62  ;;  %v4835_v26 = vshrl.u32 %v7343_v59, 16  ;;  %v3708_v6 = vrot.slane %v3706_v1, 4  ;;  %v10608_v59 = vld [vmem:[%s10474_s15 + $0x38] sm:$0x1]  ;;  %v8934_v14 = vld [vmem:[#allocation8 + $0x28] sm:$0xff]  }
 0x273   : >> { %v4816_v16 = vrot.slane %v4814_v38, 5  ;;  %v4827_v7 = vor.u32 %v4826_v19, %v4822_v56  ;;  %v4840_v10 = vrot.slane %v4838_v8, 5  ;;  %v4848_v19 = vshrl.u32 %v10590_v9, 16  ;;  %v8935_v8 = vld [vmem:[#allocation8 + $0x168] sm:$0xff]  }
 0x274   : >> { %8286 = vmatmul.mubr.bf16.vlgmr.msra.gmra.mrb[0].mxu0 %v7359_v3  ;;  %8161 = vmatprep.mubr.bf16.mxu1 %v7246_v33  ;;  %v3714_v3 = vrot.slane %v3712_v50, 5  ;;  %v4837_v54 = vrot.slane %v4835_v26, 4  ;;  %v4856_v31 = vrot.slane %v4854_v41, 5  ;;  %v10625_v26 = vld [vmem:[%s10474_s15 + $0x44] sm:$0x1] }
 0x275   : >> { %8176 = vmatpush3.bf16.msra.mxu1 %v8926_v47  ;;  %8302 = vmatpush3.bf16.msra.mxu0 %v10519_v28  ;;  %v4817_v42 = vor.u32 %v4816_v16, %v4813_v2  ;;  %v3696_v47 = vshll.u32 %v10568_v44, 16  ;;  %v4828_v61 = vrot.slane %v4827_v7, 4  ;;  %v3709_v16 = vor.u32 %v3708_v6, %v3704_v27  ;;  %v10635_v41 = vld [vmem:[%s10474_s15 + $0x40] sm:$0xf] }
 0x276   : >> { %8177 = vmatprep.subr.bf16.mxu1 %v8928_v55  ;;  %8303 = vmatprep.subr.bf16.mxu0 %v8927_v45  ;;  %v4841_v62 = vor.u32 %v4840_v10, %v4837_v54  ;;  %v3736_v6 = vshll.u32 %v10608_v59, 16 }
 0x277   : >> { %v4818_v43 = vrot.slane %v4817_v42, 4  ;;  %v3698_v28 = vrot.slane %v3696_v47, 5  ;;  %v4833_v38 = vsel %vm9544_vm7, %v4828_v61, %v4832_v15  ;;  %v7346_v42 = vld [vmem:[%s10474_s15 + $0x3c] sm:$0xf]  ;;  %v8933_v15 = vld [vmem:[#allocation8 + $0x160] sm:$0xff]  }
 0x278   : >> { %v4842_v61 = vrot.slane %v4841_v62, 4  ;;  %v4862_v10 = vshll.u32 %v7346_v42, 16 }
 0x279   : >> { %8178 = vmatpush3.bf16.msra.mxu1 %v8928_v55  ;;  %8304 = vmatpush3.bf16.msra.mxu0 %v8927_v45  ;;  %v4823_v46 = vsel %vm9544_vm7, %v4818_v43, %v4822_v56  ;;  %v3699_v5 = vor.u32 %v3698_v28, %v3695_v4  ;;  %v10599_v55 = vld [vmem:[%s10474_s15 + $0x30] sm:$0xf]  ;;  %v4844_v45 = vshll.u32 %v10590_v9, 16  ;;  %v4850_v4 = vrot.slane %v4848_v19, 4  ;;  %v10619_v28 = vld [vmem:[%s10474_s15 + $0x40] sm:$0xf] }
 0x27a   : >> { %8179 = vmatprep.subr.bf16.mxu1 %v8930_v25  ;;  %8305 = vmatprep.subr.bf16.mxu0 %v8929_v17  ;;  %v7360_v24 = vcombine.low %v4823_v46, %v4833_v38  ;;  %v3717_v58 = vshrl.u32 %v10599_v55, 16  ;;  %v3720_v7 = vshll.u32 %v10599_v55, 16  ;;  %v3726_v43 = vshll.u32 %v10605_v12, 16  ;;  %v8936_v38 = vld [vmem:[#allocation8 + $0x30] sm:$0xff]  }
 0x27b   : >> { %v3700_v2 = vrot.slane %v3699_v5, 4  ;;  %v4846_v56 = vrot.slane %v4844_v45, 5  ;;  %v4868_v19 = vshll.u32 %v10619_v28, 16  ;;  %v4864_v62 = vrot.slane %v4862_v10, 5 }
 0x27c   : >> { %8289 = vmatprep.mubr.bf16.mxu0 %v7360_v24  ;;  %v3719_v33 = vrot.slane %v3717_v58, 4  ;;  %v3722_v50 = vrot.slane %v3720_v7, 5  ;;  %v3728_v5 = vrot.slane %v3726_v43, 5  ;;  %v4859_v24 = vshrl.u32 %v7346_v42, 16  ;;  %v8938_v42 = vld [vmem:[#allocation8 + $0x38] sm:$0xff]  }
 0x27d   : >> { %8180 = vmatpush3.bf16.msra.mxu1 %v8930_v25  ;;  %v3705_v47 = vsel %vm9544_vm7, %v3700_v2, %v3704_v27  ;;  %v3710_v25 = vrot.slane %v3709_v16, 4  ;;  %8306 = vmatpush3.bf16.msra.mxu0 %v8929_v17  ;;  %v3730_v27 = vshrl.u32 %v10605_v12, 16  ;;  %v4851_v46 = vor.u32 %v4850_v4, %v4846_v56  ;;  %v10631_v2 = vld [vmem:[%s10474_s15 + $0x3c] sm:$0xf] }
 0x27e   : >> { %8181 = vmatprep.subr.bf16.mxu1 %v8932_v22  ;;  %8307 = vmatprep.subr.bf16.mxu0 %v8931_v53  ;;  %v3723_v54 = vor.u32 %v3722_v50, %v3719_v33  ;;  %v3738_v16 = vrot.slane %v3736_v6, 5  ;;  %v4870_v7 = vrot.slane %v4868_v19, 5  ;;  %v4878_v4 = vshll.u32 %v10625_v26, 16 }
 0x27f   : >> { %v3715_v1 = vsel %vm9544_vm7, %v3710_v25, %v3714_v3  ;;  %v4847_v3 = vsel %vm9544_vm7, %v4842_v61, %v4846_v56  ;;  %v3732_v45 = vrot.slane %v3730_v27, 4  ;;  %v4861_v25 = vrot.slane %v4859_v24, 4  ;;  %v10644_v27 = vld [vmem:[%s10474_s15 + $0x44] sm:$0x1] }
 0x280   : >> { %v7247_v17 = vcombine.low %v3705_v47, %v3715_v1  ;;  %v3724_v58 = vrot.slane %v3723_v54, 4  ;;  %11508 = vst [vmem:[#allocation16_spill] sm:$0xff] %v10644_v27  ;;  %v7349_v54 = vld [vmem:[%s10474_s15 + $0x48] sm:$0xf] }
 0x281   : >> { %8182 = vmatpush3.bf16.msra.mxu1 %v8932_v22  ;;  %8308 = vmatpush3.bf16.msra.mxu0 %v8931_v53  ;;  %v4852_v22 = vrot.slane %v4851_v46, 4  ;;  %v3733_v47 = vor.u32 %v3732_v45, %v3728_v5  ;;  %v4872_v53 = vshrl.u32 %v10619_v28, 16  ;;  %v4865_v50 = vor.u32 %v4864_v62, %v4861_v25  ;;  %v8937_v46 = vld [vmem:[#allocation8 + $0x170] sm:$0xff]   ;;  %v10654_v45 = vld [vmem:[%s10474_s15 + $0x4c] sm:$0xf] }
 0x282   : >> { %8183 = vmatprep.subr.bf16.mxu1 %v8934_v14  ;;  %8162 = vmatmul.mubr.bf16.gmra.mrb[4].mxu1 %v7247_v17  ;;  %v3729_v43 = vsel %vm9544_vm7, %v3724_v58, %v3728_v5  ;;  %v3744_v17 = vshll.u32 %v10631_v2, 16  ;;  %v10657_v58 = vld [vmem:[%s10474_s15 + $0x50] sm:$0x1]  ;;  %v10663_v62 = vld [vmem:[%s10474_s15 + $0x48] sm:$0xf] }
 0x283   : >> { %8309 = vmatprep.subr.bf16.mxu0 %v8933_v15  ;;  %v4857_v56 = vsel %vm9544_vm7, %v4852_v22, %v4856_v31  ;;  %v3734_v1 = vrot.slane %v3733_v47, 4  ;;  %v4874_v61 = vrot.slane %v4872_v53, 4  ;;  %v3741_v31 = vshrl.u32 %v10631_v2, 16  ;;  %v10659_v47 = vld [vmem:[#allocation8 + $0x80] sm:$0xff]  }
 0x284   : >> { %v7361_v33 = vcombine.low %v4847_v3, %v4857_v56  ;;  %v3750_v3 = vshll.u32 %v10635_v41, 16  ;;  %v4866_v22 = vrot.slane %v4865_v50, 4  ;;  %v3746_v19 = vrot.slane %v3744_v17, 5 }
 0x285   : >> { %8184 = vmatpush3.bf16.msra.mxu1 %v8934_v14  ;;  %8310 = vmatpush3.bf16.msra.mxu0 %v8933_v15  ;;  %v4880_v14 = vrot.slane %v4878_v4, 5  ;;  %v3739_v5 = vsel %vm9544_vm7, %v3734_v1, %v3738_v16  ;;  %v4875_v6 = vor.u32 %v4874_v61, %v4870_v7  ;;  %v3754_v15 = vshrl.u32 %v10635_v41, 16  ;;  %v10668_v1 = vld [vmem:[%s10474_s15 + $0x4c] sm:$0xf]  ;;  %v8939_v61 = vld [vmem:[#allocation8 + $0x178] sm:$0xff]  }
 0x286   : >> { %8185 = vmatprep.subr.bf16.mxu1 %v8936_v38  ;;  %8311 = vmatprep.subr.bf16.mxu0 %v8935_v8  ;;  %v7248_v24 = vcombine.low %v3729_v43, %v3739_v5  ;;  %v3743_v10 = vrot.slane %v3741_v31, 4  ;;  %v3752_v25 = vrot.slane %v3750_v3, 5  ;;  %v3760_v56 = vshll.u32 %v10644_v27, 16 }
 0x287   : >> { %8290 = vmatmul.mubr.bf16.gmra.mrb[4].mxu0 %v7361_v33  ;;  %v4876_v16 = vrot.slane %v4875_v6, 4  ;;  %v3756_v53 = vrot.slane %v3754_v15, 4  ;;  %v4883_v33 = vshrl.u32 %v7349_v54, 16  ;;  %v4886_v43 = vshll.u32 %v7349_v54, 16  ;;  %v10674_v15 = vld [vmem:[%s10474_s15 + $0x50] sm:$0x1] }
 0x288   : >> { %8165 = vmatprep.mubr.bf16.mxu1 %v7248_v24  ;;  %v3747_v4 = vor.u32 %v3746_v19, %v3743_v10  ;;  %v4892_v17 = vshll.u32 %v10654_v45, 16  ;;  %11509 = vst [vmem:[#allocation17_spill] sm:$0xff] %v10674_v15  ;;  %v7352_v10 = vld [vmem:[%s10474_s15 + $0x54] sm:$0xf]  ;;  %v3784_v60 = vshll.u32 %v10674_v15, 16 }
 0x289   : >> { %8186 = vmatpush3.bf16.msra.mxu1 %v8936_v38  ;;  %8312 = vmatpush3.bf16.msra.mxu0 %v8935_v8  ;;  %v4871_v38 = vsel %vm9544_vm7, %v4866_v22, %v4870_v7  ;;  %v4881_v50 = vsel %vm9544_vm7, %v4876_v16, %v4880_v14  ;;  %v3757_v31 = vor.u32 %v3756_v53, %v3752_v25  ;;  %v3762_v8 = vrot.slane %v3760_v56, 5  ;;  %v10685_v56 = vld [vmem:[%s10474_s15 + $0x58] sm:$0xf] }
 0x28a   : >> { %8187 = vmatprep.subr.bf16.mxu1 %v8938_v42  ;;  %8313 = vmatprep.subr.bf16.mxu0 %v8937_v46  ;;  %v7362_v5 = vcombine.low %v4871_v38, %v4881_v50  ;;  %v3748_v6 = vrot.slane %v3747_v4, 4  ;;  %v4885_v7 = vrot.slane %v4883_v33, 4  ;;  %v4888_v3 = vrot.slane %v4886_v43, 5  ;;  %v10687_v38 = vld [vmem:[#allocation8 + $0x180] sm:$0xff]  }
 0x28b   : >> { %v3758_v54 = vrot.slane %v3757_v31, 4  ;;  %v4894_v24 = vrot.slane %v4892_v17, 5  ;;  %v4896_v22 = vshrl.u32 %v10654_v45, 16  ;;  %v4902_v14 = vshll.u32 %v10657_v58, 16 }
 0x28c   : >> { %8293 = vmatprep.mubr.bf16.mxu0 %v7362_v5  ;;  %v4889_v19 = vor.u32 %v4888_v3, %v4885_v7  ;;  %v3765_v16 = vshrl.u32 %v10663_v62, 16  ;;  %v3768_v53 = vshll.u32 %v10663_v62, 16  ;;  %v3774_v43 = vshll.u32 %v10668_v1, 16  ;;  %v10693_v5 = vld [vmem:[%s10474_s15 + $0x5c] sm:$0x1] }
 0x28d   : >> { %8188 = vmatpush3.bf16.msra.mxu1 %v8938_v42  ;;  %8314 = vmatpush3.bf16.msra.mxu0 %v8937_v46  ;;  %v3753_v42 = vsel %vm9544_vm7, %v3748_v6, %v3752_v25  ;;  %v3763_v4 = vsel %vm9544_vm7, %v3758_v54, %v3762_v8  ;;  %v4898_v33 = vrot.slane %v4896_v22, 4  ;;  %v4904_v46 = vrot.slane %v4902_v14, 5 }
 0x28e   : >> { %8205 = vmatprep.subr.bf16.mxu1 %v10659_v47  ;;  %8315 = vmatprep.subr.bf16.mxu0 %v8939_v61  ;;  %v7249_v50 = vcombine.low %v3753_v42, %v3763_v4  ;;  %v4890_v25 = vrot.slane %v4889_v19, 4  ;;  %v3767_v31 = vrot.slane %v3765_v16, 4  ;;  %v3770_v17 = vrot.slane %v3768_v53, 5  ;;  %v10700_v42 = vld [vmem:[%s10474_s15 + $0x54] sm:$0xf] }
 0x28f   : >> { %v4899_v6 = vor.u32 %v4898_v33, %v4894_v24  ;;  %v3776_v7 = vrot.slane %v3774_v43, 5  ;;  %v3778_v3 = vshrl.u32 %v10668_v1, 16  ;;  %v4907_v22 = vshrl.u32 %v7352_v10, 16  ;;  %11510 = vst [vmem:[#allocation18_spill] sm:$0xff] %v10700_v42  ;;  %v10705_v33 = vld [vmem:[%s10474_s15 + $0x58] sm:$0xf] }
 0x290   : >> { %8166 = vmatmul.mubr.bf16.gmra.mrb[8].mxu1 %v7249_v50  ;;  %v4895_v8 = vsel %vm9544_vm7, %v4890_v25, %v4894_v24  ;;  %v3771_v54 = vor.u32 %v3770_v17, %v3767_v31  ;;  %v4910_v14 = vshll.u32 %v7352_v10, 16  ;;  %v3786_v53 = vrot.slane %v3784_v60, 5 }
 0x291   : >> { %8316 = vmatpush3.bf16.msra.mxu0 %v8939_v61  ;;  %v4900_v19 = vrot.slane %v4899_v6, 4  ;;  %v3780_v16 = vrot.slane %v3778_v3, 4  ;;  %v4916_v4 = vshll.u32 %v10685_v56, 16  ;;  %v4909_v43 = vrot.slane %v4907_v22, 4  ;;  %v10712_v6 = vld [vmem:[%s10474_s15 + $0x5c] sm:$0x1] }
 0x292   : >> { %8333 = vmatprep.subr.bf16.mxu0 %v10687_v38  ;;  %v3772_v61 = vrot.slane %v3771_v54, 4  ;;  %v4912_v50 = vrot.slane %v4910_v14, 5  ;;  %v4920_v24 = vshrl.u32 %v10685_v56, 16  ;;  %v4926_v17 = vshll.u32 %v10693_v5, 16  ;;  %11511 = vst [vmem:[#allocation19_spill] sm:$0xff] %v10712_v6 }
 0x293   : >> { %v4905_v10 = vsel %vm9544_vm7, %v4900_v19, %v4904_v46  ;;  %v3781_v25 = vor.u32 %v3780_v16, %v3776_v7  ;;  %v4918_v31 = vrot.slane %v4916_v4, 5  ;;  %v7355_v22 = vld [vmem:[%s10474_s15 + $0x60] sm:$0xf]  ;;  %v3789_v21 = vshrl.u32 %v10700_v42, 16  ;;  %v10720_v19 = vld [vmem:[%s10474_s15 + $0x64] sm:$0xf] }
 0x294   : >> { %v7363_v60 = vcombine.low %v4895_v8, %v4905_v10  ;;  %v3777_v3 = vsel %vm9544_vm7, %v3772_v61, %v3776_v7  ;;  %v4913_v32 = vor.u32 %v4912_v50, %v4909_v43  ;;  %v4922_v54 = vrot.slane %v4920_v24, 4  ;;  %v10728_v10 = vld [vmem:[%s10474_s15 + $0x68] sm:$0x1] }
 0x295   : >> { %v3782_v14 = vrot.slane %v3781_v25, 4  ;;  %v4928_v40 = vrot.slane %v4926_v17, 5  ;;  %v3792_v46 = vshll.u32 %v10700_v42, 16  ;;  %v3798_v8 = vshll.u32 %v10705_v33, 16 }
 0x296   : >> { %8294 = vmatmul.mubr.bf16.gmra.mrb[8].mxu0 %v7363_v60  ;;  %v4914_v16 = vrot.slane %v4913_v32, 4  ;;  %v4923_v4 = vor.u32 %v4922_v54, %v4918_v31  ;;  %v3802_v7 = vshrl.u32 %v10705_v33, 16  ;;  %v3791_v43 = vrot.slane %v3789_v21, 4  ;;  %v7374_v54 = vld [vmem:[%s10474_s15 + $0xc] sm:$0xe] }
 0x297   : >> { %v3787_v61 = vsel %vm9544_vm7, %v3782_v14, %v3786_v53  ;;  %v3794_v50 = vrot.slane %v3792_v46, 5  ;;  %v3808_v24 = vshll.u32 %v10712_v6, 16  ;;  %v3800_v32 = vrot.slane %v3798_v8, 5 }
 0x298   : >> { %v7250_v25 = vcombine.low %v3777_v3, %v3787_v61  ;;  %v4919_v17 = vsel %vm9544_vm7, %v4914_v16, %v4918_v31  ;;  %v4924_v60 = vrot.slane %v4923_v4, 4  ;;  %v3804_v15 = vrot.slane %v3802_v7, 4 }
 0x299   : >> { %v3795_v18 = vor.u32 %v3794_v50, %v3791_v43  ;;  %v3810_v27 = vrot.slane %v3808_v24, 5  ;;  %v4931_v42 = vshrl.u32 %v7355_v22, 16  ;;  %v4934_v53 = vshll.u32 %v7355_v22, 16  ;;  %v7375_v50 = vld [vmem:[%s10474_s15 + $0x18] sm:$0xe] }
 0x29a   : >> { %8169 = vmatprep.mubr.bf16.mxu1 %v7250_v25  ;;  %v4929_v21 = vsel %vm9544_vm7, %v4924_v60, %v4928_v40  ;;  %v4940_v14 = vshll.u32 %v10720_v19, 16  ;;  %v4944_v3 = vshrl.u32 %v10720_v19, 16  ;;  %v3805_v16 = vor.u32 %v3804_v15, %v3800_v32  ;;  %v7376_v24 = vld [vmem:[%s10474_s15 + $0x24] sm:$0xe] }
 0x29b   : >> { %v7364_v46 = vcombine.low %v4919_v17, %v4929_v21  ;;  %v3796_v31 = vrot.slane %v3795_v18, 4  ;;  %v4933_v4 = vrot.slane %v4931_v42, 4  ;;  %v4936_v8 = vrot.slane %v4934_v53, 5 }
 0x29c   : >> { %v4942_v61 = vrot.slane %v4940_v14, 5  ;;  %v4946_v7 = vrot.slane %v4944_v3, 4  ;;  %v4950_v43 = vshll.u32 %v10728_v10, 16  ;;  %v3806_v22 = vrot.slane %v3805_v16, 4 }
 0x29d   : >> { %8297 = vmatprep.mubr.bf16.mxu0 %v7364_v46  ;;  %v3801_v40 = vsel %vm9544_vm7, %v3796_v31, %v3800_v32  ;;  %v7382_v25 = vrot.slane %v7374_v54, 9  ;;  %v5198_v60 = vrot.slane %v10489_v39, 5  ;;  %v4937_v6 = vor.u32 %v4936_v8, %v4933_v4 }
 0x29e   : >> { %v4947_v17 = vor.u32 %v4946_v7, %v4942_v61  ;;  %v4952_v18 = vrot.slane %v4950_v43, 5  ;;  %v7261_v15 = vcombine.low %v10496_v34, %v10501_v11  ;;  %v11512_v42 = vrot.slane %v10514_v57, 5  ;;  %v8944_v57 = vld [vmem:[#allocation8 + $0x88] sm:$0xff]  }
 0x29f   : >> { %v3811_v53 = vsel %vm9544_vm7, %v3806_v22, %v3810_v27  ;;  %v5199_v14 = vsel %vm9784_vm10, %v7382_v25, %v5198_v60  ;;  %v5200_v32 = vrot.slane %v5198_v60, 4  ;;  %v4938_v54 = vrot.slane %v4937_v6, 4  ;;  %v7377_v22 = vld [vmem:[%s10474_s15 + $0x30] sm:$0xe] }
 0x2a0   : >> { %v5207_v21 = vrot.slane %v11512_v42, 4  ;;  %v7251_v3 = vcombine.low %v3801_v40, %v3811_v53  ;;  %v4948_v46 = vrot.slane %v4947_v17, 4  ;;  %v11513_v39 = vrot.slane %v10492_v51, 5 }
 0x2a1   : >> { %v7383_v34 = vrot.slane %v7375_v50, 9  ;;  %v7384_v16 = vrot.slane %v7376_v24, 9  ;;  %v5212_v4 = vrot.slane %v10555_v29, 5  ;;  %v4943_v27 = vsel %vm9544_vm7, %v4938_v54, %v4942_v61  ;;  %v4200_v54 = vld [vmem:[%s10474_s15 + $0xc] sm:$0xe] }
 0x2a2   : >> { %v5202_v31 = vsel %vm9784_vm10, %v5200_v32, %v11513_v39  ;;  %8170 = vmatmul.mubr.bf16.gmra.mrb[12].mxu1 %v7251_v3  ;;  %v4953_v8 = vsel %vm9544_vm7, %v4948_v46, %v4952_v18  ;;  %v11514_v51 = vcombine.low %v10477_v52, %v10480_v35  ;;  %v5215_v50 = vrot.slane %v10560_v23, 5  ;;  %v7378_v23 = vld [vmem:[%s10474_s15 + $0x3c] sm:$0xe]  ;;  %v7379_v32 = vld [vmem:[%s10474_s15 + $0x48] sm:$0xe] }
 0x2a3   : >> { %v7390_v6 = vcombine.low %v5199_v14, %v5202_v31  ;;  %v7365_v7 = vcombine.low %v4943_v27, %v4953_v8  ;;  %v5214_v43 = vrot.slane %v5212_v4, 4  ;;  %v11515_v29 = vrot.slane %v10517_v37, 5  ;;  %v7380_v3 = vld [vmem:[%s10474_s15 + $0x54] sm:$0xe]  ;;  %v8949_v39 = vld [vmem:[#allocation8 + $0x190] sm:$0xff]  }
 0x2a4   : >> { %8189 = vmatprep.mubr.bf16.mxu1 %v11514_v51  ;;  %v11516_v61 = vmov %v11512_v42  ;;  %v5219_v25 = vrot.slane %v10590_v9, 5  ;;  %v7262_v52 = vcombine.low %v10538_v49, %v10544_v30  ;;  %v5213_v35 = vsel %vm9784_vm10, %v7384_v16, %v5212_v4  ;;  %v8945_v9 = vld [vmem:[#allocation8 + $0x188] sm:$0xff]  }
 0x2a5   : >> { %8298 = vmatmul.mubr.bf16.gmra.mrb[12].mxu0 %v7365_v7  ;;  %v5209_v24 = vsel %vm9784_vm10, %v5207_v21, %v11515_v29  ;;  %v5206_v40 = vsel %vm9784_vm10, %v7383_v34, %v11516_v61  ;;  %v5216_v37 = vsel %vm9784_vm10, %v5214_v43, %v5215_v50  ;;  %v5226_v60 = vrot.slane %v10619_v28, 5  ;;  %v8948_v21 = vld [vmem:[#allocation8 + $0x90] sm:$0xff]   ;;  %v10798_v34 = vld [vmem:[%s10474_s15 + $0x8] sm:$0x1]  ;;  %v10815_v7 = vld [vmem:[%s10474_s15 + $0x60] sm:$0xe] }
 0x2a6   : >> { %8317 = vmatprep.mubr.bf16.mxu0 %v7390_v6  ;;  %v7391_v17 = vcombine.low %v5206_v40, %v5209_v24  ;;  %v7385_v18 = vrot.slane %v7377_v22, 9  ;;  %v7392_v42 = vcombine.low %v5213_v35, %v5216_v37  ;;  %v5221_v49 = vrot.slane %v5219_v25, 4  ;;  %v8951_v43 = vld [vmem:[#allocation8 + $0x198] sm:$0xff]   ;;  %v8954_v61 = vld [vmem:[#allocation8 + $0xa0] sm:$0xff]  }
 0x2a7   : >> { %v5222_v30 = vrot.slane %v10596_v36, 5  ;;  %v7386_v53 = vrot.slane %v7378_v23, 9  ;;  %v5228_v14 = vrot.slane %v5226_v60, 4  ;;  %v5229_v28 = vrot.slane %v10625_v26, 5  ;;  %v4199_v22 = vld [vmem:[%s10474_s15] sm:$0xe] }
 0x2a8   : >> { %v7277_v46 = vrot.slane %v4200_v54, 9  ;;  %v7263_v36 = vcombine.low %v10568_v44, %v10573_v20  ;;  %v5240_v31 = vrot.slane %v10685_v56, 5  ;;  %v11517_v4 = vrot.slane %v10501_v11, 5  ;;  %v8957_v54 = vld [vmem:[#allocation8 + $0x1a8] sm:$0xff]  }
 0x2a9   : >> { %v5223_v26 = vsel %vm9784_vm10, %v5221_v49, %v5222_v30  ;;  %v5227_v44 = vsel %vm9784_vm10, %v7386_v53, %v5226_v60  ;;  %v5230_v16 = vsel %vm9784_vm10, %v5228_v14, %v5229_v28  ;;  %v7264_v56 = vcombine.low %v10599_v55, %v10605_v12 }
 0x2aa   : >> { %8190 = vmatmul.mubr.bf16.vlgmr.msra.gmra.mrb[0].mxu1 %v7261_v15  ;;  %v5233_v15 = vrot.slane %v10654_v45, 5  ;;  %v4231_v45 = vrot.slane %v10798_v34, 5  ;;  %v10809_v27 = vsel %vm9784_vm10, %v7277_v46, %v11517_v4  ;;  %v7387_v8 = vrot.slane %v7379_v32, 9 }
 0x2ab   : >> { %8206 = vmatpush3.bf16.msra.mxu1 %v10659_v47  ;;  %8193 = vmatprep.mubr.bf16.mxu1 %v7262_v52  ;;  %v5220_v47 = vsel %vm9784_vm10, %v7385_v18, %v5219_v25  ;;  %v5236_v6 = vrot.slane %v10657_v58, 5  ;;  %v7285_v51 = vcombine.low %v10809_v27, %v10534_v63  ;;  %v7388_v29 = vrot.slane %v7380_v3, 9  ;;  %v9005_v58 = vld [vmem:[%s10474_s15 + $0x4] sm:$0xf] }
 0x2ac   : >> { %8207 = vmatprep.subr.bf16.mxu1 %v8944_v57  ;;  %v7393_v11 = vcombine.low %v5220_v47, %v5223_v26  ;;  %v5235_v50 = vrot.slane %v5233_v15, 4  ;;  %v7394_v24 = vcombine.low %v5227_v44, %v5230_v16  ;;  %v5242_v40 = vrot.slane %v5240_v31, 4  ;;  %v4202_v52 = vld [vmem:[%s10474_s15 + $0x24] sm:$0xe]  ;;  %v4203_v47 = vld [vmem:[%s10474_s15 + $0x30] sm:$0xe] }
 0x2ad   : >> { %8318 = vmatmul.mubr.bf16.vlgmr.msra.gmra.mrb[0].mxu0 %v7391_v17  ;;  %v5243_v55 = vrot.slane %v10693_v5, 5  ;;  %v4228_v25 = vrot.slane %v9005_v58, 5  ;;  %v4249_v35 = vrot.slane %v10573_v20, 5  ;;  %v7265_v37 = vcombine.low %v10631_v2, %v10635_v41  ;;  %v8956_v2 = vld [vmem:[#allocation8 + $0xa8] sm:$0xff]   ;;  %v8960_v26 = vld [vmem:[#allocation8 + $0xb0] sm:$0xff]  }
 0x2ae   : >> { %8334 = vmatpush3.bf16.msra.mxu0 %v10687_v38  ;;  %8321 = vmatprep.mubr.bf16.mxu0 %v7392_v42  ;;  %v8950_v38 = vld [vmem:[#allocation8 + $0x98] sm:$0xff]   ;;  %v7279_v23 = vrot.slane %v4202_v52, 9  ;;  %v4252_v60 = vrot.slane %v10577_v0, 5  ;;  %v5234_v5 = vsel %vm9784_vm10, %v7387_v8, %v5233_v15  ;;  %v5241_v17 = vsel %vm9784_vm10, %v7388_v29, %v5240_v31  ;;  %v4204_v44 = vld [vmem:[%s10474_s15 + $0x3c] sm:$0xe]  ;;  %v11519_v8 = vld [vmem:[#allocation16_spill] sm:$0xff] }
 0x2af   : >> { %8335 = vmatprep.subr.bf16.mxu0 %v8945_v9  ;;  %8208 = vmatpush3.bf16.msra.mxu1 %v8944_v57  ;;  %v8955_v57 = vld [vmem:[#allocation8 + $0x1a0] sm:$0xff]   ;;  %v7389_v18 = vrot.slane %v10815_v7, 9  ;;  %v5237_v20 = vsel %vm9784_vm10, %v5235_v50, %v5236_v6  ;;  %v5247_v42 = vrot.slane %v10720_v19, 5  ;;  %v5244_v49 = vsel %vm9784_vm10, %v5242_v40, %v5243_v55  ;;  %v11518_v15 = vld [vmem:[#allocation18_spill] sm:$0xff]  ;;  %v9006_v16 = vld [vmem:[%s10474_s15 + $0x1c] sm:$0xf] }
 0x2b0   : >> { %8209 = vmatprep.subr.bf16.mxu1 %v8948_v21  ;;  %v10837_v0 = vsel %vm9784_vm10, %v7279_v23, %v4249_v35  ;;  %v7276_v30 = vrot.slane %v4199_v22, 9  ;;  %v4259_v14 = vrot.slane %v10608_v59, 5  ;;  %v7266_v19 = vcombine.low %v10663_v62, %v10668_v1  ;;  %v8961_v50 = vld [vmem:[#allocation8 + $0x1b0] sm:$0xff]   ;;  %v8962_v55 = vld [vmem:[#allocation8 + $0xb8] sm:$0xff]  }
 0x2b1   : >> { %v4230_v28 = vrot.slane %v4228_v25, 4  ;;  %v7395_v3 = vcombine.low %v5234_v5, %v5237_v20  ;;  %v7267_v46 = vcombine.low %v11518_v15, %v10705_v33  ;;  %v4263_v59 = vrot.slane %v10635_v41, 5  ;;  %v11520_v58 = vld [vmem:[#allocation17_spill] sm:$0xff]  ;;  %v9007_v52 = vld [vmem:[%s10474_s15 + $0x20] sm:$0x1] }
 0x2b2   : >> { %8336 = vmatpush3.bf16.msra.mxu0 %v8945_v9  ;;  %8194 = vmatmul.mubr.bf16.gmra.mrb[4].mxu1 %v7263_v36  ;;  %v4251_v9 = vrot.slane %v4249_v35, 4  ;;  %v5250_v36 = vrot.slane %v10728_v10, 5  ;;  %v7396_v62 = vcombine.low %v5241_v17, %v5244_v49  ;;  %v7280_v31 = vrot.slane %v4203_v47, 9  ;;  %v8963_v17 = vld [vmem:[#allocation8 + $0x1b8] sm:$0xff]   ;;  %v8968_v47 = vld [vmem:[#allocation8 + $0xc8] sm:$0xff]  }
 0x2b3   : >> { %8337 = vmatprep.subr.bf16.mxu0 %v8949_v39  ;;  %8210 = vmatpush3.bf16.msra.mxu1 %v8948_v21  ;;  %v4256_v21 = vrot.slane %v10605_v12, 5  ;;  %v4242_v4 = vrot.slane %v9006_v16, 5  ;;  %v7281_v10 = vrot.slane %v4204_v44, 9  ;;  %v4266_v41 = vrot.slane %v11519_v8, 5  ;;  %v10934_v8 = vld [vmem:[%s10474_s15 + $0x20] sm:$0x1] }
 0x2b4   : >> { %8211 = vmatprep.subr.bf16.mxu1 %v8950_v38  ;;  %8197 = vmatprep.mubr.bf16.mxu1 %v7264_v56  ;;  %v10844_v53 = vsel %vm9784_vm10, %v4251_v9, %v4252_v60  ;;  %v4265_v56 = vrot.slane %v4263_v59, 4  ;;  %v4229_v6 = vsel %vm9784_vm10, %v7276_v30, %v4228_v25  ;;  %v4232_v7 = vsel %vm9784_vm10, %v4230_v28, %v4231_v45  ;;  %v4205_v60 = vld [vmem:[%s10474_s15 + $0x48] sm:$0xe] }
 0x2b5   : >> { %8322 = vmatmul.mubr.bf16.gmra.mrb[4].mxu0 %v7393_v11  ;;  %v7287_v12 = vcombine.low %v10837_v0, %v10844_v53  ;;  %v4258_v32 = vrot.slane %v4256_v21, 4  ;;  %v4201_v11 = vld [vmem:[%s10474_s15 + $0x18] sm:$0xe]  ;;  %v4270_v45 = vrot.slane %v10668_v1, 5  ;;  %v4273_v25 = vrot.slane %v11520_v58, 5  ;;  %v11521_v30 = vld [vmem:[#allocation19_spill] sm:$0xff] }
 0x2b6   : >> { %8338 = vmatpush3.bf16.msra.mxu0 %v8949_v39  ;;  %8325 = vmatprep.mubr.bf16.mxu0 %v7394_v24  ;;  %v5249_v39 = vrot.slane %v5247_v42, 4  ;;  %v10878_v24 = vsel %vm9784_vm10, %v7281_v10, %v4263_v59  ;;  %v10882_v34 = vsel %vm9784_vm10, %v4265_v56, %v4266_v41  ;;  %v4245_v1 = vrot.slane %v9007_v52, 5  ;;  %v8969_v56 = vld [vmem:[#allocation8 + $0x1c8] sm:$0xff]   ;;  %v7443_v41 = vld [vmem:[%s10474_s15 + $0x24] sm:$0xf]  ;;  %v8979_v53 = vld [vmem:[#allocation8 + $0x1e0] sm:$0xff]  }
 0x2b7   : >> { %8339 = vmatprep.subr.bf16.mxu0 %v8951_v43  ;;  %8212 = vmatpush3.bf16.msra.mxu1 %v8950_v38  ;;  %v10858_v38 = vsel %vm9784_vm10, %v4258_v32, %v4259_v14  ;;  %v7289_v22 = vcombine.low %v10878_v24, %v10882_v34  ;;  %v4272_v35 = vrot.slane %v4270_v45, 4  ;;  %v4244_v23 = vrot.slane %v4242_v4, 4  ;;  %v10945_v58 = vld [vmem:[%s10474_s15 + $0x2c] sm:$0x1]  ;;  %v8974_v52 = vld [vmem:[#allocation8 + $0xd8] sm:$0xff]  }
 0x2b8   : >> { %8213 = vmatprep.subr.bf16.mxu1 %v8954_v61  ;;  %v5251_v40 = vsel %vm9784_vm10, %v5249_v39, %v5250_v36  ;;  %v4277_v5 = vrot.slane %v10705_v33, 5  ;;  %v7282_v9 = vrot.slane %v4205_v60, 9  ;;  %v4280_v14 = vrot.slane %v11521_v30, 5  ;;  %v8967_v36 = vld [vmem:[#allocation8 + $0x1c0] sm:$0xff]  }
 0x2b9   : >> { %v10897_v20 = vsel %vm9784_vm10, %v4272_v35, %v4273_v25  ;;  %v4246_v15 = vsel %vm9784_vm10, %v4244_v23, %v4245_v1  ;;  %v8966_v39 = vld [vmem:[%s10474_s15 + $0x24] sm:$0xff]   ;;  %v5757_v63 = vshrl.u32 %v7443_v41, 16  ;;  %v5760_v27 = vshll.u32 %v7443_v41, 16  ;;  %v8972_v25 = vld [vmem:[%s10474_s15 + $0x3c] sm:$0xff]  }
 0x2ba   : >> { %8340 = vmatpush3.bf16.msra.mxu0 %v8951_v43  ;;  %8198 = vmatmul.mubr.bf16.gmra.mrb[8].mxu1 %v7265_v37  ;;  %v10872_v43 = vsel %vm9784_vm10, %v7280_v31, %v4256_v21  ;;  %v7284_v37 = vcombine.low %v4229_v6, %v4232_v7  ;;  %v4279_v49 = vrot.slane %v4277_v5, 4  ;;  %v10904_v33 = vsel %vm9784_vm10, %v7282_v9, %v4270_v45  ;;  %v8970_v31 = vld [vmem:[%s10474_s15 + $0x30] sm:$0xff]   ;;  %v8971_v6 = vld [vmem:[#allocation8 + $0xd0] sm:$0xff]  }
 0x2bb   : >> { %8341 = vmatprep.subr.bf16.mxu0 %v8955_v57  ;;  %8214 = vmatpush3.bf16.msra.mxu1 %v8954_v61  ;;  %v7288_v29 = vcombine.low %v10872_v43, %v10858_v38  ;;  %v5248_v61 = vsel %vm9784_vm10, %v7389_v18, %v5247_v42  ;;  %v7278_v18 = vrot.slane %v4201_v11, 9  ;;  %v4206_v42 = vld [vmem:[%s10474_s15 + $0x54] sm:$0xe]  ;;  %v7290_v28 = vcombine.low %v10904_v33, %v10897_v20  ;;  %v7446_v9 = vld [vmem:[%s10474_s15 + $0x30] sm:$0xf] }
 0x2bc   : >> { %8215 = vmatprep.subr.bf16.mxu1 %v8956_v2  ;;  %8201 = vmatprep.mubr.bf16.mxu1 %v7266_v19  ;;  %v7283_v21 = vrot.slane %v4206_v42, 9  ;;  %v8965_v19 = vld [vmem:[#allocation8 + $0xc0] sm:$0xff]   ;;  %v5752_v35 = vshll.u32 %v10934_v8, 16  ;;  %v5762_v23 = vrot.slane %v5760_v27, 5  ;;  %v8975_v42 = vld [vmem:[#allocation8 + $0x1d8] sm:$0xff]   ;;  %v8980_v38 = vld [vmem:[#allocation8 + $0xe8] sm:$0xff]  }
 0x2bd   : >> { %8326 = vmatmul.mubr.bf16.gmra.mrb[8].mxu0 %v7395_v3  ;;  %v10914_v3 = vsel %vm9784_vm10, %v4279_v49, %v4280_v14  ;;  %v5781_v14 = vshrl.u32 %v7446_v9, 16 }
 0x2be   : >> { %8342 = vmatpush3.bf16.msra.mxu0 %v8955_v57  ;;  %8329 = vmatprep.mubr.bf16.mxu0 %v7396_v62  ;;  %v7397_v57 = vcombine.low %v5248_v61, %v5251_v40  ;;  %v10910_v32 = vsel %vm9784_vm10, %v7283_v21, %v4277_v5  ;;  %v7440_v62 = vld [vmem:[%s10474_s15 + $0x18] sm:$0xf]  ;;  %v8977_v21 = vld [vmem:[#allocation8 + $0xe0] sm:$0xff]   ;;  %v10966_v0 = vrot.slane %v5752_v35, 5 }
 0x2bf   : >> { %8343 = vmatprep.subr.bf16.mxu0 %v8957_v54  ;;  %8216 = vmatpush3.bf16.msra.mxu1 %v8956_v2  ;;  %v8964_v2 = vld [vmem:[%s10474_s15 + $0x18] sm:$0xff]   ;;  %v5733_v44 = vshrl.u32 %v7440_v62, 16  ;;  %v5736_v16 = vshll.u32 %v7440_v62, 16 }
 0x2c0   : >> { %8217 = vmatprep.subr.bf16.mxu1 %v8960_v26  ;;  %v10979_v62 = vld [vmem:[%s10474_s15 + $0x38] sm:$0x1] }
 0x2c1   : >> { %v5735_v7 = vrot.slane %v5733_v44, 4  ;;  %v5738_v11 = vrot.slane %v5736_v16, 5  ;;  %v5800_v33 = vshll.u32 %v10979_v62, 16 }
 0x2c2   : >> { %8344 = vmatpush3.bf16.msra.mxu0 %v8957_v54  ;;  %8202 = vmatmul.mubr.bf16.gmra.mrb[12].mxu1 %v7267_v46  ;;  %v4243_v54 = vsel %vm9784_vm10, %v7278_v18, %v4242_v4  ;;  %v7291_v46 = vcombine.low %v10910_v32, %v10914_v3  ;;  %v5776_v18 = vshll.u32 %v10945_v58, 16 }
 0x2c3   : >> { %8345 = vmatprep.subr.bf16.mxu0 %v8961_v50  ;;  %8218 = vmatpush3.bf16.msra.mxu1 %v8960_v26  ;;  %v7286_v59 = vcombine.low %v4243_v54, %v4246_v15  ;;  %v10924_v26 = vld [vmem:[%s10474_s15 + $0x1c] sm:$0xf]  ;;  %v5739_v1 = vor.u32 %v5738_v11, %v5735_v7  ;;  %v7452_v7 = vld [vmem:[%s10474_s15 + $0x48] sm:$0xf] }
 0x2c4   : >> { %8219 = vmatprep.subr.bf16.mxu1 %v8962_v55  ;;  %8221 = vmatprep.mubr.bf16.mxu1 %v7284_v37  ;;  %v5742_v4 = vshll.u32 %v10924_v26, 16  ;;  %v5746_v10 = vshrl.u32 %v10924_v26, 16  ;;  %v5759_v37 = vrot.slane %v5757_v63, 4  ;;  %v5829_v24 = vshrl.u32 %v7452_v7, 16 }
 0x2c5   : >> { %8330 = vmatmul.mubr.bf16.gmra.mrb[12].mxu0 %v7397_v57  ;;  %v8976_v57 = vld [vmem:[%s10474_s15 + $0x48] sm:$0xff]   ;;  %v10964_v49 = vrot.slane %v5739_v1, 4  ;;  %v5832_v34 = vshll.u32 %v7452_v7, 16  ;;  %v8991_v7 = vld [vmem:[#allocation8 + $0x208] sm:$0xff]  }
 0x2c6   : >> { %8346 = vmatpush3.bf16.msra.mxu0 %v8961_v50  ;;  %8349 = vmatprep.mubr.bf16.mxu0 %v8964_v2  ;;  %v10938_v50 = vld [vmem:[%s10474_s15 + $0x28] sm:$0xf]  ;;  %v10941_v45 = vrot.slane %v5742_v4, 5  ;;  %v5748_v61 = vrot.slane %v5746_v10, 4  ;;  %v10959_v2 = vld [vmem:[%s10474_s15 + $0x34] sm:$0xf] }
 0x2c7   : >> { %8347 = vmatprep.subr.bf16.mxu0 %v8963_v17  ;;  %8220 = vmatpush3.bf16.msra.mxu1 %v8962_v55  ;;  %v5770_v40 = vshrl.u32 %v10938_v50, 16  ;;  %v8973_v55 = vld [vmem:[#allocation8 + $0x1d0] sm:$0xff]   ;;  %v5790_v54 = vshll.u32 %v10959_v2, 16  ;;  %v5794_v15 = vshrl.u32 %v10959_v2, 16  ;;  %v5783_v4 = vrot.slane %v5781_v14, 4 }
 0x2c8   : >> { %8237 = vmatprep.subr.bf16.mxu1 %v8965_v19 }
 0x2c9   : >> { %v5772_v5 = vrot.slane %v5770_v40, 4  ;;  %v10988_v11 = vrot.slane %v5790_v54, 5  ;;  %v5796_v63 = vrot.slane %v5794_v15, 4  ;;  %v11038_v54 = vld [vmem:[#allocation8 + $0x200] sm:$0xff]  }
 0x2ca   : >> { %8348 = vmatpush3.bf16.msra.mxu0 %v8963_v17  ;;  %8222 = vmatmul.mubr.bf16.vlgmr.msra.gmra.mrb[0].mxu1 %v7285_v51  ;;  %v5766_v51 = vshll.u32 %v10938_v50, 16  ;;  %v5749_v17 = vor.u32 %v5748_v61, %v10941_v45  ;;  %v10993_v61 = vld [vmem:[%s10474_s15 + $0x4c] sm:$0xf] }
 0x2cb   : >> { %8365 = vmatprep.subr.bf16.mxu0 %v8967_v36  ;;  %8238 = vmatpush3.bf16.msra.mxu1 %v8965_v19  ;;  %v5784_v19 = vshll.u32 %v7446_v9, 16  ;;  %v5842_v40 = vshrl.u32 %v10993_v61, 16  ;;  %v5831_v9 = vrot.slane %v5829_v24, 4 }
 0x2cc   : >> { %8239 = vmatprep.subr.bf16.mxu1 %v8968_v47  ;;  %8225 = vmatprep.mubr.bf16.mxu1 %v7286_v59  ;;  %v10949_v60 = vrot.slane %v5766_v51, 5  ;;  %v10969_v43 = vrot.slane %v5749_v17, 4  ;;  %v8982_v59 = vld [vmem:[%s10474_s15 + $0x60] sm:$0xff]  }
 0x2cd   : >> { %8350 = vmatmul.mubr.bf16.vlgmr.msra.gmra.mrb[0].mxu0 %v8966_v39  ;;  %v10982_v39 = vld [vmem:[%s10474_s15 + $0x40] sm:$0xf]  ;;  %v5786_v10 = vrot.slane %v5784_v19, 5 }
 0x2ce   : >> { %8366 = vmatpush3.bf16.msra.mxu0 %v8967_v36  ;;  %8353 = vmatprep.mubr.bf16.mxu0 %v8970_v31  ;;  %v5773_v30 = vor.u32 %v5772_v5, %v10949_v60  ;;  %v8978_v36 = vld [vmem:[%s10474_s15 + $0x54] sm:$0xff]   ;;  %v5814_v27 = vshll.u32 %v10982_v39, 16  ;;  %v5818_v51 = vshrl.u32 %v10982_v39, 16  ;;  %v5755_v20 = vsel %vm9544_vm7, %v10969_v43, %v10966_v0  ;;  %v8984_v0 = vld [vmem:[%s10474_s15 + $0x6c] sm:$0xff]  }
 0x2cf   : >> { %8367 = vmatprep.subr.bf16.mxu0 %v8969_v56  ;;  %8240 = vmatpush3.bf16.msra.mxu1 %v8968_v47  ;;  %v7449_v47 = vld [vmem:[%s10474_s15 + $0x3c] sm:$0xf]  ;;  %v8981_v31 = vld [vmem:[#allocation8 + $0x1e8] sm:$0xff]   ;;  %v5787_v35 = vor.u32 %v5786_v10, %v5783_v4  ;;  %v11036_v43 = vld [vmem:[%s10474_s15 + $0x58] sm:$0xf] }
 0x2d0   : >> { %8241 = vmatprep.subr.bf16.mxu1 %v8971_v6  ;;  %v5774_v16 = vrot.slane %v5773_v30, 4  ;;  %v5805_v41 = vshrl.u32 %v7449_v47, 16  ;;  %v11020_v17 = vrot.slane %v5814_v27, 5  ;;  %v5862_v4 = vshll.u32 %v11036_v43, 16 }
 0x2d1   : >> { %v5788_v19 = vrot.slane %v5787_v35, 4  ;;  %v5866_v10 = vshrl.u32 %v11036_v43, 16 }
 0x2d2   : >> { %8368 = vmatpush3.bf16.msra.mxu0 %v8969_v56  ;;  %8226 = vmatmul.mubr.bf16.gmra.mrb[4].mxu1 %v7287_v12  ;;  %v5763_v12 = vor.u32 %v5762_v23, %v5759_v37  ;;  %v8983_v56 = vld [vmem:[#allocation8 + $0xf0] sm:$0xff]   ;;  %v11014_v37 = vld [vmem:[%s10474_s15 + $0x44] sm:$0x1]  ;;  %v11062_v35 = vrot.slane %v5862_v4, 5 }
 0x2d3   : >> { %8369 = vmatprep.subr.bf16.mxu0 %v8973_v55  ;;  %8242 = vmatpush3.bf16.msra.mxu1 %v8971_v6  ;;  %v5808_v6 = vshll.u32 %v7449_v47, 16 }
 0x2d4   : >> { %8243 = vmatprep.subr.bf16.mxu1 %v8974_v52  ;;  %8229 = vmatprep.mubr.bf16.mxu1 %v7288_v29  ;;  %v10971_v29 = vrot.slane %v5776_v18, 5  ;;  %v5764_v44 = vrot.slane %v5763_v12, 4  ;;  %v5820_v18 = vrot.slane %v5818_v51, 4  ;;  %v7455_v12 = vld [vmem:[%s10474_s15 + $0x54] sm:$0xf] }
 0x2d5   : >> { %8354 = vmatmul.mubr.bf16.gmra.mrb[4].mxu0 %v8972_v25  ;;  %v5745_v25 = vsel %vm9544_vm7, %v10964_v49, %v10941_v45  ;;  %v5807_v45 = vrot.slane %v5805_v41, 4  ;;  %v5810_v23 = vrot.slane %v5808_v6, 5  ;;  %v5844_v49 = vrot.slane %v5842_v40, 4 }
 0x2d6   : >> { %8370 = vmatpush3.bf16.msra.mxu0 %v8973_v55  ;;  %8357 = vmatprep.mubr.bf16.mxu0 %v8976_v57  ;;  %v8985_v55 = vld [vmem:[#allocation8 + $0x1f0] sm:$0xff]   ;;  %v5769_v1 = vsel %vm9544_vm7, %v5764_v44, %v10949_v60  ;;  %v5779_v5 = vsel %vm9544_vm7, %v5774_v16, %v10971_v29  ;;  %v5797_v57 = vor.u32 %v5796_v63, %v10988_v11  ;;  %v11023_v60 = vld [vmem:[%s10474_s15 + $0x50] sm:$0x1]  ;;  %v8987_v29 = vld [vmem:[#allocation8 + $0x1f8] sm:$0xff]   ;;  %v5856_v44 = vshll.u32 %v7455_v12, 16 }
 0x2d7   : >> { %8371 = vmatprep.subr.bf16.mxu0 %v8975_v42  ;;  %8244 = vmatpush3.bf16.msra.mxu1 %v8974_v52  ;;  %v8988_v52 = vld [vmem:[%s10474_s15 + $0xc] sm:$0xff]   ;;  %v7464_v30 = vcombine.low %v5745_v25, %v5755_v20  ;;  %v11032_v14 = vcombine.low %v5769_v1, %v5779_v5  ;;  %v5821_v32 = vor.u32 %v5820_v18, %v11020_v17  ;;  %v5848_v3 = vshll.u32 %v11023_v60, 16  ;;  %v7458_v16 = vld [vmem:[%s10474_s15 + $0x60] sm:$0xf] }
 0x2d8   : >> { %8245 = vmatprep.subr.bf16.mxu1 %v8977_v21  ;;  %v5798_v15 = vrot.slane %v5797_v57, 4  ;;  %v5877_v41 = vshrl.u32 %v7458_v16, 16  ;;  %v5880_v6 = vshll.u32 %v7458_v16, 16  ;;  %v5793_v63 = vsel %vm9544_vm7, %v5788_v19, %v10988_v11  ;;  %v11060_v11 = vld [vmem:[%s10474_s15 + $0x5c] sm:$0x1] }
 0x2d9   : >> { %v5850_v25 = vrot.slane %v5848_v3, 5  ;;  %v5858_v1 = vrot.slane %v5856_v44, 5  ;;  %v8996_v44 = vld [vmem:[%s10474_s15 + $0x3c] sm:$0xff]  }
 0x2da   : >> { %8372 = vmatpush3.bf16.msra.mxu0 %v8975_v42  ;;  %8230 = vmatmul.mubr.bf16.gmra.mrb[8].mxu1 %v7289_v22  ;;  %v5838_v22 = vshll.u32 %v10993_v61, 16  ;;  %v5834_v42 = vrot.slane %v5832_v34, 5  ;;  %v8992_v34 = vld [vmem:[%s10474_s15 + $0x24] sm:$0xff]  }
 0x2db   : >> { %8373 = vmatprep.subr.bf16.mxu0 %v8979_v53  ;;  %8246 = vmatpush3.bf16.msra.mxu1 %v8977_v21 }
 0x2dc   : >> { %8247 = vmatprep.subr.bf16.mxu1 %v8980_v38  ;;  %8233 = vmatprep.mubr.bf16.mxu1 %v7290_v28  ;;  %v8986_v28 = vld [vmem:[#allocation8 + $0xf8] sm:$0xff]   ;;  %v11025_v21 = vrot.slane %v5838_v22, 5  ;;  %v5835_v47 = vor.u32 %v5834_v42, %v5831_v9  ;;  %v7461_v9 = vld [vmem:[%s10474_s15 + $0x6c] sm:$0xf]  ;;  %v11070_v42 = vld [vmem:[%s10474_s15 + $0x70] sm:$0xf] }
 0x2dd   : >> { %8358 = vmatmul.mubr.bf16.gmra.mrb[8].mxu0 %v8978_v36  ;;  %v5811_v36 = vor.u32 %v5810_v23, %v5807_v45  ;;  %v5879_v45 = vrot.slane %v5877_v41, 4  ;;  %v5882_v23 = vrot.slane %v5880_v6, 5  ;;  %v5910_v3 = vshll.u32 %v11070_v42, 16 }
 0x2de   : >> { %8374 = vmatpush3.bf16.msra.mxu0 %v8979_v53  ;;  %8361 = vmatprep.mubr.bf16.mxu0 %v8982_v59  ;;  %v5802_v53 = vrot.slane %v5800_v33, 5  ;;  %v5845_v59 = vor.u32 %v5844_v49, %v11025_v21  ;;  %v5836_v20 = vrot.slane %v5835_v47, 4 }
 0x2df   : >> { %8375 = vmatprep.subr.bf16.mxu0 %v8981_v31  ;;  %8248 = vmatpush3.bf16.msra.mxu1 %v8980_v38  ;;  %v5824_v38 = vshll.u32 %v11014_v37, 16  ;;  %v5812_v40 = vrot.slane %v5811_v36, 4  ;;  %v5901_v36 = vshrl.u32 %v7461_v9, 16 }
 0x2e0   : >> { %8249 = vmatprep.subr.bf16.mxu1 %v8983_v56  ;;  %v5803_v22 = vsel %vm9544_vm7, %v5798_v15, %v5802_v53  ;;  %v5846_v33 = vrot.slane %v5845_v59, 4  ;;  %v8994_v53 = vld [vmem:[#allocation8 + $0x210] sm:$0xff]   ;;  %v5841_v19 = vsel %vm9544_vm7, %v5836_v20, %v11025_v21  ;;  %v8993_v15 = vld [vmem:[%s10474_s15 + $0x30] sm:$0xff]   ;;  %v5883_v21 = vor.u32 %v5882_v23, %v5879_v45 }
 0x2e1   : >> { %v5826_v27 = vrot.slane %v5824_v38, 5  ;;  %v7466_v5 = vcombine.low %v5793_v63, %v5803_v22  ;;  %v5817_v49 = vsel %vm9544_vm7, %v5812_v40, %v11020_v17  ;;  %v5903_v41 = vrot.slane %v5901_v36, 4  ;;  %v11098_v22 = vld [vmem:[%s10474_s15 + $0x74] sm:$0x1]  ;;  %v8998_v40 = vld [vmem:[#allocation8 + $0x220] sm:$0xff]  }
 0x2e2   : >> { %8376 = vmatpush3.bf16.msra.mxu0 %v8981_v31  ;;  %8234 = vmatmul.mubr.bf16.gmra.mrb[12].mxu1 %v7291_v46  ;;  %v8989_v46 = vld [vmem:[%s10474_s15 + $0x18] sm:$0xff]   ;;  %v5853_v31 = vshrl.u32 %v7455_v12, 16  ;;  %v5872_v12 = vshll.u32 %v11060_v11, 16  ;;  %v5851_v38 = vsel %vm9544_vm7, %v5846_v33, %v5850_v25  ;;  %v11095_v63 = vrot.slane %v5910_v3, 5  ;;  %v8997_v25 = vld [vmem:[%s10474_s15 + $0x48] sm:$0xff]   ;;  %v8999_v23 = vld [vmem:[#allocation8 + $0x228] sm:$0xff]  }
 0x2e3   : >> { %8377 = vmatprep.subr.bf16.mxu0 %v8985_v55  ;;  %8250 = vmatpush3.bf16.msra.mxu1 %v8983_v56  ;;  %v11048_v56 = vld [vmem:[%s10474_s15 + $0x64] sm:$0xf]  ;;  %v6168_v45 = vrot.slane %v10924_v26, 5  ;;  %v7485_v36 = vld [vmem:[%s10474_s15 + $0x54] sm:$0xe] }
 0x2e4   : >> { %8251 = vmatprep.subr.bf16.mxu1 %v8986_v28  ;;  %8253 = vmatprep.mubr.bf16.mxu1 %v8988_v52  ;;  %v5886_v51 = vshll.u32 %v11048_v56, 16  ;;  %v5890_v24 = vshrl.u32 %v11048_v56, 16  ;;  %v5855_v52 = vrot.slane %v5853_v31, 4  ;;  %v8995_v31 = vld [vmem:[#allocation8 + $0x218] sm:$0xff]  }
 0x2e5   : >> { %8362 = vmatmul.mubr.bf16.gmra.mrb[12].mxu0 %v8984_v0 }
 0x2e6   : >> { %8378 = vmatpush3.bf16.msra.mxu0 %v8985_v55  ;;  %8381 = vmatprep.mubr.bf16.mxu0 %v7464_v30  ;;  %v5822_v55 = vrot.slane %v5821_v32, 4  ;;  %v11064_v57 = vrot.slane %v5886_v51, 5  ;;  %v5892_v18 = vrot.slane %v5890_v24, 4  ;;  %v11079_v30 = vld [vmem:[%s10474_s15 + $0x68] sm:$0x1]  ;;  %v5904_v32 = vshll.u32 %v7461_v9, 16 }
 0x2e7   : >> { %8379 = vmatprep.subr.bf16.mxu0 %v8987_v29  ;;  %8252 = vmatpush3.bf16.msra.mxu1 %v8986_v28  ;;  %v5868_v28 = vrot.slane %v5866_v10, 4  ;;  %v5896_v47 = vshll.u32 %v11079_v30, 16  ;;  %v5874_v10 = vrot.slane %v5872_v12, 5  ;;  %v5884_v51 = vrot.slane %v5883_v21, 4  ;;  %v7486_v21 = vld [vmem:[%s10474_s15 + $0x60] sm:$0xe] }
 0x2e8   : >> { %8573 = vmatprep.subr.bf16.mxu1 %v11038_v54  ;;  %v5827_v0 = vsel %vm9544_vm7, %v5822_v55, %v5826_v27  ;;  %v5906_v6 = vrot.slane %v5904_v32, 5  ;;  %v6196_v55 = vrot.slane %v10993_v61, 5  ;;  %v6210_v32 = vrot.slane %v11048_v56, 5 }
 0x2e9   : >> { %v5869_v17 = vor.u32 %v5868_v28, %v11062_v35  ;;  %v7467_v59 = vcombine.low %v5817_v49, %v5827_v0  ;;  %v7484_v28 = vld [vmem:[%s10474_s15 + $0x48] sm:$0xe]  ;;  %v5889_v61 = vsel %vm9544_vm7, %v5884_v51, %v11064_v57 }
 0x2ea   : >> { %8380 = vmatpush3.bf16.msra.mxu0 %v8987_v29  ;;  %8254 = vmatmul.mubr.bf16.vlgmr.msra.gmra.mrb[0].mxu1 %v8989_v46  ;;  %v5859_v29 = vor.u32 %v5858_v1, %v5855_v52  ;;  %v5893_v46 = vor.u32 %v5892_v18, %v11064_v57  ;;  %v5907_v33 = vor.u32 %v5906_v6, %v5903_v41  ;;  %v5920_v1 = vshll.u32 %v11098_v22, 16  ;;  %v7480_v18 = vld [vmem:[%s10474_s15 + $0x18] sm:$0xe] }
 0x2eb   : >> { %8397 = vmatprep.subr.bf16.mxu0 %v11038_v54  ;;  %8581 = vmatpush3.bf16.msra.mxu1 %v11038_v54  ;;  %v5870_v4 = vrot.slane %v5869_v17, 4  ;;  %v7492_v49 = vrot.slane %v7484_v28, 9  ;;  %v6198_v0 = vrot.slane %v6196_v55, 4  ;;  %v7488_v26 = vrot.slane %v7480_v18, 9 }
 0x2ec   : >> { %8574 = vmatprep.subr.bf16.mxu1 %v8991_v7  ;;  %8257 = vmatprep.mubr.bf16.mxu1 %v8992_v34  ;;  %v5860_v16 = vrot.slane %v5859_v29, 4  ;;  %v5894_v24 = vrot.slane %v5893_v46, 4  ;;  %v5898_v34 = vrot.slane %v5896_v47, 5  ;;  %v6203_v29 = vrot.slane %v11036_v43, 5  ;;  %v9001_v46 = vld [vmem:[%s10474_s15 + $0x60] sm:$0xff]  }
 0x2ed   : >> { %8382 = vmatmul.mubr.bf16.vlgmr.msra.gmra.mrb[0].mxu0 %v11032_v14  ;;  %v5914_v14 = vshrl.u32 %v11070_v42, 16  ;;  %v5875_v20 = vsel %vm9544_vm7, %v5870_v4, %v5874_v10  ;;  %v6170_v17 = vrot.slane %v6168_v45, 4  ;;  %v6197_v3 = vsel %vm9784_vm10, %v7492_v49, %v6196_v55  ;;  %v9003_v4 = vld [vmem:[#allocation8 + $0x238] sm:$0xff]  }
 0x2ee   : >> { %8398 = vmatpush3.bf16.msra.mxu0 %v11038_v54  ;;  %8385 = vmatprep.mubr.bf16.mxu0 %v7466_v5  ;;  %v7468_v54 = vcombine.low %v5841_v19, %v5851_v38  ;;  %v9000_v5 = vld [vmem:[%s10474_s15 + $0x54] sm:$0xff]   ;;  %v5908_v19 = vrot.slane %v5907_v33, 4  ;;  %v5922_v38 = vrot.slane %v5920_v1, 5  ;;  %v7494_v41 = vrot.slane %v7486_v21, 9 }
 0x2ef   : >> { %8399 = vmatprep.subr.bf16.mxu0 %v8991_v7  ;;  %8582 = vmatpush3.bf16.msra.mxu1 %v8991_v7  ;;  %v5916_v27 = vrot.slane %v5914_v14, 4  ;;  %v6175_v14 = vrot.slane %v10938_v50, 5  ;;  %v6169_v50 = vsel %vm9784_vm10, %v7488_v26, %v6168_v45  ;;  %v6212_v6 = vrot.slane %v6210_v32, 4 }
 0x2f0   : >> { %8575 = vmatprep.subr.bf16.mxu1 %v8994_v53  ;;  %v5913_v56 = vsel %vm9544_vm7, %v5908_v19, %v11095_v63  ;;  %v6185_v55 = vrot.slane %v10979_v62, 5  ;;  %v7487_v62 = vld [vmem:[%s10474_s15 + $0x6c] sm:$0xe]  ;;  %v6192_v19 = vrot.slane %v11014_v37, 5  ;;  %v7517_v37 = vld [vmem:[%s11179_s14 + $0x18] sm:$0xf] }
 0x2f1   : >> { %v5917_v52 = vor.u32 %v5916_v27, %v11095_v63  ;;  %v6213_v63 = vrot.slane %v11079_v30, 5  ;;  %v6177_v51 = vrot.slane %v6175_v14, 4 }
 0x2f2   : >> { %8400 = vmatpush3.bf16.msra.mxu0 %v8991_v7  ;;  %8258 = vmatmul.mubr.bf16.gmra.mrb[4].mxu1 %v8993_v15  ;;  %v5865_v7 = vsel %vm9544_vm7, %v5860_v16, %v11062_v35  ;;  %v5899_v35 = vsel %vm9544_vm7, %v5894_v24, %v5898_v34  ;;  %v6171_v15 = vrot.slane %v10934_v8, 5  ;;  %v6206_v8 = vrot.slane %v11060_v11, 5  ;;  %v7482_v16 = vld [vmem:[%s10474_s15 + $0x30] sm:$0xe] }
 0x2f3   : >> { %8401 = vmatprep.subr.bf16.mxu0 %v8994_v53  ;;  %8583 = vmatpush3.bf16.msra.mxu1 %v8994_v53  ;;  %v7469_v9 = vcombine.low %v5865_v7, %v5875_v20  ;;  %v7470_v12 = vcombine.low %v5889_v61, %v5899_v35  ;;  %v5918_v57 = vrot.slane %v5917_v52, 4  ;;  %v6178_v24 = vrot.slane %v10945_v58, 5 }
 0x2f4   : >> { %8576 = vmatprep.subr.bf16.mxu1 %v8995_v31  ;;  %8261 = vmatprep.mubr.bf16.mxu1 %v8996_v44  ;;  %v6205_v44 = vrot.slane %v6203_v29, 4  ;;  %v6172_v11 = vsel %vm9784_vm10, %v6170_v17, %v6171_v15  ;;  %v6217_v20 = vrot.slane %v11070_v42, 5  ;;  %v6211_v58 = vsel %vm9784_vm10, %v7494_v41, %v6210_v32  ;;  %v7529_v17 = vld [vmem:[%s11179_s14 + $0x48] sm:$0xf]  ;;  %v7514_v15 = vld [vmem:[%s11179_s14 + $0xc] sm:$0xf] }
 0x2f5   : >> { %8386 = vmatmul.mubr.bf16.gmra.mrb[4].mxu0 %v7467_v59  ;;  %v5923_v47 = vsel %vm9544_vm7, %v5918_v57, %v5922_v38  ;;  %v7481_v59 = vld [vmem:[%s10474_s15 + $0x24] sm:$0xe]  ;;  %v7496_v34 = vcombine.low %v6169_v50, %v6172_v11  ;;  %v6214_v33 = vsel %vm9784_vm10, %v6212_v6, %v6213_v63  ;;  %v6179_v1 = vsel %vm9784_vm10, %v6177_v51, %v6178_v24  ;;  %v7515_v6 = vld [vmem:[%s11179_s14 + $0x10] sm:$0xf] }
 0x2f6   : >> { %8402 = vmatpush3.bf16.msra.mxu0 %v8994_v53  ;;  %8389 = vmatprep.mubr.bf16.mxu0 %v7468_v54  ;;  %v6199_v53 = vrot.slane %v11023_v60, 5  ;;  %v9002_v60 = vld [vmem:[#allocation8 + $0x230] sm:$0xff]   ;;  %v7493_v54 = vrot.slane %v7485_v36, 9  ;;  %v7471_v27 = vcombine.low %v5913_v56, %v5923_v47  ;;  %v6189_v35 = vrot.slane %v10982_v39, 5 }
 0x2f7   : >> { %8403 = vmatprep.subr.bf16.mxu0 %v8995_v31  ;;  %8584 = vmatpush3.bf16.msra.mxu1 %v8995_v31  ;;  %v7502_v45 = vcombine.low %v6211_v58, %v6214_v33  ;;  %v6219_v18 = vrot.slane %v6217_v20, 4  ;;  %v6483_v36 = vshrl.u32 %v7517_v37, 16  ;;  %v6486_v32 = vshll.u32 %v7517_v37, 16  ;;  %v7519_v33 = vld [vmem:[%s11179_s14 + $0x20] sm:$0x1] }
 0x2f8   : >> { %8577 = vmatprep.subr.bf16.mxu1 %v8998_v40  ;;  %v6200_v43 = vsel %vm9784_vm10, %v6198_v0, %v6199_v53  ;;  %v6204_v30 = vsel %vm9784_vm10, %v7493_v54, %v6203_v29  ;;  %v6462_v21 = vshll.u32 %v7514_v15, 16 }
 0x2f9   : >> { %v7500_v10 = vcombine.low %v6197_v3, %v6200_v43  ;;  %v6579_v3 = vshrl.u32 %v7529_v17, 16  ;;  %v6582_v43 = vshll.u32 %v7529_v17, 16  ;;  %v6485_v47 = vrot.slane %v6483_v36, 4 }
 0x2fa   : >> { %8404 = vmatpush3.bf16.msra.mxu0 %v8995_v31  ;;  %8262 = vmatmul.mubr.bf16.gmra.mrb[8].mxu1 %v8997_v25  ;;  %v6182_v31 = vrot.slane %v10959_v2, 5  ;;  %v7489_v2 = vrot.slane %v7481_v59, 9  ;;  %v6207_v25 = vsel %vm9784_vm10, %v6205_v44, %v6206_v8  ;;  %v7518_v8 = vld [vmem:[%s11179_s14 + $0x1c] sm:$0xf]  ;;  %v6488_v59 = vrot.slane %v6486_v32, 5 }
 0x2fb   : >> { %8405 = vmatprep.subr.bf16.mxu0 %v8998_v40  ;;  %8585 = vmatpush3.bf16.msra.mxu1 %v8998_v40  ;;  %v7501_v42 = vcombine.low %v6204_v30, %v6207_v25  ;;  %v6584_v44 = vrot.slane %v6582_v43, 5  ;;  %v6492_v50 = vshll.u32 %v7518_v8, 16  ;;  %v6496_v11 = vshrl.u32 %v7518_v8, 16 }
 0x2fc   : >> { %8578 = vmatprep.subr.bf16.mxu1 %v8999_v23  ;;  %8265 = vmatprep.mubr.bf16.mxu1 %v9000_v5  ;;  %v6184_v7 = vrot.slane %v6182_v31, 4  ;;  %v6176_v52 = vsel %vm9784_vm10, %v7489_v2, %v6175_v14  ;;  %v7495_v5 = vrot.slane %v7487_v62, 9  ;;  %v6459_v14 = vshrl.u32 %v7514_v15, 16  ;;  %v7527_v2 = vld [vmem:[%s11179_s14 + $0x40] sm:$0xf] }
 0x2fd   : >> { %8390 = vmatmul.mubr.bf16.gmra.mrb[8].mxu0 %v7469_v9  ;;  %v6220_v9 = vrot.slane %v11098_v22, 5  ;;  %v7497_v49 = vcombine.low %v6176_v52, %v6179_v1  ;;  %v6489_v63 = vor.u32 %v6488_v59, %v6485_v47  ;;  %v6494_v24 = vrot.slane %v6492_v50, 5 }
 0x2fe   : >> { %8406 = vmatpush3.bf16.msra.mxu0 %v8998_v40  ;;  %8393 = vmatprep.mubr.bf16.mxu0 %v7470_v12  ;;  %v7490_v40 = vrot.slane %v7482_v16, 9  ;;  %v6186_v61 = vsel %vm9784_vm10, %v6184_v7, %v6185_v55  ;;  %v6191_v12 = vrot.slane %v6189_v35, 4  ;;  %v6218_v39 = vsel %vm9784_vm10, %v7495_v5, %v6217_v20 }
 0x2ff   : >> { %8407 = vmatprep.subr.bf16.mxu0 %v8999_v23  ;;  %8586 = vmatpush3.bf16.msra.mxu1 %v8999_v23  ;;  %v6221_v57 = vsel %vm9784_vm10, %v6219_v18, %v6220_v9  ;;  %v6461_v54 = vrot.slane %v6459_v14, 4  ;;  %v6464_v16 = vrot.slane %v6462_v21, 5  ;;  %v6498_v7 = vrot.slane %v6496_v11, 4  ;;  %v7531_v18 = vld [vmem:[%s11179_s14 + $0x50] sm:$0x1] }
 0x300   : >> { %8579 = vmatprep.subr.bf16.mxu1 %v9002_v60  ;;  %v6183_v28 = vsel %vm9784_vm10, %v7490_v40, %v6182_v31  ;;  %v6193_v38 = vsel %vm9784_vm10, %v6191_v12, %v6192_v19  ;;  %v7503_v29 = vcombine.low %v6218_v39, %v6221_v57  ;;  %v6581_v31 = vrot.slane %v6579_v3, 4  ;;  %v7523_v14 = vld [vmem:[%s11179_s14 + $0x30] sm:$0xf]  ;;  %v7535_v11 = vld [vmem:[%s11179_s14 + $0x60] sm:$0xf] }
 0x301   : >> { %v7498_v0 = vcombine.low %v6183_v28, %v6186_v61  ;;  %v6465_v40 = vor.u32 %v6464_v16, %v6461_v54  ;;  %v6468_v30 = vshll.u32 %v7515_v6, 16  ;;  %v6472_v20 = vshrl.u32 %v7515_v6, 16  ;;  %v7532_v6 = vld [vmem:[%s11179_s14 + $0x54] sm:$0xf] }
 0x302   : >> { %8408 = vmatpush3.bf16.msra.mxu0 %v8999_v23  ;;  %8266 = vmatmul.mubr.bf16.gmra.mrb[12].mxu1 %v9001_v46  ;;  %v7483_v23 = vld [vmem:[%s10474_s15 + $0x3c] sm:$0xe]  ;;  %v6564_v52 = vshll.u32 %v7527_v2, 16  ;;  %v6568_v1 = vshrl.u32 %v7527_v2, 16  ;;  %v6490_v28 = vrot.slane %v6489_v63, 4  ;;  %v6502_v5 = vshll.u32 %v7519_v33, 16 }
 0x303   : >> { %8409 = vmatprep.subr.bf16.mxu0 %v9002_v60  ;;  %8587 = vmatpush3.bf16.msra.mxu1 %v9002_v60  ;;  %v7491_v53 = vrot.slane %v7483_v23, 9  ;;  %v6499_v23 = vor.u32 %v6498_v7, %v6494_v24  ;;  %v6470_v9 = vrot.slane %v6468_v30, 5  ;;  %v6474_v12 = vrot.slane %v6472_v20, 4  ;;  %v7521_v20 = vld [vmem:[%s11179_s14 + $0x28] sm:$0xf]  ;;  %s9094_s15 = scalar_lea.vmem (%p3569_p0), %s11413_s30, 4096 }
 0x304   : >> { %8580 = vmatprep.subr.bf16.mxu1 %v9003_v4  ;;  %8421 = vmatprep.mubr.bf16.mxu1 %v7500_v10  ;;  %v6566_v19 = vrot.slane %v6564_v52, 5  ;;  %v6570_v39 = vrot.slane %v6568_v1, 4  ;;  %v6495_v57 = vsel %vm9544_vm7, %v6490_v28, %v6494_v24  ;;  %v11211_v15 = vrot.slane %v6502_v5, 5  ;;  %v7533_v52 = vld [vmem:[%s11179_s14 + $0x58] sm:$0xf]  ;;  %p9095_p2 = scmp.ne.s32.totalorder (%p3569_p0), %s11413_s30, %s9094_s15  ;;  %p9102_p1 = scmp.lt.s32.totalorder (%p3569_p0), %s9100_s22, %s9094_s15 }
 0x305   : >> { %8394 = vmatmul.mubr.bf16.gmra.mrb[12].mxu0 %v7471_v27  ;;  %v6190_v22 = vsel %vm9784_vm10, %v7491_v53, %v6189_v35  ;;  %v6585_v27 = vor.u32 %v6584_v44, %v6581_v31  ;;  %v7516_v53 = vld [vmem:[%s11179_s14 + $0x14] sm:$0x1]  ;;  %v11209_v17 = vrot.slane %v6499_v23, 4  ;;  %v6475_v43 = vor.u32 %v6474_v12, %v6470_v9 }
 0x306   : >> { %8410 = vmatpush3.bf16.msra.mxu0 %v9002_v60  ;;  %8413 = vmatprep.mubr.bf16.mxu0 %v7496_v34  ;;  %v7499_v26 = vcombine.low %v6190_v22, %v6193_v38  ;;  %v7526_v60 = vld [vmem:[%s11179_s14 + $0x3c] sm:$0xf]  ;;  %v6598_v38 = vshll.u32 %v7531_v18, 16  ;;  %v6571_v8 = vor.u32 %v6570_v39, %v6566_v19  ;;  %v11223_v59 = vunpack.c.l.bf16 %v6495_v57  ;;  %p9096_p7 = pnand (%p3569_p0), %p9095_p2, %p11522_p3  ;;  %p9103_p13 = por (%p3569_p0), %p9102_p1, %p9101_p12 }
 0x307   : >> { %8411 = vmatprep.subr.bf16.mxu0 %v9003_v4  ;;  %8588 = vmatpush3.bf16.msra.mxu1 %v9003_v4  ;;  %v6555_v46 = vshrl.u32 %v7526_v60, 16  ;;  %v6558_v56 = vshll.u32 %v7526_v60, 16  ;;  %v6586_v61 = vrot.slane %v6585_v27, 4  ;;  %v6478_v60 = vshll.u32 %v7516_v53, 16 }
 0x308   : >> { %v11229_v50 = vrot.slane %v6598_v38, 5  ;;  %v6505_v16 = vsel %vm9544_vm7, %v11209_v17, %v11211_v15  ;;  %v11244_v27 = vrot.slane %v6475_v43, 4  ;;  %v6534_v2 = vshll.u32 %v7523_v14, 16  ;;  %p9097_p9 = pneg (%p3569_p0), %p9096_p7 }
 0x309   : >> { %v6557_v10 = vrot.slane %v6555_v46, 4  ;;  %v6560_v41 = vrot.slane %v6558_v56, 5  ;;  %v7524_v56 = vld [vmem:[%s11179_s14 + $0x34] sm:$0xf]  ;;  %v6630_v30 = vshll.u32 %v7535_v11, 16  ;;  %v6603_v1 = vshrl.u32 %v7532_v6, 16 }
 0x30a   : >> { %8412 = vmatpush3.bf16.msra.mxu0 %v9003_v4  ;;  %8422 = vmatmul.mubr.bf16.vlgmr.msra.gmra.mrb[16].mxu1 %v7501_v42  ;;  %v7530_v4 = vld [vmem:[%s11179_s14 + $0x4c] sm:$0xf]  ;;  %v6540_v24 = vshll.u32 %v7524_v56, 16  ;;  %v6606_v28 = vshll.u32 %v7532_v6, 16  ;;  %v6520_v53 = vshrl.u32 %v7521_v20, 16  ;;  %v6612_v57 = vshll.u32 %v7533_v52, 16  ;;  %p9104_p6 = pnand (%p3569_p0), %p9103_p13, %p9097_p9 }
 0x30b   : >> { %8425 = vmatprep.mubr.bf16.mxu1 %v7502_v45  ;;  %v6588_v34 = vshll.u32 %v7530_v4, 16  ;;  %v6592_v25 = vshrl.u32 %v7530_v4, 16  ;;  %v6561_v58 = vor.u32 %v6560_v41, %v6557_v10  ;;  %v6466_v45 = vrot.slane %v6465_v40, 4  ;;  %v7520_v41 = vld [vmem:[%s11179_s14 + $0x24] sm:$0xf] }
 0x30c   : >> { %v11238_v4 = vrot.slane %v6478_v60, 5  ;;  %v6531_v10 = vshrl.u32 %v7523_v14, 16  ;;  %v11247_v40 = vrot.slane %v6571_v8, 4  ;;  %v6510_v33 = vshll.u32 %v7520_v41, 16 }
 0x30d   : >> { %8414 = vmatmul.mubr.bf16.vlgmr.msra.gmra.mrb[0].mxu0 %v7497_v49  ;;  %v6590_v35 = vrot.slane %v6588_v34, 5  ;;  %v6562_v49 = vrot.slane %v6561_v58, 4  ;;  %v6471_v37 = vsel %vm9544_vm7, %v6466_v45, %v6470_v9  ;;  %v7536_v34 = vld [vmem:[%s11179_s14 + $0x64] sm:$0xf]  ;;  %v6507_v58 = vshrl.u32 %v7520_v41, 16 }
 0x30e   : >> { %8417 = vmatprep.mubr.bf16.mxu0 %v7498_v0  ;;  %v6594_v0 = vrot.slane %v6592_v25, 4  ;;  %v11227_v44 = vunpack.c.l.bf16 %v6471_v37  ;;  %v6627_v25 = vshrl.u32 %v7535_v11, 16  ;;  %v6544_v45 = vshrl.u32 %v7524_v56, 16 }
 0x30f   : >> { %v6591_v22 = vsel %vm9544_vm7, %v6586_v61, %v6590_v35  ;;  %v6567_v32 = vsel %vm9544_vm7, %v6562_v49, %v6566_v19  ;;  %v6636_v23 = vshll.u32 %v7536_v34, 16  ;;  %v6640_v5 = vshrl.u32 %v7536_v34, 16 }
 0x310   : >> { %v6595_v3 = vor.u32 %v6594_v0, %v6590_v35  ;;  %v11225_v31 = vunpack.c.l.bf16 %v6591_v22  ;;  %v11232_v54 = vunpack.c.l.bf16 %v6567_v32  ;;  %v6533_v35 = vrot.slane %v6531_v10, 4 }
 0x311   : >> { %v6536_v9 = vrot.slane %v6534_v2, 5  ;;  %v11253_v49 = vrot.slane %v6540_v24, 5  ;;  %v6516_v0 = vshll.u32 %v7521_v20, 16  ;;  %v6629_v19 = vrot.slane %v6627_v25, 4  ;;  %v7537_v24 = vld [vmem:[%s11179_s14 + $0x68] sm:$0x1] }
 0x312   : >> { %8426 = vmatmul.mubr.bf16.gmra.mrb[20].mxu1 %v7503_v29  ;;  %v7528_v29 = vld [vmem:[%s11179_s14 + $0x44] sm:$0x1]  ;;  %v11242_v63 = vrot.slane %v6595_v3, 4  ;;  %v6632_v39 = vrot.slane %v6630_v30, 5  ;;  %v6616_v22 = vshrl.u32 %v7533_v52, 16  ;;  %v6509_v37 = vrot.slane %v6507_v58, 4 }
 0x313   : >> { %v6574_v46 = vshll.u32 %v7528_v29, 16  ;;  %v6512_v60 = vrot.slane %v6510_v33, 5  ;;  %v6605_v32 = vrot.slane %v6603_v1, 4  ;;  %v6608_v3 = vrot.slane %v6606_v28, 5  ;;  %v7522_v33 = vld [vmem:[%s11179_s14 + $0x2c] sm:$0x1] }
 0x314   : >> { %v11257_v8 = vrot.slane %v6636_v23, 5  ;;  %v6546_v56 = vrot.slane %v6544_v45, 4  ;;  %v6642_v11 = vrot.slane %v6640_v5, 4  ;;  %v6537_v6 = vor.u32 %v6536_v9, %v6533_v35  ;;  %v7534_v23 = vld [vmem:[%s11179_s14 + $0x5c] sm:$0x1] }
 0x315   : >> { %8418 = vmatmul.mubr.bf16.gmra.mrb[4].mxu0 %v7499_v26  ;;  %v11249_v7 = vrot.slane %v6574_v46, 5  ;;  %v7525_v46 = vld [vmem:[%s11179_s14 + $0x38] sm:$0x1]  ;;  %v11262_v2 = vrot.slane %v6516_v0, 5  ;;  %v6522_v34 = vrot.slane %v6520_v53, 4  ;;  %v6633_v20 = vor.u32 %v6632_v39, %v6629_v19 }
 0x316   : >> { %v6614_v58 = vrot.slane %v6612_v57, 5  ;;  %v6618_v52 = vrot.slane %v6616_v22, 4  ;;  %v6513_v28 = vor.u32 %v6512_v60, %v6509_v37  ;;  %v6550_v45 = vshll.u32 %v7525_v46, 16 }
 0x317   : >> { %v11276_v35 = vunpack.c.l.bf16 %v6505_v16  ;;  %v6643_v9 = vor.u32 %v6642_v11, %v11257_v8  ;;  %v6646_v0 = vshll.u32 %v7537_v24, 16  ;;  %v6538_v19 = vrot.slane %v6537_v6, 4 }
 0x318   : >> { %v6523_v39 = vor.u32 %v6522_v34, %v11262_v2  ;;  %v6526_v57 = vshll.u32 %v7522_v33, 16  ;;  %v6481_v17 = vsel %vm9544_vm7, %v11244_v27, %v11238_v4  ;;  %v6634_v15 = vrot.slane %v6633_v20, 4 }
 0x319   : >> { %v6619_v16 = vor.u32 %v6618_v52, %v6614_v58  ;;  %v6648_v11 = vrot.slane %v6646_v0, 5 }
 0x31a   : >> { %v6524_v6 = vrot.slane %v6523_v39, 4  ;;  %v6528_v24 = vrot.slane %v6526_v57, 5 }
 0x3bd   : >> { %v11189_v51 = vpop.f32.mrb[0].mxu1 }
 0x3be   : >> { %v11191_v55 = vpop.f32.mrb[1].mxu1 }
 0x3bf   : >> { %v11194_v62 = vpop.f32.mrb[2].mxu1 }
 0x3c0   : >> { %v11196_v42 = vpop.f32.mrb[3].mxu1 }
 0x3c5   : >> { %v11205_v26 = vpop.f32.mrb[4].mxu1 }
 0x3c6   : >> { %v11213_v36 = vpop.f32.mrb[5].mxu1 }
 0x3c7   : >> { %v11218_v21 = vpop.f32.mrb[6].mxu1 }
 0x3c8   : >> { %v11221_v47 = vpop.f32.mrb[7].mxu1 }
 0x3cd   : >> { %v8263_v61 = vpop.f32.mrb[8].mxu1 }
 0x3ce   : >> { %v4691_v18 = vpop.f32.mrb[9].mxu1 }
 0x3cf   : >> { %v8264_v12 = vpop.f32.mrb[10].mxu1 }
 0x3d0   : >> { %v8391_v38 = vpop.f32.mrb[8].mxu0  ;;  %v4694_v29 = vpop.f32.mrb[11].mxu1 }
 0x3d1   : >> { %v11255_v43 = vadd.f32 %v8391_v38, %v8263_v61  ;;  %v6087_v14 = vpop.f32.mrb[9].mxu0  ;;  %v6609_v61 = vor.u32 %v6608_v3, %v6605_v32  ;;  %v6622_v38 = vshll.u32 %v7534_v23, 16  ;;  %v6552_v32 = vrot.slane %v6550_v45, 5 }
 0x3d2   : >> { %v11260_v10 = vadd.f32 %v6087_v14, %v4691_v18  ;;  %v8392_v41 = vpop.f32.mrb[10].mxu0  ;;  %v6547_v18 = vor.u32 %v6546_v56, %v11253_v49  ;;  %v6644_v56 = vrot.slane %v6643_v9, 4 }
 0x3d3   : >> { %v11265_v25 = vadd.f32 %v8392_v41, %v8264_v12  ;;  %v6090_v30 = vpop.f32.mrb[11].mxu0  ;;  %v6601_v12 = vsel %vm9544_vm7, %v11242_v63, %v11229_v50  ;;  %v6577_v50 = vsel %vm9544_vm7, %v11247_v40, %v11249_v7  ;;  %v6514_v63 = vrot.slane %v6513_v28, 4 }
 0x3d4   : >> { %v11268_v1 = vadd.f32 %v6090_v30, %v4694_v29  ;;  %v6610_v60 = vrot.slane %v6609_v61, 4  ;;  %v6548_v46 = vrot.slane %v6547_v18, 4  ;;  %v6543_v41 = vsel %vm9544_vm7, %v6538_v19, %v11253_v49  ;;  %v11315_v61 = vld [vmem:[%s11461_s4] ss:$0 sm:$0xff] }
 0x3d5   : >> { %v8267_v5 = vpop.f32.mrb[12].mxu1  ;;  %v6639_v7 = vsel %vm9544_vm7, %v6634_v15, %v11257_v8  ;;  %v6620_v30 = vrot.slane %v6619_v16, 4  ;;  %v6624_v20 = vrot.slane %v6622_v38, 5  ;;  %v6700_v52 = vunpack.c.l.bf16 %v6601_v12 }
 0x3d6   : >> { %v4707_v53 = vpop.f32.mrb[13].mxu1  ;;  %v6519_v28 = vsel %vm9544_vm7, %v6514_v63, %v11262_v2  ;;  %v6615_v49 = vsel %vm9544_vm7, %v6610_v60, %v6614_v58  ;;  %v6690_v8 = vunpack.c.l.bf16 %v6481_v17  ;;  %v6698_v23 = vunpack.c.l.bf16 %v6577_v50 }
 0x3d7   : >> { %v8268_v22 = vpop.f32.mrb[14].mxu1  ;;  %v6649_v18 = vsel %vm9544_vm7, %v6644_v56, %v6648_v11  ;;  %v11322_v0 = vunpack.c.l.bf16 %v6543_v41  ;;  %v11324_v58 = vunpack.c.l.bf16 %v6639_v7  ;;  %v11329_v39 = vunpack.c.l.bf16 %v6519_v28 }
 0x3d8   : >> { %v8395_v29 = vpop.f32.mrb[12].mxu0  ;;  %v4710_v37 = vpop.f32.mrb[15].mxu1  ;;  %v11331_v57 = vunpack.c.l.bf16 %v6615_v49 }
 0x3d9   : >> { %v11293_v3 = vadd.f32 %v8395_v29, %v8267_v5  ;;  %v6103_v14 = vpop.f32.mrb[13].mxu0  ;;  %v6553_v5 = vsel %vm9544_vm7, %v6548_v46, %v6552_v32  ;;  %v11340_v29 = vunpack.c.l.bf16 %v6649_v18 }
 0x3da   : >> { %v11295_v4 = vadd.f32 %v6103_v14, %v4707_v53  ;;  %v8396_v27 = vpop.f32.mrb[14].mxu0  ;;  %v6529_v53 = vsel %vm9544_vm7, %v6524_v6, %v6528_v24  ;;  %v11338_v38 = vunpack.c.l.bf16 %v6553_v5 }
 0x3db   : >> { %v11300_v34 = vadd.f32 %v8396_v27, %v8268_v22  ;;  %v6106_v40 = vpop.f32.mrb[15].mxu0  ;;  %v6625_v22 = vsel %vm9544_vm7, %v6620_v30, %v6624_v20  ;;  %v11345_v60 = vunpack.c.l.bf16 %v6529_v53 }
 0x3dc   : >> { %v11305_v33 = vadd.f32 %v6106_v40, %v4710_v37  ;;  %v6702_v56 = vunpack.c.l.bf16 %v6625_v22 }
 0x3dd   : >> { %v8423_v45 = vpop.f32.mrb[16].mxu1 }
 0x3de   : >> { %v8598_v2 = vadd.f32 %v11255_v43, %v8423_v45  ;;  %v6385_v9 = vpop.f32.mrb[17].mxu1 }
 0x3df   : >> { %v8600_v12 = vadd.f32 %v11260_v10, %v6385_v9  ;;  %v8424_v19 = vpop.f32.mrb[18].mxu1 }
 0x3e0   : >> { %v8415_v17 = vpop.f32.mrb[0].mxu0  ;;  %v6683_v43 = vadd.f32 %v8598_v2, %v11315_v61  ;;  %v8602_v15 = vadd.f32 %v11265_v25, %v8424_v19  ;;  %v6388_v16 = vpop.f32.mrb[19].mxu1 }
 0x3e1   : >> { %v8589_v10 = vadd.f32 %v8415_v17, %v11189_v51  ;;  %v6353_v37 = vpop.f32.mrb[1].mxu0  ;;  %v6681_v50 = vadd.f32 %v8600_v12, %v11315_v61  ;;  %v8604_v63 = vadd.f32 %v11268_v1, %v6388_v16 }
 0x3e2   : >> { %v6715_v32 = vadd.f32 %v11225_v31, %v6683_v43  ;;  %v8590_v14 = vadd.f32 %v6353_v37, %v11191_v55  ;;  %v8416_v46 = vpop.f32.mrb[2].mxu0  ;;  %v6684_v25 = vadd.f32 %v8602_v15, %v11315_v61 }
 0x3e3   : >> { %v6675_v11 = vadd.f32 %v8589_v10, %v11315_v61  ;;  %v6713_v51 = vadd.f32 %v11232_v54, %v6681_v50  ;;  %v8591_v27 = vadd.f32 %v8416_v46, %v11194_v62  ;;  %v6356_v1 = vpop.f32.mrb[3].mxu0  ;;  %v6682_v41 = vadd.f32 %v8604_v63, %v11315_v61 }
 0x3e4   : >> { %v6731_v6 = vmax.f32 %v6715_v32, 0.0  ;;  %v6673_v55 = vadd.f32 %v8590_v14, %v11315_v61  ;;  %v6716_v31 = vadd.f32 %v6700_v52, %v6684_v25  ;;  %v8592_v24 = vadd.f32 %v6356_v1, %v11196_v42 }
 0x3e5   : >> { %v6707_v40 = vadd.f32 %v11223_v59, %v6675_v11  ;;  %v6729_v7 = vmax.f32 %v6713_v51, 0.0  ;;  %v6676_v30 = vadd.f32 %v8591_v27, %v11315_v61  ;;  %v6714_v20 = vadd.f32 %v6698_v23, %v6682_v41  ;;  %v8427_v54 = vpop.f32.mrb[20].mxu1 }
 0x3e6   : >> { %6749 = vst [vmem:[%s11352_s16 + $0x50] sm:$0xff] %v6731_v6  ;;  %v6705_v62 = vadd.f32 %v11227_v44, %v6673_v55  ;;  %v6732_v28 = vmax.f32 %v6716_v31, 0.0  ;;  %v6674_v49 = vadd.f32 %v8592_v24, %v11315_v61  ;;  %v8606_v45 = vadd.f32 %v11293_v3, %v8427_v54  ;;  %v6401_v52 = vpop.f32.mrb[21].mxu1 }
 0x3e7   : >> { %v6723_v42 = vmax.f32 %v6707_v40, 0.0  ;;  %6747 = vst [vmem:[%s11352_s16 + $0x40] sm:$0xff] %v6729_v7  ;;  %v6708_v59 = vadd.f32 %v11276_v35, %v6676_v30  ;;  %v6730_v5 = vmax.f32 %v6714_v20, 0.0  ;;  %v8608_v18 = vadd.f32 %v11295_v4, %v6401_v52  ;;  %v8428_v23 = vpop.f32.mrb[22].mxu1 }
 0x3e8   : >> { %v6721_v2 = vmax.f32 %v6705_v62, 0.0  ;;  %6750 = vst [vmem:[%s11352_s16 + $0x58] sm:$0xff] %v6732_v28  ;;  %v6706_v44 = vadd.f32 %v6690_v8, %v6674_v49  ;;  %v8419_v9 = vpop.f32.mrb[4].mxu0  ;;  %v6687_v53 = vadd.f32 %v8606_v45, %v11315_v61  ;;  %v8610_v3 = vadd.f32 %v11300_v34, %v8428_v23  ;;  %v6404_v12 = vpop.f32.mrb[23].mxu1 }
 0x3e9   : >> { %6741 = vst [vmem:[%s11352_s16 + $0x10] sm:$0xff] %v6723_v42  ;;  %v6724_v19 = vmax.f32 %v6708_v59, 0.0  ;;  %6748 = vst [vmem:[%s11352_s16 + $0x48] sm:$0xff] %v6730_v5  ;;  %v8593_v35 = vadd.f32 %v8419_v9, %v11205_v26  ;;  %v6369_v22 = vpop.f32.mrb[5].mxu0  ;;  %v6685_v4 = vadd.f32 %v8608_v18, %v11315_v61  ;;  %v8612_v17 = vadd.f32 %v11305_v33, %v6404_v12 }
 0x3ea   : >> { %6739 = vst [vmem:[%s11352_s16] sm:$0xff] %v6721_v2  ;;  %v6722_v8 = vmax.f32 %v6706_v44, 0.0  ;;  %v6719_v43 = vadd.f32 %v11324_v58, %v6687_v53  ;;  %v8594_v15 = vadd.f32 %v6369_v22, %v11213_v36  ;;  %v8420_v16 = vpop.f32.mrb[6].mxu0  ;;  %v6688_v34 = vadd.f32 %v8610_v3, %v11315_v61 }
 0x3eb   : >> { %6742 = vst [vmem:[%s11352_s16 + $0x18] sm:$0xff] %v6724_v19  ;;  %v6679_v10 = vadd.f32 %v8593_v35, %v11315_v61  ;;  %v6717_v26 = vadd.f32 %v11331_v57, %v6685_v4  ;;  %v8595_v37 = vadd.f32 %v8420_v16, %v11218_v21  ;;  %v6372_v50 = vpop.f32.mrb[7].mxu0  ;;  %v6686_v33 = vadd.f32 %v8612_v17, %v11315_v61 }
 0x3ec   : >> { %6740 = vst [vmem:[%s11352_s16 + $0x8] sm:$0xff] %v6722_v8  ;;  %v6735_v63 = vmax.f32 %v6719_v43, 0.0  ;;  %v6677_v58 = vadd.f32 %v8594_v15, %v11315_v61  ;;  %v6720_v36 = vadd.f32 %v11340_v29, %v6688_v34  ;;  %v8596_v32 = vadd.f32 %v6372_v50, %v11221_v47 }
 0x3ed   : >> { %v6711_v14 = vadd.f32 %v11322_v0, %v6679_v10  ;;  %v6733_v46 = vmax.f32 %v6717_v26, 0.0  ;;  %v6680_v21 = vadd.f32 %v8595_v37, %v11315_v61  ;;  %v6718_v57 = vadd.f32 %v6702_v56, %v6686_v33 }
 0x3ee   : >> { %6753 = vst [vmem:[%s11352_s16 + $0x70] sm:$0xff] %v6735_v63  ;;  %v6709_v25 = vadd.f32 %v11329_v39, %v6677_v58  ;;  %v6736_v11 = vmax.f32 %v6720_v36, 0.0  ;;  %v6678_v51 = vadd.f32 %v8596_v32, %v11315_v61  ;;  %3571 = sbr.rel (!%p3569_p0) target bundleno = 591 (0x24f), region = 144 }
 0x3ef   : >> { %v6727_v29 = vmax.f32 %v6711_v14, 0.0  ;;  %6751 = vst [vmem:[%s11352_s16 + $0x60] sm:$0xff] %v6733_v46  ;;  %v6712_v47 = vadd.f32 %v11338_v38, %v6680_v21  ;;  %v6734_v27 = vmax.f32 %v6718_v57, 0.0 }
 0x3f0   : >> { %v6725_v0 = vmax.f32 %v6709_v25, 0.0  ;;  %6754 = vst [vmem:[%s11352_s16 + $0x78] sm:$0xff] %v6736_v11  ;;  %v6710_v1 = vadd.f32 %v11345_v60, %v6678_v51 }
 0x3f1   : >> { %6745 = vst [vmem:[%s11352_s16 + $0x30] sm:$0xff] %v6727_v29  ;;  %v6728_v41 = vmax.f32 %v6712_v47, 0.0  ;;  %6752 = vst [vmem:[%s11352_s16 + $0x68] sm:$0xff] %v6734_v27 }
 0x3f2   : >> { %6743 = vst [vmem:[%s11352_s16 + $0x20] sm:$0xff] %v6725_v0  ;;  %v6726_v56 = vmax.f32 %v6710_v1, 0.0 }
 0x3f3   : >> { %6746 = vst [vmem:[%s11352_s16 + $0x38] sm:$0xff] %v6728_v41 }
 0x3f4   : >> { %6744 = vst [vmem:[%s11352_s16 + $0x28] sm:$0xff] %v6726_v56 }
 0x3f5   : > { %9107 = shalt.err (!%p9104_p6)
}
 0x3f6   : > { %s9108_s24 = scalar_lea.hbm %s11410_s13, 4096  ;;  %s9112_s9 = scalar_lea.hbm %s11462_s5, 8192 }
 0x3f7   : > { %p9109_p10 = scmp.ne.s32.totalorder %s11410_s13, %s9108_s24  ;;  %p9113_p8 = scmp.lt.u32.totalorder %s11410_s13, %s11462_s5 }
 0x3f8   : > { %p9114_p11 = scmp.lt.u32.totalorder %s9112_s9, %s9108_s24  ;;  %p9116_p2 = scmp.lt.u32.totalorder %s9108_s24, %s11410_s13 }
 0x3f9   : > { %p9110_p4 = pnand %p9109_p10, %p11522_p3 }
 0x3fa   : > { %p9115_p0 = por %p9114_p11, %p9113_p8 }
 0x3fb   : > { %p9111_p5 = pneg %p9110_p4 }
 0x3fc   : > { %p9117_p7 = por %p9116_p2, %p9115_p0 }
 0x3fe   : > { %p9118_p9 = pnand %p9117_p7, %p9111_p5 }
 0x400   : > { %9121 = shalt.err (!%p9118_p9)
}
 0x401   : > { %s9189_s8 = smov 128   ;;  %s9190_s11 = smov 8  }
 0x402   : > { %8730 = dma.vmem_to_hbm [thread:$0]  (%p11522_p3), %s11413_s30, 4096, %s11410_s13, %s6756_s28, %s9189_s8, %s9189_s8, %s9190_s11  }
 0x403 PF: > { %s6784_s12 = sand.u32 1, %s9160_s18   ;;  %p11523_p12 = scmp.ne.s32.totalorder %s11477_s25, 0 }
 0x404   : > { %p11524_p1 = scmp.ge.s32.totalorder %s9172_s21, 2  ;;  %s6785_s15 = scalar_lea.sflag [#allocation5], %s6784_s12 }
 0x406   : > { %p8744_p13 = pnand %p11524_p1, %p11523_p12 }
 0x408   : > { %9155 = dma.done.wait (!%p8744_p13), %s6785_s15, 4096  }
 0x409   : > { %9157 = vsyncadd (!%p8744_p13), %s6785_s15, 4294963200  ;;  %p19_p6 = scmp.ge.s32.totalorder %s9337_s29, 4   ;;  %s11525_s18 = smov %s9164_s19 }
 0x40a   : > { %s11526_s19 = smov %s9168_s20  ;;  %s11527_s20 = smov %s9353_s27 }
 0x40b   : > { %s11528_s21 = smov %s9337_s29  ;;  %21 = sbr.rel (!%p19_p6) target bundleno = 6 (0x6), region = 155 }
 0x412   :  { %6790 = vsyncpa [#allocation4], 1 }
 0x413   :  { %6792 = vsyncpa [#allocation4 + $0x1], 1 }
 0x414   :  { %6793 = vsyncpa [#allocation7], 1 }
 0x415   :  { %6794 = vsyncpa [#allocation5], 1 }
 0x416   :  { %6796 = vsyncpa [#allocation5 + $0x1], 1 }

</bundles_post_ra>
